<compile_context>
chip_gen: v7x
topology: tpu7x:2x2x1
jax: 0.10.0
libtpu: 0.0.40
codegen_flags: <defaults>
</compile_context>

<pallas_src>
import numpy as np
import jax
import jax.numpy as jnp
from jax.experimental import pallas as pl
from jax.experimental.pallas import tpu as pltpu

# ---- lane-padded slab widths (all multiples of 128) ----
N_IN,  N_IN_P  = 243, 256   # 3*81 state (+1 const lane, pad)
N_H1,  N_H1_P  = 392, 512   # 7x7x8
N_H2,  N_H2_P  = 400, 512   # 5x5x16
N_H3,  N_H3_P  = 288, 384   # 3x3x32
N_D1,  N_D1_P  = 400, 512   # 5x5x16
N_D2,  N_D2_P  = 392, 512   # 7x7x8
N_D3,  N_D3_P  = 324, 384   # 9x9x4
N_OUT, N_OUT_P = 244, 256   # 3*81 state cols + 1 reward col

HIGHEST = jax.lax.Precision.HIGHEST


def _round_up(x, m):
    return ((x + m - 1) // m) * m


def _cdiv(a, b):
    return (a + b - 1) // b


# ---------------- structural matrices (deterministic, pure glue) ----------------

def _bilinear_matrix(in_size: int, out_size: int) -> np.ndarray:
    """1-D PyTorch bilinear interpolation matrix, align_corners=False."""
    L = np.zeros((out_size, in_size), dtype=np.float32)
    scale = in_size / out_size
    for o in range(out_size):
        src = (o + 0.5) * scale - 0.5
        src = max(src, 0.0)
        i0 = min(int(np.floor(src)), in_size - 1)
        i1 = min(i0 + 1, in_size - 1)
        w1 = src - i0
        L[o, i0] += 1.0 - w1
        L[o, i1] += w1
    return L


def _interp2d_matrix(in_hw: int, out_hw: int) -> np.ndarray:
    L = _bilinear_matrix(in_hw, out_hw)
    return np.kron(L, L).astype(np.float32)          # (out_hw^2, in_hw^2)


def _shift_valid(hi: int, wi: int) -> np.ndarray:
    """Shift/selection matrices for a 3x3 valid conv: out_flat = S_k @ in_flat."""
    ho, wo = hi - 2, wi - 2
    S = np.zeros((9, ho * wo, hi * wi), dtype=np.float32)
    for ky in range(3):
        for kx in range(3):
            k = ky * 3 + kx
            for i in range(ho):
                for j in range(wo):
                    S[k, i * wo + j, (i + ky) * wi + (j + kx)] = 1.0
    return S


def _shift_same(h: int, w: int) -> np.ndarray:
    """Shift/selection matrices for a 3x3 padding='same' conv."""
    S = np.zeros((9, h * w, h * w), dtype=np.float32)
    for ky in range(3):
        for kx in range(3):
            k = ky * 3 + kx
            for i in range(h):
                for j in range(w):
                    ii, jj = i + ky - 1, j + kx - 1
                    if 0 <= ii < h and 0 <= jj < w:
                        S[k, i * w + j, ii * w + jj] = 1.0
    return S


def build_structural():
    return {
        "s_e1": _shift_valid(9, 9),   # (9, 49, 81)
        "s_e2": _shift_valid(7, 7),   # (9, 25, 49)
        "s_e3": _shift_valid(5, 5),   # (9,  9, 25)
        "s_d1": _shift_same(5, 5),    # (9, 25, 25)
        "s_d2": _shift_same(7, 7),    # (9, 49, 49)
        "s_d3": _shift_same(9, 9),    # (9, 81, 81)  (decoder[2] and decoder[3])
        "m1": _interp2d_matrix(3, 5),  # (25,  9)
        "m2": _interp2d_matrix(5, 7),  # (49, 25)
        "m3": _interp2d_matrix(7, 9),  # (81, 49)
    }


# ---------------- parameters (deterministic synthetic init) ----------------

def init_params(key, act_shape: int):
    ks = jax.random.split(key, 18)

    def w(k, shape, scale=0.1):
        return (scale * jax.random.normal(k, shape)).astype(jnp.float32)

    # Conv weights stored as (9, Cin, Cout) == torch (Cout, Cin, 3, 3) re-laid out.
    return {
        "emb":   w(ks[0], (act_shape, 9), 1.0),          # nn.Embedding(act_shape, 9), frozen
        "w_e1":  w(ks[1], (9, 3, 8)),   "b_e1": w(ks[2],  (1, 8)),
        "w_e2":  w(ks[3], (9, 8, 16)),  "b_e2": w(ks[4],  (1, 16)),
        "w_e3":  w(ks[5], (9, 16, 32)), "b_e3": w(ks[6],  (1, 32)),
        # decoder conv 33->16 split: 32 feature channels + 1 action channel
        "w_d1a": w(ks[7], (9, 32, 16)), "w_d1b": w(ks[8], (9, 1, 16)), "b_d1": w(ks[9],  (1, 16)),
        # decoder conv 32->8 split: 16 decoder channels + 16 skip channels
        "w_d2a": w(ks[10], (9, 16, 8)), "w_d2b": w(ks[11], (9, 16, 8)), "b_d2": w(ks[12], (1, 8)),
        # decoder conv 16->4 split: 8 decoder channels + 8 skip channels
        "w_d3a": w(ks[13], (9, 8, 4)),  "w_d3b": w(ks[14], (9, 8, 4)),  "b_d3": w(ks[15], (1, 4)),
        # final conv 4 -> in_chn+1 = 4, padding='same', no activation
        "w_d4":  w(ks[16], (9, 4, 4)),  "b_d4": w(ks[17], (1, 4)),
    }


# ---------------- host-side folding: shift x interp x conv-weight -> dense A ----------------

def fold_params(params, structural, mxu_dtype=jnp.bfloat16):
    """Fold the 0/1 shift matrices, bilinear matrices, conv weights, biases (via the
    constant-1 lane) and the reward mean into lane-padded dense matrices."""
    st = {k: jnp.asarray(v, jnp.float32) for k, v in structural.items()}

    def fold(S, W, channel_major_in=False):
        # S: (9, Qout, Pin), W: (9, Cin, Cout) -> A: (Pin*Cin, Qout*Cout)
        # (or (Cin*Pin, Qout*Cout) when channel_major_in, matching NCHW flatten)
        W = jnp.asarray(W, jnp.float32)
        eq = "kqp,kio->ipqo" if channel_major_in else "kqp,kio->piqo"
        A = jnp.einsum(eq, S, W, precision=HIGHEST)
        d0, d1, d2, d3 = A.shape
        return A.reshape(d0 * d1, d2 * d3)

    def tile_bias(b, q):
        return jnp.tile(jnp.asarray(b, jnp.float32).reshape(-1), (q,))   # (q*Cout,)

    def assemble(A, bias_row, const_out, k_pad, n_pad):
        """Pad A to (k_pad, n_pad); row K (the input's constant-1 lane) carries the
        bias; column const_out propagates the constant-1 lane to the output slab."""
        K, N = A.shape
        M = jnp.zeros((k_pad, n_pad), jnp.float32).at[:K, :N].set(A)
        if bias_row is not None:
            M = M.at[K, :bias_row.shape[0]].set(bias_row)
        if const_out is not None:
            M = M.at[K, const_out].set(1.0)
        return M

    # decoder shift matrices with the bilinear upsample folded in: S_eff_k = S_k @ M
    s_d1e = jnp.einsum("kqp,pr->kqr", st["s_d1"], st["m1"], precision=HIGHEST)  # (9, 25,  9)
    s_d2e = jnp.einsum("kqp,pr->kqr", st["s_d2"], st["m2"], precision=HIGHEST)  # (9, 49, 25)
    s_d3e = jnp.einsum("kqp,pr->kqr", st["s_d3"], st["m3"], precision=HIGHEST)  # (9, 81, 49)

    a_e1 = assemble(fold(st["s_e1"], params["w_e1"], channel_major_in=True),
                    tile_bias(params["b_e1"], 49), N_H1, N_IN_P, N_H1_P)
    a_e2 = assemble(fold(st["s_e2"], params["w_e2"]),
                    tile_bias(params["b_e2"], 25), N_H2, N_H1_P, N_H2_P)
    a_e3 = assemble(fold(st["s_e3"], params["w_e3"]),
                    tile_bias(params["b_e3"], 9), N_H3, N_H2_P, N_H3_P)
    a_d1 = assemble(fold(s_d1e, params["w_d1a"]),
                    tile_bias(params["b_d1"], 25), N_D1, N_H3_P, N_D1_P)
    a_d2a = assemble(fold(s_d2e, params["w_d2a"]),
                     tile_bias(params["b_d2"], 49), N_D2, N_D1_P, N_D2_P)
    a_d2b = assemble(fold(s_d2e, params["w_d2b"]), None, None, N_H2_P, N_D2_P)
    a_d3a = assemble(fold(s_d3e, params["w_d3a"]),
                     tile_bias(params["b_d3"], 81), N_D3, N_D2_P, N_D3_P)
    a_d3b = assemble(fold(s_d3e, params["w_d3b"]), None, None, N_H1_P, N_D3_P)

    # final conv (4 -> 4, 'same', no ReLU): columns re-ordered channel-major and the
    # reward spatial mean (adaptive_avg_pool2d) folded into one extra column.
    A4 = fold(st["s_d3"], params["w_d4"]).reshape(N_D3, 81, 4)
    state_cols = jnp.transpose(A4[:, :, 0:3], (0, 2, 1)).reshape(N_D3, 3 * 81)
    reward_col = jnp.mean(A4[:, :, 3], axis=1, keepdims=True)
    b4 = jnp.asarray(params["b_d4"], jnp.float32).reshape(-1)
    b4_row = jnp.concatenate([jnp.repeat(b4[:3], 81), b4[3:4]])           # (244,)
    a_d4 = assemble(jnp.concatenate([state_cols, reward_col], axis=1),
                    b4_row, None, N_D3_P, N_OUT_P)

    # Frozen embedding folded through decoder[0]'s action-channel conv:
    # per-action additive contribution table (act_pad, N_D1_P), stays f32.
    a_d1_act = fold(s_d1e, params["w_d1b"])                               # (9, 400)
    tbl = jnp.dot(jnp.asarray(params["emb"], jnp.float32), a_d1_act,
                  precision=HIGHEST)                                      # (act, 400)
    act_shape = params["emb"].shape[0]
    act_pad = max(8, _round_up(act_shape, 8))
    act_table = jnp.zeros((act_pad, N_D1_P), jnp.float32).at[:act_shape, :N_D1].set(tbl)

    folded = {k: v.astype(mxu_dtype) for k, v in
              dict(a_e1=a_e1, a_e2=a_e2, a_e3=a_e3, a_d1=a_d1, a_d2a=a_d2a,
                   a_d2b=a_d2b, a_d3a=a_d3a, a_d3b=a_d3b, a_d4=a_d4).items()}
    folded["act_table"] = act_table
    return folded


# ---------------- the Pallas kernel ----------------

def _deep_model_kernel(state_ref, act_ref, act_tbl_ref,
                       a_e1, a_e2, a_e3, a_d1, a_d2a, a_d2b, a_d3a, a_d3b, a_d4,
                       out_ref):
    f32 = jnp.float32
    bf16 = jnp.bfloat16

    def mm(x, a_ref):
        return jnp.dot(x, a_ref[...], preferred_element_type=f32)

    def relu_b(v):                       # f32 ReLU, stored/reused as bf16
        return jnp.maximum(v, 0.0).astype(bf16)

    x0 = state_ref[...]                              # (TB, 256) bf16, const-1 lane @243

    # encoder (valid 3x3 convs + ReLU), one lane-dense matmul each
    h1 = relu_b(mm(x0, a_e1))                        # (TB, 512)  7x7x8,  const @392
    h2 = relu_b(mm(h1, a_e2))                        # (TB, 512)  5x5x16, const @400
    h3 = relu_b(mm(h2, a_e3))                        # (TB, 384)  3x3x32, const @288

    # in-kernel frozen-embedding lookup: one_hot(action) @ folded per-action table
    a_idx = act_ref[...]                             # (TB, 1) int32
    tb, ap = a_idx.shape[0], act_tbl_ref.shape[0]
    iota = jax.lax.broadcasted_iota(jnp.int32, (tb, ap), 1)
    onehot = (iota == a_idx).astype(f32)
    act_c = jnp.dot(onehot, act_tbl_ref[...], preferred_element_type=f32)  # (TB, 512)

    # decoder: bilinear upsample + conv folded; skips reuse the bf16 h1/h2 copies
    d1 = relu_b(mm(h3, a_d1) + act_c)                # (TB, 512)  5x5x16, const @400
    d2 = relu_b(mm(d1, a_d2a) + mm(h2, a_d2b))       # (TB, 512)  7x7x8,  const @392
    d3 = relu_b(mm(d2, a_d3a) + mm(h1, a_d3b))       # (TB, 384)  9x9x4,  const @324
    # final conv + reward mean folded; output channel-major [3*81 | reward | pad]
    out_ref[...] = mm(d3, a_d4).astype(out_ref.dtype)


# ---------------- wrapper ----------------

def deep_model_forward(state, action, folded, *, block_b=512):
    B = state.shape[0]
    assert state.shape[1:] == (3, 9, 9), "DeepModel architecture implies obs_shape = (3, 9, 9)"

    # Batch tile: multiple of 8, capped at block_b, and chosen so the grid has
    # >= 2 steps whenever B allows it (keeps both v7x TensorCores busy).
    TB = max(8, min(block_b, _round_up(_cdiv(B, 2), 8)))
    Bp = _round_up(B, TB)

    # NCHW flatten is already channel-major (a_e1 rows match) -> no transpose.
    # bf16 halves the state HBM stream; append the constant-1 bias lane and pad.
    x = state.reshape(B, N_IN).astype(jnp.bfloat16)
    state_flat = jnp.concatenate(
        [x, jnp.ones((B, 1), jnp.bfloat16),
         jnp.zeros((B, N_IN_P - N_IN - 1), jnp.bfloat16)], axis=1)        # (B, 256)
    act2d = action.astype(jnp.int32).reshape(B, 1)

    if Bp != B:
        state_flat = jnp.pad(state_flat, ((0, Bp - B), (0, 0)))
        act2d = jnp.pad(act2d, ((0, Bp - B), (0, 0)))

    consts = [folded["act_table"],
              folded["a_e1"], folded["a_e2"], folded["a_e3"], folded["a_d1"],
              folded["a_d2a"], folded["a_d2b"], folded["a_d3a"], folded["a_d3b"],
              folded["a_d4"]]

    in_specs = ([pl.BlockSpec((TB, N_IN_P), lambda b: (b, 0)),
                 pl.BlockSpec((TB, 1), lambda b: (b, 0))] +
                [pl.BlockSpec(a.shape, lambda b: (0, 0)) for a in consts])

    out_flat = pl.pallas_call(
        _deep_model_kernel,
        grid=(Bp // TB,),
        in_specs=in_specs,
        out_specs=pl.BlockSpec((TB, N_OUT_P), lambda b: (b, 0)),
        out_shape=jax.ShapeDtypeStruct((Bp, N_OUT_P), jnp.float32),
        compiler_params=pltpu.CompilerParams(
            dimension_semantics=("parallel",),
            vmem_limit_bytes=48 * 1024 * 1024),     # covers TB=512 on v5e's 16 MiB default
    )(state_flat, act2d, *consts)

    out = out_flat[:B]
    state_next = out[:, :3 * 81].reshape(B, 3, 9, 9)   # channel-major slab -> NCHW
    reward = out[:, 3 * 81]                            # folded adaptive_avg_pool2d
    return state_next, reward


if __name__ == "__main__":
    B, C, H, W = 2, 3, 9, 9
    ACT_SHAPE = 4

    key = jax.random.PRNGKey(0)
    k_state, k_action = jax.random.split(key)
    state = jax.random.normal(k_state, (B, C, H, W), dtype=jnp.float32)
    action = jax.random.randint(k_action, (B,), 0, ACT_SHAPE)

    params = init_params(jax.random.PRNGKey(42), ACT_SHAPE)
    structural = build_structural()
    folded = fold_params(params, structural, mxu_dtype=jnp.bfloat16)

    state_next, reward = deep_model_forward(state, action, folded)
    jax.block_until_ready((state_next, reward))

    assert state_next.shape == (B, 3, 9, 9), state_next.shape
    assert reward.shape == (B,), reward.shape
    assert bool(jnp.all(jnp.isfinite(state_next))) and bool(jnp.all(jnp.isfinite(reward)))
    print("KERNEL_OK")
</pallas_src>

<mosaic_0001>
module attributes {stable_mosaic.version = 11 : i64} {
  func.func @_deep_model_kernel(%arg0: i32, %arg1: memref<8x256xbf16, #tpu.memory_space<vmem>>, %arg2: memref<8x1xi32, #tpu.memory_space<vmem>>, %arg3: memref<8x512xf32, #tpu.memory_space<vmem>>, %arg4: memref<256x512xbf16, #tpu.memory_space<vmem>>, %arg5: memref<512x512xbf16, #tpu.memory_space<vmem>>, %arg6: memref<512x384xbf16, #tpu.memory_space<vmem>>, %arg7: memref<384x512xbf16, #tpu.memory_space<vmem>>, %arg8: memref<512x512xbf16, #tpu.memory_space<vmem>>, %arg9: memref<512x512xbf16, #tpu.memory_space<vmem>>, %arg10: memref<512x384xbf16, #tpu.memory_space<vmem>>, %arg11: memref<512x384xbf16, #tpu.memory_space<vmem>>, %arg12: memref<384x256xbf16, #tpu.memory_space<vmem>>, %arg13: memref<8x256xf32, #tpu.memory_space<vmem>>) attributes {dimension_semantics = [#tpu.dimension_semantics<parallel>], iteration_bounds = array<i64: 1>, scalar_prefetch = 0 : i64, scratch_operands = 0 : i64, tpu.core_type = #tpu.core_type<tc>, window_params = [{transform_indices = @transform_0, window_bounds = array<i64: 8, 256>}, {transform_indices = @transform_1, window_bounds = array<i64: 8, 1>}, {pipeline_mode = #tpu.pipeline_mode<synchronous>, transform_indices = @transform_2, window_bounds = array<i64: 8, 512>}, {pipeline_mode = #tpu.pipeline_mode<synchronous>, transform_indices = @transform_3, window_bounds = array<i64: 256, 512>}, {pipeline_mode = #tpu.pipeline_mode<synchronous>, transform_indices = @transform_4, window_bounds = array<i64: 512, 512>}, {pipeline_mode = #tpu.pipeline_mode<synchronous>, transform_indices = @transform_5, window_bounds = array<i64: 512, 384>}, {pipeline_mode = #tpu.pipeline_mode<synchronous>, transform_indices = @transform_6, window_bounds = array<i64: 384, 512>}, {pipeline_mode = #tpu.pipeline_mode<synchronous>, transform_indices = @transform_7, window_bounds = array<i64: 512, 512>}, {pipeline_mode = #tpu.pipeline_mode<synchronous>, transform_indices = @transform_8, window_bounds = array<i64: 512, 512>}, {pipeline_mode = #tpu.pipeline_mode<synchronous>, transform_indices = @transform_9, window_bounds = array<i64: 512, 384>}, {pipeline_mode = #tpu.pipeline_mode<synchronous>, transform_indices = @transform_10, window_bounds = array<i64: 512, 384>}, {pipeline_mode = #tpu.pipeline_mode<synchronous>, transform_indices = @transform_11, window_bounds = array<i64: 384, 256>}, {transform_indices = @transform_12, window_bounds = array<i64: 8, 256>}]} {
    %c0 = arith.constant 0 : index
    %c0_0 = arith.constant 0 : index
    %0 = vector.load %arg1[%c0, %c0_0] : memref<8x256xbf16, #tpu.memory_space<vmem>>, vector<8x256xbf16>
    %c0_1 = arith.constant 0 : index
    %c0_2 = arith.constant 0 : index
    %1 = vector.load %arg4[%c0_1, %c0_2] : memref<256x512xbf16, #tpu.memory_space<vmem>>, vector<256x512xbf16>
    %cst = arith.constant dense<0.000000e+00> : vector<8x512xf32>
    %2 = tpu.matmul %0, %1, %cst {dimension_numbers = #tpu.dot_dimension_numbers<[1], [0], [0], [1], [0, 0, 1, 1], [], []>} : vector<8x256xbf16>, vector<256x512xbf16>, vector<8x512xf32> -> vector<8x512xf32>
    %cst_3 = arith.constant 0.000000e+00 : f32
    %3 = vector.broadcast %cst_3 : f32 to vector<8x512xf32>
    %4 = arith.maximumf %2, %3 : vector<8x512xf32>
    %5 = arith.truncf %4 : vector<8x512xf32> to vector<8x512xbf16>
    %c0_4 = arith.constant 0 : index
    %c0_5 = arith.constant 0 : index
    %6 = vector.load %arg5[%c0_4, %c0_5] : memref<512x512xbf16, #tpu.memory_space<vmem>>, vector<512x512xbf16>
    %cst_6 = arith.constant dense<0.000000e+00> : vector<8x512xf32>
    %7 = tpu.matmul %5, %6, %cst_6 {dimension_numbers = #tpu.dot_dimension_numbers<[1], [0], [0], [1], [0, 0, 1, 1], [], []>} : vector<8x512xbf16>, vector<512x512xbf16>, vector<8x512xf32> -> vector<8x512xf32>
    %cst_7 = arith.constant 0.000000e+00 : f32
    %8 = vector.broadcast %cst_7 : f32 to vector<8x512xf32>
    %9 = arith.maximumf %7, %8 : vector<8x512xf32>
    %10 = arith.truncf %9 : vector<8x512xf32> to vector<8x512xbf16>
    %c0_8 = arith.constant 0 : index
    %c0_9 = arith.constant 0 : index
    %11 = vector.load %arg6[%c0_8, %c0_9] : memref<512x384xbf16, #tpu.memory_space<vmem>>, vector<512x384xbf16>
    %cst_10 = arith.constant dense<0.000000e+00> : vector<8x384xf32>
    %12 = tpu.matmul %10, %11, %cst_10 {dimension_numbers = #tpu.dot_dimension_numbers<[1], [0], [0], [1], [0, 0, 1, 1], [], []>} : vector<8x512xbf16>, vector<512x384xbf16>, vector<8x384xf32> -> vector<8x384xf32>
    %cst_11 = arith.constant 0.000000e+00 : f32
    %13 = vector.broadcast %cst_11 : f32 to vector<8x384xf32>
    %14 = arith.maximumf %12, %13 : vector<8x384xf32>
    %15 = arith.truncf %14 : vector<8x384xf32> to vector<8x384xbf16>
    %c0_12 = arith.constant 0 : index
    %c0_13 = arith.constant 0 : index
    %16 = vector.load %arg2[%c0_12, %c0_13] : memref<8x1xi32, #tpu.memory_space<vmem>>, vector<8x1xi32>
    %17 = tpu.iota {dimensions = array<i32: 1>} : vector<8x8xi32>
    %18 = vector.broadcast %16 : vector<8x1xi32> to vector<8x8xi32>
    %19 = arith.cmpi eq, %17, %18 : vector<8x8xi32>
    %20 = arith.extui %19 : vector<8x8xi1> to vector<8x8xi32>
    %21 = arith.sitofp %20 : vector<8x8xi32> to vector<8x8xf32>
    %c0_14 = arith.constant 0 : index
    %c0_15 = arith.constant 0 : index
    %22 = vector.load %arg3[%c0_14, %c0_15] : memref<8x512xf32, #tpu.memory_space<vmem>>, vector<8x512xf32>
    %cst_16 = arith.constant dense<0.000000e+00> : vector<8x512xf32>
    %23 = tpu.matmul %21, %22, %cst_16 {dimension_numbers = #tpu.dot_dimension_numbers<[1], [0], [0], [1], [0, 0, 1, 1], [], []>} : vector<8x8xf32>, vector<8x512xf32>, vector<8x512xf32> -> vector<8x512xf32>
    %c0_17 = arith.constant 0 : index
    %c0_18 = arith.constant 0 : index
    %24 = vector.load %arg7[%c0_17, %c0_18] : memref<384x512xbf16, #tpu.memory_space<vmem>>, vector<384x512xbf16>
    %cst_19 = arith.constant dense<0.000000e+00> : vector<8x512xf32>
    %25 = tpu.matmul %15, %24, %cst_19 {dimension_numbers = #tpu.dot_dimension_numbers<[1], [0], [0], [1], [0, 0, 1, 1], [], []>} : vector<8x384xbf16>, vector<384x512xbf16>, vector<8x512xf32> -> vector<8x512xf32>
    %26 = arith.addf %25, %23 : vector<8x512xf32>
    %cst_20 = arith.constant 0.000000e+00 : f32
    %27 = vector.broadcast %cst_20 : f32 to vector<8x512xf32>
    %28 = arith.maximumf %26, %27 : vector<8x512xf32>
    %29 = arith.truncf %28 : vector<8x512xf32> to vector<8x512xbf16>
    %c0_21 = arith.constant 0 : index
    %c0_22 = arith.constant 0 : index
    %30 = vector.load %arg8[%c0_21, %c0_22] : memref<512x512xbf16, #tpu.memory_space<vmem>>, vector<512x512xbf16>
    %cst_23 = arith.constant dense<0.000000e+00> : vector<8x512xf32>
    %31 = tpu.matmul %29, %30, %cst_23 {dimension_numbers = #tpu.dot_dimension_numbers<[1], [0], [0], [1], [0, 0, 1, 1], [], []>} : vector<8x512xbf16>, vector<512x512xbf16>, vector<8x512xf32> -> vector<8x512xf32>
    %c0_24 = arith.constant 0 : index
    %c0_25 = arith.constant 0 : index
    %32 = vector.load %arg9[%c0_24, %c0_25] : memref<512x512xbf16, #tpu.memory_space<vmem>>, vector<512x512xbf16>
    %cst_26 = arith.constant dense<0.000000e+00> : vector<8x512xf32>
    %33 = tpu.matmul %10, %32, %cst_26 {dimension_numbers = #tpu.dot_dimension_numbers<[1], [0], [0], [1], [0, 0, 1, 1], [], []>} : vector<8x512xbf16>, vector<512x512xbf16>, vector<8x512xf32> -> vector<8x512xf32>
    %34 = arith.addf %31, %33 : vector<8x512xf32>
    %cst_27 = arith.constant 0.000000e+00 : f32
    %35 = vector.broadcast %cst_27 : f32 to vector<8x512xf32>
    %36 = arith.maximumf %34, %35 : vector<8x512xf32>
    %37 = arith.truncf %36 : vector<8x512xf32> to vector<8x512xbf16>
    %c0_28 = arith.constant 0 : index
    %c0_29 = arith.constant 0 : index
    %38 = vector.load %arg10[%c0_28, %c0_29] : memref<512x384xbf16, #tpu.memory_space<vmem>>, vector<512x384xbf16>
    %cst_30 = arith.constant dense<0.000000e+00> : vector<8x384xf32>
    %39 = tpu.matmul %37, %38, %cst_30 {dimension_numbers = #tpu.dot_dimension_numbers<[1], [0], [0], [1], [0, 0, 1, 1], [], []>} : vector<8x512xbf16>, vector<512x384xbf16>, vector<8x384xf32> -> vector<8x384xf32>
    %c0_31 = arith.constant 0 : index
    %c0_32 = arith.constant 0 : index
    %40 = vector.load %arg11[%c0_31, %c0_32] : memref<512x384xbf16, #tpu.memory_space<vmem>>, vector<512x384xbf16>
    %cst_33 = arith.constant dense<0.000000e+00> : vector<8x384xf32>
    %41 = tpu.matmul %5, %40, %cst_33 {dimension_numbers = #tpu.dot_dimension_numbers<[1], [0], [0], [1], [0, 0, 1, 1], [], []>} : vector<8x512xbf16>, vector<512x384xbf16>, vector<8x384xf32> -> vector<8x384xf32>
    %42 = arith.addf %39, %41 : vector<8x384xf32>
    %cst_34 = arith.constant 0.000000e+00 : f32
    %43 = vector.broadcast %cst_34 : f32 to vector<8x384xf32>
    %44 = arith.maximumf %42, %43 : vector<8x384xf32>
    %45 = arith.truncf %44 : vector<8x384xf32> to vector<8x384xbf16>
    %c0_35 = arith.constant 0 : index
    %c0_36 = arith.constant 0 : index
    %46 = vector.load %arg12[%c0_35, %c0_36] : memref<384x256xbf16, #tpu.memory_space<vmem>>, vector<384x256xbf16>
    %cst_37 = arith.constant dense<0.000000e+00> : vector<8x256xf32>
    %47 = tpu.matmul %45, %46, %cst_37 {dimension_numbers = #tpu.dot_dimension_numbers<[1], [0], [0], [1], [0, 0, 1, 1], [], []>} : vector<8x384xbf16>, vector<384x256xbf16>, vector<8x256xf32> -> vector<8x256xf32>
    %c0_38 = arith.constant 0 : index
    %c0_39 = arith.constant 0 : index
    %48 = vector.load %arg13[%c0_38, %c0_39] : memref<8x256xf32, #tpu.memory_space<vmem>>, vector<8x256xf32>
    tpu.vector_store %arg13[%c0_38, %c0_39], %47 {strides = array<i32>} : memref<8x256xf32, #tpu.memory_space<vmem>>, vector<8x256xf32>,
    return
  }
  func.func @transform_0(%arg0: i32) -> (i32, i32) {
    %c0_i32 = arith.constant 0 : i32
    %c0_i32_0 = arith.constant 0 : i32
    return %arg0, %c0_i32 : i32, i32
  }
  func.func @transform_1(%arg0: i32) -> (i32, i32) {
    %c0_i32 = arith.constant 0 : i32
    %c0_i32_0 = arith.constant 0 : i32
    return %arg0, %c0_i32 : i32, i32
  }
  func.func @transform_2(%arg0: i32) -> (i32, i32) {
    %c0_i32 = arith.constant 0 : i32
    %c0_i32_0 = arith.constant 0 : i32
    %c0_i32_1 = arith.constant 0 : i32
    return %c0_i32, %c0_i32_0 : i32, i32
  }
  func.func @transform_3(%arg0: i32) -> (i32, i32) {
    %c0_i32 = arith.constant 0 : i32
    %c0_i32_0 = arith.constant 0 : i32
    %c0_i32_1 = arith.constant 0 : i32
    return %c0_i32, %c0_i32_0 : i32, i32
  }
  func.func @transform_4(%arg0: i32) -> (i32, i32) {
    %c0_i32 = arith.constant 0 : i32
    %c0_i32_0 = arith.constant 0 : i32
    %c0_i32_1 = arith.constant 0 : i32
    return %c0_i32, %c0_i32_0 : i32, i32
  }
  func.func @transform_5(%arg0: i32) -> (i32, i32) {
    %c0_i32 = arith.constant 0 : i32
    %c0_i32_0 = arith.constant 0 : i32
    %c0_i32_1 = arith.constant 0 : i32
    return %c0_i32, %c0_i32_0 : i32, i32
  }
  func.func @transform_6(%arg0: i32) -> (i32, i32) {
    %c0_i32 = arith.constant 0 : i32
    %c0_i32_0 = arith.constant 0 : i32
    %c0_i32_1 = arith.constant 0 : i32
    return %c0_i32, %c0_i32_0 : i32, i32
  }
  func.func @transform_7(%arg0: i32) -> (i32, i32) {
    %c0_i32 = arith.constant 0 : i32
    %c0_i32_0 = arith.constant 0 : i32
    %c0_i32_1 = arith.constant 0 : i32
    return %c0_i32, %c0_i32_0 : i32, i32
  }
  func.func @transform_8(%arg0: i32) -> (i32, i32) {
    %c0_i32 = arith.constant 0 : i32
    %c0_i32_0 = arith.constant 0 : i32
    %c0_i32_1 = arith.constant 0 : i32
    return %c0_i32, %c0_i32_0 : i32, i32
  }
  func.func @transform_9(%arg0: i32) -> (i32, i32) {
    %c0_i32 = arith.constant 0 : i32
    %c0_i32_0 = arith.constant 0 : i32
    %c0_i32_1 = arith.constant 0 : i32
    return %c0_i32, %c0_i32_0 : i32, i32
  }
  func.func @transform_10(%arg0: i32) -> (i32, i32) {
    %c0_i32 = arith.constant 0 : i32
    %c0_i32_0 = arith.constant 0 : i32
    %c0_i32_1 = arith.constant 0 : i32
    return %c0_i32, %c0_i32_0 : i32, i32
  }
  func.func @transform_11(%arg0: i32) -> (i32, i32) {
    %c0_i32 = arith.constant 0 : i32
    %c0_i32_0 = arith.constant 0 : i32
    %c0_i32_1 = arith.constant 0 : i32
    return %c0_i32, %c0_i32_0 : i32, i32
  }
  func.func @transform_12(%arg0: i32) -> (i32, i32) {
    %c0_i32 = arith.constant 0 : i32
    %c0_i32_0 = arith.constant 0 : i32
    return %arg0, %c0_i32 : i32, i32
  }
}

</mosaic_0001>

<bundles_post_ra>
// kernel: tpu_custom_call.1
= control target key start
LH: loop header
LB: loop body
LE: loop exit
PB: predicated region body
PF: predicated region fallthrough
CT: control target
= control target key end

     0   :  { %17 = vsyncpa [#allocation3], 0  ;;  %s10175_s0 = inlined_call_operand.vmem [shape: bf16[8,256], index: 0, kind: input, shape index: {}]   ;;  %s10176_s1 = inlined_call_operand.vmem [shape: s32[8,1], index: 1, kind: input, shape index: {}]   ;;  %s10177_s2 = inlined_call_operand.hbm [shape: f32[8,512], index: 2, kind: input, shape index: {}]   ;;  %s10178_s3 = inlined_call_operand.hbm [shape: bf16[256,512], index: 3, kind: input, shape index: {}]   ;;  %s10179_s4 = inlined_call_operand.hbm [shape: bf16[512,512], index: 4, kind: input, shape index: {}]   ;;  %s10180_s5 = inlined_call_operand.hbm [shape: bf16[512,384], index: 5, kind: input, shape index: {}]   ;;  %s10181_s6 = inlined_call_operand.hbm [shape: bf16[384,512], index: 6, kind: input, shape index: {}]   ;;  %s10182_s7 = inlined_call_operand.hbm [shape: bf16[512,512], index: 7, kind: input, shape index: {}]   ;;  %s10183_s8 = inlined_call_operand.hbm [shape: bf16[512,512], index: 8, kind: input, shape index: {}]   ;;  %s10184_s9 = inlined_call_operand.hbm [shape: bf16[512,384], index: 9, kind: input, shape index: {}]   ;;  %s10185_s10 = inlined_call_operand.hbm [shape: bf16[512,384], index: 10, kind: input, shape index: {}]   ;;  %s10186_s11 = inlined_call_operand.hbm [shape: bf16[384,256], index: 11, kind: input, shape index: {}]   ;;  %s10187_s12 = inlined_call_operand.hbm [shape: f32[8,256], index: 12, kind: output, shape index: {}]  }
   0x1   :  { %18 = vsyncpa [#allocation6], 0 }
   0x2   :  { %19 = vsyncpa [#allocation9], 0 }
   0x3   :  { %20 = vsyncpa [#allocation12], 0 }
   0x4   :  { %21 = vsyncpa [#allocation15], 0 }
   0x5   :  { %22 = vsyncpa [#allocation18], 0 }
   0x6   :  { %23 = vsyncpa [#allocation4], 0  ;;  %s9807_s21 = smov [#allocation5]   ;;  %s9551_s25 = scalar_lea.hbm %s10178_s3, 8192 }
   0x7   :  { %s43_s22 = sshll.u32 %s9807_s21, 4  ;;  %p9552_p0 = scmp.ne.s32.totalorder %s10178_s3, %s9551_s25  ;;  %s44_s22 = int_to_ptr.vmem [resolvable:$true] %s43_s22 }
   0x8   :  { %p9555_p1 = scmp.lt.u32.totalorder %s9551_s25, %s10178_s3 }
   0xa   :  { %p9557_p2 = pnand %p9555_p1, %p9552_p0 }
   0xc   :  { %9560 = shalt.err (!%p9557_p2)
}
   0xd   :  { %s9561_s30 = scalar_lea.vmem %s44_s22, 8192  ;;  %p9566_p4 = scmp.lt.s32.totalorder %s44_s22, %s44_s22 }
   0xe   :  { %p9562_p3 = scmp.ne.s32.totalorder %s44_s22, %s9561_s30  ;;  %p9567_p5 = scmp.lt.s32.totalorder %s9561_s30, %s9561_s30 }
  0x10   :  { %p9568_p6 = por %p9567_p5, %p9566_p4 }
  0x12   :  { %p9569_p7 = pnand %p9568_p6, %p9562_p3 }
  0x14   :  { %9572 = shalt.err (!%p9569_p7)
}
  0x15   :  { %s9808_s13 = smov 256   ;;  %s9809_s14 = smov 16  }
  0x16   :  { %49 = dma.hbm_to_vmem [thread:$0]  %s10178_s3, 8192, %s44_s22, [#allocation6], %s9808_s13, %s9808_s13, %s9809_s14  }
  0x17   :  { %s9810_s17 = smov [#allocation8]   ;;  %s9573_s21 = scalar_lea.hbm %s10180_s5, 12288 }
  0x18   :  { %s67_s18 = sshll.u32 %s9810_s17, 4  ;;  %p9574_p8 = scmp.ne.s32.totalorder %s10180_s5, %s9573_s21  ;;  %s68_s18 = int_to_ptr.vmem [resolvable:$true] %s67_s18 }
  0x19   :  { %p9577_p9 = scmp.lt.u32.totalorder %s9573_s21, %s10180_s5 }
  0x1b   :  { %p9579_p10 = pnand %p9577_p9, %p9574_p8 }
  0x1d   :  { %9582 = shalt.err (!%p9579_p10)
}
  0x1e   :  { %s9583_s27 = scalar_lea.vmem %s68_s18, 12288  ;;  %p9588_p12 = scmp.lt.s32.totalorder %s68_s18, %s68_s18 }
  0x1f   :  { %p9584_p11 = scmp.ne.s32.totalorder %s68_s18, %s9583_s27  ;;  %p9589_p13 = scmp.lt.s32.totalorder %s9583_s27, %s9583_s27 }
  0x21   :  { %p9590_p0 = por %p9589_p13, %p9588_p12 }
  0x23   :  { %p9591_p1 = pnand %p9590_p0, %p9584_p11 }
  0x25   :  { %9594 = shalt.err (!%p9591_p1)
}
  0x26   :  { %s9811_s3 = smov 192   ;;  %s9812_s22 = smov 12  }
  0x27   :  { %73 = dma.hbm_to_vmem [thread:$0]  %s10180_s5, 12288, %s68_s18, [#allocation9], %s9811_s3, %s9811_s3, %s9812_s22  }
  0x28   :  { %s9813_s30 = smov [#allocation11]   ;;  %s9814_s16 = smov [#allocation14]  }
  0x29   :  { %s91_s15 = sshll.u32 %s9813_s30, 4  ;;  %s115_s17 = sshll.u32 %s9814_s16, 4  ;;  %s92_s15 = int_to_ptr.vmem [resolvable:$true] %s91_s15  ;;  %s9921_s17 = int_to_ptr.vmem [resolvable:$true] %s115_s17 }
  0x2a   :  { %s9595_s21 = scalar_lea.hbm %s10182_s7, 16384 }
  0x2b   :  { %p9596_p2 = scmp.ne.s32.totalorder %s10182_s7, %s9595_s21  ;;  %p9599_p3 = scmp.lt.u32.totalorder %s9595_s21, %s10182_s7 }
  0x2d   :  { %p9601_p4 = pnand %p9599_p3, %p9596_p2 }
  0x2f   :  { %9604 = shalt.err (!%p9601_p4)
}
  0x30   :  { %s9605_s5 = scalar_lea.vmem %s92_s15, 16384  ;;  %p9610_p6 = scmp.lt.s32.totalorder %s92_s15, %s92_s15 }
  0x31   :  { %p9606_p5 = scmp.ne.s32.totalorder %s92_s15, %s9605_s5  ;;  %p9611_p7 = scmp.lt.s32.totalorder %s9605_s5, %s9605_s5 }
  0x33   :  { %p9612_p8 = por %p9611_p7, %p9610_p6 }
  0x35   :  { %p9613_p9 = pnand %p9612_p8, %p9606_p5 }
  0x37   :  { %9616 = shalt.err (!%p9613_p9)
}
  0x38   :  { %97 = dma.hbm_to_vmem [thread:$0]  %s10182_s7, 16384, %s92_s15, [#allocation12], %s9808_s13, %s9808_s13, %s9809_s14  }
  0x39   :  { %s9617_s30 = scalar_lea.hbm %s10184_s9, 12288 }
  0x3a   :  { %p9618_p10 = scmp.ne.s32.totalorder %s10184_s9, %s9617_s30  ;;  %p9621_p11 = scmp.lt.u32.totalorder %s9617_s30, %s10184_s9 }
  0x3c   :  { %p9623_p12 = pnand %p9621_p11, %p9618_p10 }
  0x3e   :  { %9626 = shalt.err (!%p9623_p12)
}
  0x3f   :  { %s9627_s23 = scalar_lea.vmem %s9921_s17, 12288  ;;  %p9632_p0 = scmp.lt.s32.totalorder %s9921_s17, %s9921_s17 }
  0x40   :  { %p9628_p13 = scmp.ne.s32.totalorder %s9921_s17, %s9627_s23  ;;  %p9633_p1 = scmp.lt.s32.totalorder %s9627_s23, %s9627_s23 }
  0x42   :  { %p9634_p2 = por %p9633_p1, %p9632_p0 }
  0x44   :  { %p9635_p3 = pnand %p9634_p2, %p9628_p13 }
  0x46   :  { %9638 = shalt.err (!%p9635_p3)
}
  0x47   :  { %121 = dma.hbm_to_vmem [thread:$0]  %s10184_s9, 12288, %s9921_s17, [#allocation15], %s9811_s3, %s9811_s3, %s9812_s22  }
  0x48   :  { %s9815_s24 = smov [#allocation2]   ;;  %s9816_s26 = smov [#allocation7]  }
  0x49   :  { %s34_s25 = sshll.u32 %s9815_s24, 4  ;;  %s55_s5 = sshll.u32 %s9816_s26, 4  ;;  %s35_s25 = int_to_ptr.vmem [resolvable:$true] %s34_s25  ;;  %s9958_s5 = int_to_ptr.vmem [resolvable:$true] %s55_s5 }
  0x4a   :  { %s9639_s28 = scalar_lea.hbm %s10177_s2, 512 }
  0x4b   :  { %p9640_p4 = scmp.ne.s32.totalorder %s10177_s2, %s9639_s28  ;;  %p9643_p5 = scmp.lt.u32.totalorder %s9639_s28, %s10177_s2 }
  0x4d   :  { %p9645_p6 = pnand %p9643_p5, %p9640_p4 }
  0x4f   :  { %9648 = shalt.err (!%p9645_p6)
}
  0x50   :  { %s9649_s9 = scalar_lea.vmem %s35_s25, 512  ;;  %p9654_p8 = scmp.lt.s32.totalorder %s35_s25, %s35_s25 }
  0x51   :  { %p9650_p7 = scmp.ne.s32.totalorder %s35_s25, %s9649_s9  ;;  %p9655_p9 = scmp.lt.s32.totalorder %s9649_s9, %s9649_s9 }
  0x53   :  { %p9656_p10 = por %p9655_p9, %p9654_p8 }
  0x55   :  { %p9657_p11 = pnand %p9656_p10, %p9650_p7 }
  0x57   :  { %9660 = shalt.err (!%p9657_p11)
}
  0x58   :  { %37 = dma.hbm_to_vmem [thread:$0]  %s10177_s2, 512, %s35_s25, [#allocation3]  }
  0x59   :  { %s9661_s7 = scalar_lea.hbm %s10179_s4, 16384 }
  0x5a   :  { %p9662_p12 = scmp.ne.s32.totalorder %s10179_s4, %s9661_s7  ;;  %p9665_p13 = scmp.lt.u32.totalorder %s9661_s7, %s10179_s4 }
  0x5c   :  { %p9667_p0 = pnand %p9665_p13, %p9662_p12 }
  0x5e   :  { %9670 = shalt.err (!%p9667_p0)
}
  0x5f   :  { %s9671_s27 = scalar_lea.vmem %s9958_s5, 16384  ;;  %p9676_p2 = scmp.lt.s32.totalorder %s9958_s5, %s9958_s5 }
  0x60   :  { %p9672_p1 = scmp.ne.s32.totalorder %s9958_s5, %s9671_s27  ;;  %p9677_p3 = scmp.lt.s32.totalorder %s9671_s27, %s9671_s27 }
  0x62   :  { %p9678_p4 = por %p9677_p3, %p9676_p2 }
  0x64   :  { %p9679_p5 = pnand %p9678_p4, %p9672_p1 }
  0x66   :  { %9682 = shalt.err (!%p9679_p5)
}
  0x67   :  { %61 = dma.hbm_to_vmem [thread:$0]  %s10179_s4, 16384, %s9958_s5, [#allocation6], %s9808_s13, %s9808_s13, %s9809_s14  }
  0x68   :  { %s9817_s28 = smov [#allocation10]   ;;  %s9818_s30 = smov [#allocation13]  }
  0x69   :  { %s79_s29 = sshll.u32 %s9817_s28, 4  ;;  %s103_s16 = sshll.u32 %s9818_s30, 4  ;;  %s80_s29 = int_to_ptr.vmem [resolvable:$true] %s79_s29  ;;  %s9992_s16 = int_to_ptr.vmem [resolvable:$true] %s103_s16 }
  0x6a   :  { %s9683_s17 = scalar_lea.hbm %s10181_s6, 12288 }
  0x6b   :  { %p9684_p6 = scmp.ne.s32.totalorder %s10181_s6, %s9683_s17  ;;  %p9687_p7 = scmp.lt.u32.totalorder %s9683_s17, %s10181_s6 }
  0x6d   :  { %p9689_p8 = pnand %p9687_p7, %p9684_p6 }
  0x6f   :  { %9692 = shalt.err (!%p9689_p8)
}
  0x70   :  { %s9693_s4 = scalar_lea.vmem %s80_s29, 12288  ;;  %p9698_p10 = scmp.lt.s32.totalorder %s80_s29, %s80_s29 }
  0x71   :  { %p9694_p9 = scmp.ne.s32.totalorder %s80_s29, %s9693_s4  ;;  %p9699_p11 = scmp.lt.s32.totalorder %s9693_s4, %s9693_s4 }
  0x73   :  { %p9700_p12 = por %p9699_p11, %p9698_p10 }
  0x75   :  { %p9701_p13 = pnand %p9700_p12, %p9694_p9 }
  0x77   :  { %9704 = shalt.err (!%p9701_p13)
}
  0x78   :  { %85 = dma.hbm_to_vmem [thread:$0]  %s10181_s6, 12288, %s80_s29, [#allocation9], %s9808_s13, %s9808_s13, %s9809_s14  }
  0x79   :  { %s9705_s18 = scalar_lea.hbm %s10183_s8, 16384 }
  0x7a   :  { %p9706_p0 = scmp.ne.s32.totalorder %s10183_s8, %s9705_s18  ;;  %p9709_p1 = scmp.lt.u32.totalorder %s9705_s18, %s10183_s8 }
  0x7c   :  { %p9711_p2 = pnand %p9709_p1, %p9706_p0 }
  0x7e   :  { %9714 = shalt.err (!%p9711_p2)
}
  0x7f   :  { %s9715_s30 = scalar_lea.vmem %s9992_s16, 16384  ;;  %p9720_p4 = scmp.lt.s32.totalorder %s9992_s16, %s9992_s16 }
  0x80   :  { %p9716_p3 = scmp.ne.s32.totalorder %s9992_s16, %s9715_s30  ;;  %p9721_p5 = scmp.lt.s32.totalorder %s9715_s30, %s9715_s30 }
  0x82   :  { %p9722_p6 = por %p9721_p5, %p9720_p4 }
  0x84   :  { %p9723_p7 = pnand %p9722_p6, %p9716_p3 }
  0x86   :  { %9726 = shalt.err (!%p9723_p7)
}
  0x87   :  { %109 = dma.hbm_to_vmem [thread:$0]  %s10183_s8, 16384, %s9992_s16, [#allocation12], %s9808_s13, %s9808_s13, %s9809_s14  }
  0x88   :  { %s9819_s19 = smov [#allocation16]   ;;  %s9820_s17 = smov [#allocation17]  }
  0x89   :  { %s127_s9 = sshll.u32 %s9819_s19, 4  ;;  %s139_s20 = sshll.u32 %s9820_s17, 4  ;;  %s128_s9 = int_to_ptr.vmem [resolvable:$true] %s127_s9  ;;  %s10029_s20 = int_to_ptr.vmem [resolvable:$true] %s139_s20 }
  0x8a   :  { %s9727_s7 = scalar_lea.hbm %s10185_s10, 12288 }
  0x8b   :  { %p9728_p8 = scmp.ne.s32.totalorder %s10185_s10, %s9727_s7  ;;  %p9731_p9 = scmp.lt.u32.totalorder %s9727_s7, %s10185_s10 }
  0x8d   :  { %p9733_p10 = pnand %p9731_p9, %p9728_p8 }
  0x8f   :  { %9736 = shalt.err (!%p9733_p10)
}
  0x90   :  { %s9737_s8 = scalar_lea.vmem %s128_s9, 12288  ;;  %p9742_p12 = scmp.lt.s32.totalorder %s128_s9, %s128_s9 }
  0x91   :  { %p9738_p11 = scmp.ne.s32.totalorder %s128_s9, %s9737_s8  ;;  %p9743_p13 = scmp.lt.s32.totalorder %s9737_s8, %s9737_s8 }
  0x93   :  { %p9744_p0 = por %p9743_p13, %p9742_p12 }
  0x95   :  { %p9745_p1 = pnand %p9744_p0, %p9738_p11 }
  0x97   :  { %9748 = shalt.err (!%p9745_p1)
}
  0x98   :  { %133 = dma.hbm_to_vmem [thread:$0]  %s10185_s10, 12288, %s128_s9, [#allocation15], %s9811_s3, %s9811_s3, %s9812_s22  }
  0x99   :  { %s9749_s18 = scalar_lea.hbm %s10186_s11, 6144 }
  0x9a   :  { %p9750_p2 = scmp.ne.s32.totalorder %s10186_s11, %s9749_s18  ;;  %p9753_p3 = scmp.lt.u32.totalorder %s9749_s18, %s10186_s11 }
  0x9c   :  { %p9755_p4 = pnand %p9753_p3, %p9750_p2 }
  0x9e   :  { %9758 = shalt.err (!%p9755_p4)
}
  0x9f   :  { %s9759_s30 = scalar_lea.vmem %s10029_s20, 6144  ;;  %p9764_p6 = scmp.lt.s32.totalorder %s10029_s20, %s10029_s20 }
  0xa0   :  { %p9760_p5 = scmp.ne.s32.totalorder %s10029_s20, %s9759_s30  ;;  %p9765_p7 = scmp.lt.s32.totalorder %s9759_s30, %s9759_s30 }
  0xa2   :  { %p9766_p8 = por %p9765_p7, %p9764_p6 }
  0xa4   :  { %p9767_p9 = pnand %p9766_p8, %p9760_p5 }
  0xa6   :  { %9770 = shalt.err (!%p9767_p9)
}
  0xa7   :  { %s9821_s10 = smov 128   ;;  %s9822_s3 = smov 8  }
  0xa8   :  { %145 = dma.hbm_to_vmem [thread:$0]  %s10186_s11, 6144, %s10029_s20, [#allocation18], %s9821_s10, %s9821_s10, %s9822_s3  }
  0xa9   :  { %9793 = dma.done.wait [#allocation3], 512  }
  0xaa   :  { %9794 = vsyncadd [#allocation3], 4294966784 }
  0xab   :  { %9795 = dma.done.wait [#allocation6], 24576  }
  0xac   :  { %9796 = vsyncadd [#allocation6], 4294942720 }
  0xad   :  { %9797 = dma.done.wait [#allocation9], 24576  }
  0xae   :  { %9798 = vsyncadd [#allocation9], 4294942720 }
  0xaf   :  { %9799 = dma.done.wait [#allocation12], 32768  }
  0xb0   :  { %9800 = vsyncadd [#allocation12], 4294934528 }
  0xb1   :  { %9801 = dma.done.wait [#allocation15], 24576  }
  0xb2   :  { %9802 = vsyncadd [#allocation15], 4294942720 }
  0xb3   :  { %9803 = dma.done.wait [#allocation18], 6144  }
  0xb4   :  { %9804 = vsyncadd [#allocation18], 4294961152  ;;  %v8277_v0 = vld [vmem:[#allocation5 + $0x4] ss:$16 sps:$4 sm:$0xff]   ;;  %v8279_v1 = vld [vmem:[#allocation5] ss:$16 sps:$4 sm:$0xff]  }
  0xb5   :  { %569 = vmatprep.subr.bf16.mxu0 %v8277_v0  ;;  %v8280_v2 = vld [vmem:[#allocation5 + $0x24] ss:$16 sps:$4 sm:$0xff]   ;;  %v8282_v3 = vld [vmem:[#allocation5 + $0x20] ss:$16 sps:$4 sm:$0xff]   ;;  %v8324_v14 = vld [vmem:[#allocation5 + $0xc] ss:$16 sps:$4 sm:$0xff]  }
  0xb6   :  { %570 = vmatpush1.bf16.msra.mxu0 %v8279_v1  ;;  %v8283_v4 = vld [vmem:[#allocation5 + $0x44] ss:$16 sps:$4 sm:$0xff]   ;;  %v8285_v5 = vld [vmem:[#allocation5 + $0x40] ss:$16 sps:$4 sm:$0xff]   ;;  %v8327_v16 = vld [vmem:[#allocation5 + $0x8] ss:$16 sps:$4 sm:$0xff]   ;;  %610 = vmatprep.subr.bf16.mxu1 %v8324_v14 }
  0xb7   :  { %571 = vmatprep.subr.bf16.mxu0 %v8280_v2  ;;  %v8286_v6 = vld [vmem:[#allocation5 + $0x64] ss:$16 sps:$4 sm:$0xff]   ;;  %v8288_v7 = vld [vmem:[#allocation5 + $0x60] ss:$16 sps:$4 sm:$0xff]   ;;  %v8330_v19 = vld [vmem:[#allocation5 + $0x2c] ss:$16 sps:$4 sm:$0xff]   ;;  %611 = vmatpush1.bf16.msra.mxu1 %v8327_v16 }
  0xb8   :  { %v8289_v8 = vld [vmem:[#allocation5 + $0x84] ss:$16 sps:$4 sm:$0xff]   ;;  %v8291_v9 = vld [vmem:[#allocation5 + $0x80] ss:$16 sps:$4 sm:$0xff]   ;;  %v8332_v20 = vld [vmem:[#allocation5 + $0x28] ss:$16 sps:$4 sm:$0xff]   ;;  %612 = vmatprep.subr.bf16.mxu1 %v8330_v19 }
  0xb9   :  { %v8292_v10 = vld [vmem:[#allocation5 + $0xa4] ss:$16 sps:$4 sm:$0xff]   ;;  %v8294_v11 = vld [vmem:[#allocation5 + $0xa0] ss:$16 sps:$4 sm:$0xff]   ;;  %v8333_v21 = vld [vmem:[#allocation5 + $0x4c] ss:$16 sps:$4 sm:$0xff]  }
  0xba   :  { %572 = vmatpush1.bf16.msra.mxu0 %v8282_v3  ;;  %v8295_v12 = vld [vmem:[#allocation5 + $0xc4] ss:$16 sps:$4 sm:$0xff]   ;;  %v8297_v13 = vld [vmem:[#allocation5 + $0xc0] ss:$16 sps:$4 sm:$0xff]   ;;  %v8335_v24 = vld [vmem:[#allocation5 + $0x48] ss:$16 sps:$4 sm:$0xff]  }
  0xbb   :  { %573 = vmatprep.subr.bf16.mxu0 %v8283_v4  ;;  %v8298_v15 = vld [vmem:[#allocation5 + $0xe4] ss:$16 sps:$4 sm:$0xff]   ;;  %v8300_v22 = vld [vmem:[#allocation5 + $0xe0] ss:$16 sps:$4 sm:$0xff]   ;;  %613 = vmatpush1.bf16.msra.mxu1 %v8332_v20  ;;  %v8336_v25 = vld [vmem:[#allocation5 + $0x6c] ss:$16 sps:$4 sm:$0xff]  }
  0xbc   :  { %v10066_v17 = vld [vmem:[%s10175_s0] sm:$0xff]  ;;  %614 = vmatprep.subr.bf16.mxu1 %v8333_v21  ;;  %v8338_v28 = vld [vmem:[#allocation5 + $0x68] ss:$16 sps:$4 sm:$0xff]   ;;  %v8339_v29 = vld [vmem:[#allocation5 + $0x8c] ss:$16 sps:$4 sm:$0xff]   ;;  %vm2420_vm0 = vcmask 64512  }
  0xbd   :  { %v7189_v18 = vcombine.high %v10066_v17, %v10066_v17  ;;  %v8301_v23 = vld [vmem:[#allocation5 + $0x104] ss:$16 sps:$4 sm:$0xff]   ;;  %v8303_v26 = vld [vmem:[#allocation5 + $0x100] ss:$16 sps:$4 sm:$0xff]   ;;  %v8341_v32 = vld [vmem:[#allocation5 + $0x88] ss:$16 sps:$4 sm:$0xff]   ;;  %v7188_v58 = vcombine.low %v10066_v17, %v10066_v17 }
  0xbe   :  { %574 = vmatpush1.bf16.msra.mxu0 %v8285_v5  ;;  %v8304_v27 = vld [vmem:[#allocation5 + $0x124] ss:$16 sps:$4 sm:$0xff]   ;;  %v8306_v30 = vld [vmem:[#allocation5 + $0x120] ss:$16 sps:$4 sm:$0xff]   ;;  %v8342_v33 = vld [vmem:[#allocation5 + $0xac] ss:$16 sps:$4 sm:$0xff]  }
  0xbf   :  { %575 = vmatprep.subr.bf16.mxu0 %v8286_v6  ;;  %601 = vmatprep.mubr.bf16.mxu0 %v7189_v18  ;;  %v8307_v31 = vld [vmem:[#allocation5 + $0x144] ss:$16 sps:$4 sm:$0xff]   ;;  %v8309_v34 = vld [vmem:[#allocation5 + $0x140] ss:$16 sps:$4 sm:$0xff]   ;;  %v8344_v36 = vld [vmem:[#allocation5 + $0xa8] ss:$16 sps:$4 sm:$0xff]  }
  0xc0   :  { %642 = vmatprep.mubr.bf16.mxu1 %v7189_v18  ;;  %615 = vmatpush1.bf16.msra.mxu1 %v8335_v24  ;;  %v8310_v35 = vld [vmem:[#allocation5 + $0x164] ss:$16 sps:$4 sm:$0xff]   ;;  %v8345_v37 = vld [vmem:[#allocation5 + $0xcc] ss:$16 sps:$4 sm:$0xff]   ;;  %v8312_v38 = vld [vmem:[#allocation5 + $0x160] ss:$16 sps:$4 sm:$0xff]  }
  0xc1   :  { %616 = vmatprep.subr.bf16.mxu1 %v8336_v25  ;;  %v8313_v39 = vld [vmem:[#allocation5 + $0x184] ss:$16 sps:$4 sm:$0xff]   ;;  %v8347_v40 = vld [vmem:[#allocation5 + $0xc8] ss:$16 sps:$4 sm:$0xff]   ;;  %v8348_v41 = vld [vmem:[#allocation5 + $0xec] ss:$16 sps:$4 sm:$0xff]  }
  0xc2   :  { %576 = vmatpush1.bf16.msra.mxu0 %v8288_v7  ;;  %v8315_v42 = vld [vmem:[#allocation5 + $0x180] ss:$16 sps:$4 sm:$0xff]   ;;  %v8316_v43 = vld [vmem:[#allocation5 + $0x1a4] ss:$16 sps:$4 sm:$0xff]   ;;  %v8350_v44 = vld [vmem:[#allocation5 + $0xe8] ss:$16 sps:$4 sm:$0xff]  }
  0xc3   :  { %577 = vmatprep.subr.bf16.mxu0 %v8289_v8  ;;  %v8351_v45 = vld [vmem:[#allocation5 + $0x10c] ss:$16 sps:$4 sm:$0xff]   ;;  %v8318_v46 = vld [vmem:[#allocation5 + $0x1a0] ss:$16 sps:$4 sm:$0xff]   ;;  %v8319_v47 = vld [vmem:[#allocation5 + $0x1c4] ss:$16 sps:$4 sm:$0xff]  }
  0xc4   :  { %617 = vmatpush1.bf16.msra.mxu1 %v8338_v28  ;;  %v8353_v48 = vld [vmem:[#allocation5 + $0x108] ss:$16 sps:$4 sm:$0xff]   ;;  %v8354_v49 = vld [vmem:[#allocation5 + $0x12c] ss:$16 sps:$4 sm:$0xff]   ;;  %v8321_v50 = vld [vmem:[#allocation5 + $0x1c0] ss:$16 sps:$4 sm:$0xff]  }
  0xc5   :  { %618 = vmatprep.subr.bf16.mxu1 %v8339_v29  ;;  %v8322_v51 = vld [vmem:[#allocation5 + $0x1e4] ss:$16 sps:$4 sm:$0xff]   ;;  %v8356_v52 = vld [vmem:[#allocation5 + $0x128] ss:$16 sps:$4 sm:$0xff]   ;;  %v8357_v53 = vld [vmem:[#allocation5 + $0x14c] ss:$16 sps:$4 sm:$0xff]  }
  0xc6   :  { %578 = vmatpush1.bf16.msra.mxu0 %v8291_v9  ;;  %v8326_v54 = vld [vmem:[#allocation5 + $0x1e0] ss:$16 sps:$4 sm:$0xff]   ;;  %v8359_v55 = vld [vmem:[#allocation5 + $0x148] ss:$16 sps:$4 sm:$0xff]   ;;  %v8377_v56 = vld [vmem:[#allocation7 + $0x4] ss:$16 sps:$4 sm:$0xff]  }
  0xc7   :  { %579 = vmatprep.subr.bf16.mxu0 %v8292_v10  ;;  %v8360_v57 = vld [vmem:[#allocation5 + $0x16c] ss:$16 sps:$4 sm:$0xff]   ;;  %v8362_v59 = vld [vmem:[#allocation5 + $0x168] ss:$16 sps:$4 sm:$0xff]   ;;  %v8375_v60 = vld [vmem:[#allocation7] ss:$16 sps:$4 sm:$0xff]  }
  0xc8   :  { %619 = vmatpush1.bf16.msra.mxu1 %v8341_v32  ;;  %v8383_v61 = vld [vmem:[#allocation7 + $0x24] ss:$16 sps:$4 sm:$0xff]   ;;  %v8363_v62 = vld [vmem:[#allocation5 + $0x18c] ss:$16 sps:$4 sm:$0xff]   ;;  %v8365_v63 = vld [vmem:[#allocation5 + $0x188] ss:$16 sps:$4 sm:$0xff]  }
  0xc9   :  { %620 = vmatprep.subr.bf16.mxu1 %v8342_v33  ;;  %v8381_v0 = vld [vmem:[#allocation7 + $0x20] ss:$16 sps:$4 sm:$0xff]   ;;  %v8389_v1 = vld [vmem:[#allocation7 + $0x44] ss:$16 sps:$4 sm:$0xff]   ;;  %v8366_v2 = vld [vmem:[#allocation5 + $0x1ac] ss:$16 sps:$4 sm:$0xff]  }
  0xca   :  { %580 = vmatpush1.bf16.msra.mxu0 %v8294_v11  ;;  %v8368_v3 = vld [vmem:[#allocation5 + $0x1a8] ss:$16 sps:$4 sm:$0xff]   ;;  %v8387_v4 = vld [vmem:[#allocation7 + $0x40] ss:$16 sps:$4 sm:$0xff]   ;;  %v8395_v5 = vld [vmem:[#allocation7 + $0x64] ss:$16 sps:$4 sm:$0xff]  }
  0xcb   :  { %581 = vmatprep.subr.bf16.mxu0 %v8295_v12  ;;  %v8369_v6 = vld [vmem:[#allocation5 + $0x1cc] ss:$16 sps:$4 sm:$0xff]   ;;  %v8371_v7 = vld [vmem:[#allocation5 + $0x1c8] ss:$16 sps:$4 sm:$0xff]   ;;  %v8393_v8 = vld [vmem:[#allocation7 + $0x60] ss:$16 sps:$4 sm:$0xff]  }
  0xcc   :  { %621 = vmatpush1.bf16.msra.mxu1 %v8344_v36  ;;  %v8401_v9 = vld [vmem:[#allocation7 + $0x84] ss:$16 sps:$4 sm:$0xff]   ;;  %v8372_v10 = vld [vmem:[#allocation5 + $0x1ec] ss:$16 sps:$4 sm:$0xff]   ;;  %v8374_v11 = vld [vmem:[#allocation5 + $0x1e8] ss:$16 sps:$4 sm:$0xff]  }
  0xcd   :  { %622 = vmatprep.subr.bf16.mxu1 %v8345_v37  ;;  %v8399_v12 = vld [vmem:[#allocation7 + $0x80] ss:$16 sps:$4 sm:$0xff]   ;;  %v8380_v14 = vld [vmem:[#allocation7 + $0xc] ss:$16 sps:$4 sm:$0xff]   ;;  %v8413_v17 = vld [vmem:[#allocation7 + $0xc4] ss:$16 sps:$4 sm:$0xff]  }
  0xce   :  { %582 = vmatpush1.bf16.msra.mxu0 %v8297_v13  ;;  %v8407_v13 = vld [vmem:[#allocation7 + $0xa4] ss:$16 sps:$4 sm:$0xff]   ;;  %v8405_v16 = vld [vmem:[#allocation7 + $0xa0] ss:$16 sps:$4 sm:$0xff]   ;;  %v8386_v18 = vld [vmem:[#allocation7 + $0x2c] ss:$16 sps:$4 sm:$0xff]  }
  0xcf   :  { %583 = vmatprep.subr.bf16.mxu0 %v8298_v15  ;;  %v8378_v15 = vld [vmem:[#allocation7 + $0x8] ss:$16 sps:$4 sm:$0xff]   ;;  %v8411_v19 = vld [vmem:[#allocation7 + $0xc0] ss:$16 sps:$4 sm:$0xff]   ;;  %v8419_v21 = vld [vmem:[#allocation7 + $0xe4] ss:$16 sps:$4 sm:$0xff]  }
  0xd0   :  { %623 = vmatpush1.bf16.msra.mxu1 %v8347_v40  ;;  %v8384_v20 = vld [vmem:[#allocation7 + $0x28] ss:$16 sps:$4 sm:$0xff]   ;;  %v8425_v25 = vld [vmem:[#allocation7 + $0x104] ss:$16 sps:$4 sm:$0xff]  }
  0xd1   :  { %624 = vmatprep.subr.bf16.mxu1 %v8348_v41  ;;  %v8390_v24 = vld [vmem:[#allocation7 + $0x48] ss:$16 sps:$4 sm:$0xff]   ;;  %v8431_v29 = vld [vmem:[#allocation7 + $0x124] ss:$16 sps:$4 sm:$0xff]  }
  0xd2   :  { %584 = vmatpush1.bf16.msra.mxu0 %v8300_v22  ;;  %v8392_v22 = vld [vmem:[#allocation7 + $0x4c] ss:$16 sps:$4 sm:$0xff]   ;;  %v8396_v28 = vld [vmem:[#allocation7 + $0x68] ss:$16 sps:$4 sm:$0xff]   ;;  %v8437_v33 = vld [vmem:[#allocation7 + $0x144] ss:$16 sps:$4 sm:$0xff]  }
  0xd3   :  { %585 = vmatprep.subr.bf16.mxu0 %v8301_v23  ;;  %v8417_v23 = vld [vmem:[#allocation7 + $0xe0] ss:$16 sps:$4 sm:$0xff]   ;;  %v8402_v32 = vld [vmem:[#allocation7 + $0x88] ss:$16 sps:$4 sm:$0xff]   ;;  %v8443_v37 = vld [vmem:[#allocation7 + $0x164] ss:$16 sps:$4 sm:$0xff]  }
  0xd4   :  { %625 = vmatpush1.bf16.msra.mxu1 %v8350_v44  ;;  %v8408_v36 = vld [vmem:[#allocation7 + $0xa8] ss:$16 sps:$4 sm:$0xff]   ;;  %v8449_v41 = vld [vmem:[#allocation7 + $0x184] ss:$16 sps:$4 sm:$0xff]  }
  0xd5   :  { %626 = vmatprep.subr.bf16.mxu1 %v8351_v45  ;;  %v8414_v40 = vld [vmem:[#allocation7 + $0xc8] ss:$16 sps:$4 sm:$0xff]   ;;  %v8455_v45 = vld [vmem:[#allocation7 + $0x1a4] ss:$16 sps:$4 sm:$0xff]  }
  0xd6   :  { %586 = vmatpush1.bf16.msra.mxu0 %v8303_v26  ;;  %v8398_v26 = vld [vmem:[#allocation7 + $0x6c] ss:$16 sps:$4 sm:$0xff]   ;;  %v8420_v44 = vld [vmem:[#allocation7 + $0xe8] ss:$16 sps:$4 sm:$0xff]  }
  0xd7   :  { %587 = vmatprep.subr.bf16.mxu0 %v8304_v27  ;;  %v8423_v27 = vld [vmem:[#allocation7 + $0x100] ss:$16 sps:$4 sm:$0xff]  }
  0xd8   :  { %627 = vmatpush1.bf16.msra.mxu1 %v8353_v48  ;;  %v8426_v48 = vld [vmem:[#allocation7 + $0x108] ss:$16 sps:$4 sm:$0xff]  }
  0xd9   :  { %628 = vmatprep.subr.bf16.mxu1 %v8354_v49  ;;  %v8461_v49 = vld [vmem:[#allocation7 + $0x1c4] ss:$16 sps:$4 sm:$0xff]  }
  0xda   :  { %588 = vmatpush1.bf16.msra.mxu0 %v8306_v30  ;;  %v8404_v30 = vld [vmem:[#allocation7 + $0x8c] ss:$16 sps:$4 sm:$0xff]  }
  0xdb   :  { %589 = vmatprep.subr.bf16.mxu0 %v8307_v31  ;;  %v8429_v31 = vld [vmem:[#allocation7 + $0x120] ss:$16 sps:$4 sm:$0xff]  }
  0xdc   :  { %629 = vmatpush1.bf16.msra.mxu1 %v8356_v52  ;;  %v8432_v52 = vld [vmem:[#allocation7 + $0x128] ss:$16 sps:$4 sm:$0xff]  }
  0xdd   :  { %630 = vmatprep.subr.bf16.mxu1 %v8357_v53  ;;  %v8440_v53 = vld [vmem:[#allocation7 + $0x14c] ss:$16 sps:$4 sm:$0xff]  }
  0xde   :  { %590 = vmatpush1.bf16.msra.mxu0 %v8309_v34  ;;  %v8410_v34 = vld [vmem:[#allocation7 + $0xac] ss:$16 sps:$4 sm:$0xff]  }
  0xdf   :  { %591 = vmatprep.subr.bf16.mxu0 %v8310_v35  ;;  %v8435_v35 = vld [vmem:[#allocation7 + $0x140] ss:$16 sps:$4 sm:$0xff]  }
  0xe0   :  { %631 = vmatpush1.bf16.msra.mxu1 %v8359_v55  ;;  %v8446_v55 = vld [vmem:[#allocation7 + $0x16c] ss:$16 sps:$4 sm:$0xff]  }
  0xe1   :  { %632 = vmatprep.subr.bf16.mxu1 %v8360_v57  ;;  %v8452_v57 = vld [vmem:[#allocation7 + $0x18c] ss:$16 sps:$4 sm:$0xff]  }
  0xe2   :  { %592 = vmatpush1.bf16.msra.mxu0 %v8312_v38  ;;  %v8416_v38 = vld [vmem:[#allocation7 + $0xcc] ss:$16 sps:$4 sm:$0xff]  }
  0xe3   :  { %593 = vmatprep.subr.bf16.mxu0 %v8313_v39  ;;  %v8441_v39 = vld [vmem:[#allocation7 + $0x160] ss:$16 sps:$4 sm:$0xff]  }
  0xe4   :  { %633 = vmatpush1.bf16.msra.mxu1 %v8362_v59  ;;  %v8458_v59 = vld [vmem:[#allocation7 + $0x1ac] ss:$16 sps:$4 sm:$0xff]  }
  0xe5   :  { %634 = vmatprep.subr.bf16.mxu1 %v8363_v62  ;;  %v8462_v62 = vld [vmem:[#allocation7 + $0x1c8] ss:$16 sps:$4 sm:$0xff]  }
  0xe6   :  { %594 = vmatpush1.bf16.msra.mxu0 %v8315_v42  ;;  %v8422_v42 = vld [vmem:[#allocation7 + $0xec] ss:$16 sps:$4 sm:$0xff]  }
  0xe7   :  { %595 = vmatprep.subr.bf16.mxu0 %v8316_v43  ;;  %v8447_v43 = vld [vmem:[#allocation7 + $0x180] ss:$16 sps:$4 sm:$0xff]  }
  0xe8   :  { %635 = vmatpush1.bf16.msra.mxu1 %v8365_v63  ;;  %v8467_v63 = vld [vmem:[#allocation7 + $0x1e4] ss:$16 sps:$4 sm:$0xff]  }
  0xe9   :  { %636 = vmatprep.subr.bf16.mxu1 %v8366_v2  ;;  %v8468_v2 = vld [vmem:[#allocation7 + $0x1e8] ss:$16 sps:$4 sm:$0xff]  }
  0xea   :  { %596 = vmatpush1.bf16.msra.mxu0 %v8318_v46  ;;  %v8428_v46 = vld [vmem:[#allocation7 + $0x10c] ss:$16 sps:$4 sm:$0xff]  }
  0xeb   :  { %597 = vmatprep.subr.bf16.mxu0 %v8319_v47  ;;  %v8453_v47 = vld [vmem:[#allocation7 + $0x1a0] ss:$16 sps:$4 sm:$0xff]  }
  0xec   :  { %637 = vmatpush1.bf16.msra.mxu1 %v8368_v3  ;;  %v8473_v3 = vld [vmem:[#allocation7 + $0x204] ss:$16 sps:$4 sm:$0xff]  }
  0xed   :  { %638 = vmatprep.subr.bf16.mxu1 %v8369_v6 }
  0xee   :  { %598 = vmatpush1.bf16.msra.mxu0 %v8321_v50  ;;  %v8434_v50 = vld [vmem:[#allocation7 + $0x12c] ss:$16 sps:$4 sm:$0xff]  }
  0xef   :  { %599 = vmatprep.subr.bf16.mxu0 %v8322_v51  ;;  %v8459_v51 = vld [vmem:[#allocation7 + $0x1c0] ss:$16 sps:$4 sm:$0xff]  }
  0xf0   :  { %639 = vmatpush1.bf16.msra.mxu1 %v8371_v7 }
  0xf1   :  { %640 = vmatprep.subr.bf16.mxu1 %v8372_v10  ;;  %v8471_v10 = vld [vmem:[#allocation7 + $0x200] ss:$16 sps:$4 sm:$0xff]  }
  0xf2   :  { %600 = vmatpush1.bf16.msra.mxu0 %v8326_v54  ;;  %v8438_v54 = vld [vmem:[#allocation7 + $0x148] ss:$16 sps:$4 sm:$0xff]  }
  0xf3   :  { %1427 = vmatprep.subr.bf16.mxu0 %v8377_v56  ;;  %v8444_v56 = vld [vmem:[#allocation7 + $0x168] ss:$16 sps:$4 sm:$0xff]  }
  0xf4   :  { %641 = vmatpush1.bf16.msra.mxu1 %v8374_v11  ;;  %v8474_v11 = vld [vmem:[#allocation7 + $0x208] ss:$16 sps:$4 sm:$0xff]  }
  0xf5   :  { %602 = vmatmul.mubr.bf16.vlgmr.msra.gmra.mrb[0].mxu0 %v7188_v58  ;;  %1509 = vmatprep.subr.bf16.mxu1 %v8380_v14  ;;  %v8482_v14 = vld [vmem:[#allocation7 + $0x22c] ss:$16 sps:$4 sm:$0xff]  }
  0xf6   :  { %1428 = vmatpush1.bf16.msra.mxu0 %v8375_v60  ;;  %v8456_v60 = vld [vmem:[#allocation7 + $0x1a8] ss:$16 sps:$4 sm:$0xff]  }
  0xf7   :  { %1429 = vmatprep.subr.bf16.mxu0 %v8383_v61  ;;  %643 = vmatmul.mubr.bf16.vlgmr.msra.gmra.mrb[0].mxu1 %v7188_v58  ;;  %v8450_v58 = vld [vmem:[#allocation7 + $0x188] ss:$16 sps:$4 sm:$0xff]   ;;  %v8464_v61 = vld [vmem:[#allocation7 + $0x1cc] ss:$16 sps:$4 sm:$0xff]  }
  0xf8   :  { %1510 = vmatpush1.bf16.msra.mxu1 %v8378_v15 }
  0xf9   :  { %1511 = vmatprep.subr.bf16.mxu1 %v8386_v18  ;;  %v8480_v18 = vld [vmem:[#allocation7 + $0x228] ss:$16 sps:$4 sm:$0xff]  }
  0xfa   :  { %1430 = vmatpush1.bf16.msra.mxu0 %v8381_v0  ;;  %v8470_v0 = vld [vmem:[#allocation7 + $0x1ec] ss:$16 sps:$4 sm:$0xff]  }
  0xfb   :  { %1431 = vmatprep.subr.bf16.mxu0 %v8389_v1  ;;  %v8465_v1 = vld [vmem:[#allocation7 + $0x1e0] ss:$16 sps:$4 sm:$0xff]  }
  0xfc   :  { %1512 = vmatpush1.bf16.msra.mxu1 %v8384_v20  ;;  %v8488_v20 = vld [vmem:[#allocation7 + $0x24c] ss:$16 sps:$4 sm:$0xff]  }
  0xfd   :  { %1513 = vmatprep.subr.bf16.mxu1 %v8392_v22  ;;  %v8486_v22 = vld [vmem:[#allocation7 + $0x248] ss:$16 sps:$4 sm:$0xff]  }
  0xfe   :  { %1432 = vmatpush1.bf16.msra.mxu0 %v8387_v4  ;;  %v8476_v4 = vld [vmem:[#allocation7 + $0x20c] ss:$16 sps:$4 sm:$0xff]  }
  0xff   :  { %1433 = vmatprep.subr.bf16.mxu0 %v8395_v5 }
 0x100   :  { %1514 = vmatpush1.bf16.msra.mxu1 %v8390_v24  ;;  %v8494_v24 = vld [vmem:[#allocation7 + $0x26c] ss:$16 sps:$4 sm:$0xff]  }
 0x101   :  { %1515 = vmatprep.subr.bf16.mxu1 %v8398_v26  ;;  %v8492_v26 = vld [vmem:[#allocation7 + $0x268] ss:$16 sps:$4 sm:$0xff]  }
 0x102   :  { %1434 = vmatpush1.bf16.msra.mxu0 %v8393_v8 }
 0x103   :  { %1435 = vmatprep.subr.bf16.mxu0 %v8401_v9 }
 0x104   :  { %1516 = vmatpush1.bf16.msra.mxu1 %v8396_v28  ;;  %v8500_v28 = vld [vmem:[#allocation7 + $0x28c] ss:$16 sps:$4 sm:$0xff]  }
 0x105   :  { %1517 = vmatprep.subr.bf16.mxu1 %v8404_v30  ;;  %v8498_v30 = vld [vmem:[#allocation7 + $0x288] ss:$16 sps:$4 sm:$0xff]  }
 0x106   :  { %1436 = vmatpush1.bf16.msra.mxu0 %v8399_v12 }
 0x107   :  { %1437 = vmatprep.subr.bf16.mxu0 %v8407_v13  ;;  %v8479_v13 = vld [vmem:[#allocation7 + $0x224] ss:$16 sps:$4 sm:$0xff]  }
 0x108   :  { %1518 = vmatpush1.bf16.msra.mxu1 %v8402_v32  ;;  %v8506_v32 = vld [vmem:[#allocation7 + $0x2ac] ss:$16 sps:$4 sm:$0xff]  }
 0x109   :  { %1519 = vmatprep.subr.bf16.mxu1 %v8410_v34  ;;  %v8501_v34 = vld [vmem:[#allocation7 + $0x2a0] ss:$16 sps:$4 sm:$0xff]  }
 0x10a   :  { %1438 = vmatpush1.bf16.msra.mxu0 %v8405_v16 }
 0x10b   :  { %1439 = vmatprep.subr.bf16.mxu0 %v8413_v17  ;;  %v8477_v17 = vld [vmem:[#allocation7 + $0x220] ss:$16 sps:$4 sm:$0xff]  }
 0x10c   :  { %1520 = vmatpush1.bf16.msra.mxu1 %v8408_v36 }
 0x10d   :  { %1521 = vmatprep.subr.bf16.mxu1 %v8416_v38  ;;  %v8512_v38 = vld [vmem:[#allocation7 + $0x2cc] ss:$16 sps:$4 sm:$0xff]  }
 0x10e   :  { %1440 = vmatpush1.bf16.msra.mxu0 %v8411_v19  ;;  %v8485_v19 = vld [vmem:[#allocation7 + $0x244] ss:$16 sps:$4 sm:$0xff]  }
 0x10f   :  { %1441 = vmatprep.subr.bf16.mxu0 %v8419_v21  ;;  %v8483_v21 = vld [vmem:[#allocation7 + $0x240] ss:$16 sps:$4 sm:$0xff]  }
 0x110   :  { %1522 = vmatpush1.bf16.msra.mxu1 %v8414_v40 }
 0x111   :  { %1523 = vmatprep.subr.bf16.mxu1 %v8422_v42 }
 0x112   :  { %1442 = vmatpush1.bf16.msra.mxu0 %v8417_v23  ;;  %v8491_v23 = vld [vmem:[#allocation7 + $0x264] ss:$16 sps:$4 sm:$0xff]  }
 0x113   :  { %1443 = vmatprep.subr.bf16.mxu0 %v8425_v25  ;;  %v8489_v25 = vld [vmem:[#allocation7 + $0x260] ss:$16 sps:$4 sm:$0xff]  }
 0x114   :  { %1524 = vmatpush1.bf16.msra.mxu1 %v8420_v44  ;;  %v8510_v44 = vld [vmem:[#allocation7 + $0x2c8] ss:$16 sps:$4 sm:$0xff]  }
 0x115   :  { %1525 = vmatprep.subr.bf16.mxu1 %v8428_v46  ;;  %v8518_v46 = vld [vmem:[#allocation7 + $0x2ec] ss:$16 sps:$4 sm:$0xff]  }
 0x116   :  { %1444 = vmatpush1.bf16.msra.mxu0 %v8423_v27  ;;  %v8497_v27 = vld [vmem:[#allocation7 + $0x284] ss:$16 sps:$4 sm:$0xff]  }
 0x117   :  { %1445 = vmatprep.subr.bf16.mxu0 %v8431_v29  ;;  %v8495_v29 = vld [vmem:[#allocation7 + $0x280] ss:$16 sps:$4 sm:$0xff]  }
 0x118   :  { %1526 = vmatpush1.bf16.msra.mxu1 %v8426_v48  ;;  %v8516_v48 = vld [vmem:[#allocation7 + $0x2e8] ss:$16 sps:$4 sm:$0xff]  }
 0x119   :  { %1527 = vmatprep.subr.bf16.mxu1 %v8434_v50  ;;  %v8524_v50 = vld [vmem:[#allocation7 + $0x30c] ss:$16 sps:$4 sm:$0xff]  }
 0x11a   :  { %1446 = vmatpush1.bf16.msra.mxu0 %v8429_v31  ;;  %v8503_v31 = vld [vmem:[#allocation7 + $0x2a4] ss:$16 sps:$4 sm:$0xff]  }
 0x11b   :  { %1447 = vmatprep.subr.bf16.mxu0 %v8437_v33 }
 0x11c   :  { %1528 = vmatpush1.bf16.msra.mxu1 %v8432_v52  ;;  %v8522_v52 = vld [vmem:[#allocation7 + $0x308] ss:$16 sps:$4 sm:$0xff]  }
 0x11d   :  { %1529 = vmatprep.subr.bf16.mxu1 %v8440_v53  ;;  %v8527_v53 = vld [vmem:[#allocation7 + $0x324] ss:$16 sps:$4 sm:$0xff]  }
 0x11e   :  { %1448 = vmatpush1.bf16.msra.mxu0 %v8435_v35  ;;  %v8504_v35 = vld [vmem:[#allocation7 + $0x2a8] ss:$16 sps:$4 sm:$0xff]  }
 0x11f   :  { %1449 = vmatprep.subr.bf16.mxu0 %v8443_v37  ;;  %v8509_v37 = vld [vmem:[#allocation7 + $0x2c4] ss:$16 sps:$4 sm:$0xff]  }
 0x120   :  { %1530 = vmatpush1.bf16.msra.mxu1 %v8438_v54  ;;  %v8530_v54 = vld [vmem:[#allocation7 + $0x32c] ss:$16 sps:$4 sm:$0xff]  }
 0x121   :  { %1531 = vmatprep.subr.bf16.mxu1 %v8446_v55  ;;  %v8525_v55 = vld [vmem:[#allocation7 + $0x320] ss:$16 sps:$4 sm:$0xff]  }
 0x122   :  { %1450 = vmatpush1.bf16.msra.mxu0 %v8441_v39 }
 0x123   :  { %1451 = vmatprep.subr.bf16.mxu0 %v8449_v41 }
 0x124   :  { %1532 = vmatpush1.bf16.msra.mxu1 %v8444_v56  ;;  %v8528_v56 = vld [vmem:[#allocation7 + $0x328] ss:$16 sps:$4 sm:$0xff]  }
 0x125   :  { %1533 = vmatprep.subr.bf16.mxu1 %v8452_v57  ;;  %v8533_v57 = vld [vmem:[#allocation7 + $0x344] ss:$16 sps:$4 sm:$0xff]  }
 0x126   :  { %1452 = vmatpush1.bf16.msra.mxu0 %v8447_v43  ;;  %v8507_v43 = vld [vmem:[#allocation7 + $0x2c0] ss:$16 sps:$4 sm:$0xff]  }
 0x127   :  { %1453 = vmatprep.subr.bf16.mxu0 %v8455_v45  ;;  %v8515_v45 = vld [vmem:[#allocation7 + $0x2e4] ss:$16 sps:$4 sm:$0xff]  }
 0x128   :  { %1534 = vmatpush1.bf16.msra.mxu1 %v8450_v58  ;;  %v8536_v58 = vld [vmem:[#allocation7 + $0x34c] ss:$16 sps:$4 sm:$0xff]  }
 0x129   :  { %1535 = vmatprep.subr.bf16.mxu1 %v8458_v59  ;;  %v8531_v59 = vld [vmem:[#allocation7 + $0x340] ss:$16 sps:$4 sm:$0xff]  }
 0x12a   :  { %1454 = vmatpush1.bf16.msra.mxu0 %v8453_v47  ;;  %v8513_v47 = vld [vmem:[#allocation7 + $0x2e0] ss:$16 sps:$4 sm:$0xff]  }
 0x12b   :  { %1455 = vmatprep.subr.bf16.mxu0 %v8461_v49  ;;  %v8521_v49 = vld [vmem:[#allocation7 + $0x304] ss:$16 sps:$4 sm:$0xff]  }
 0x12c   :  { %1536 = vmatpush1.bf16.msra.mxu1 %v8456_v60  ;;  %v8534_v60 = vld [vmem:[#allocation7 + $0x348] ss:$16 sps:$4 sm:$0xff]  }
 0x12d   :  { %1537 = vmatprep.subr.bf16.mxu1 %v8464_v61  ;;  %v8539_v61 = vld [vmem:[#allocation7 + $0x364] ss:$16 sps:$4 sm:$0xff]  }
 0x12e   :  { %1456 = vmatpush1.bf16.msra.mxu0 %v8459_v51  ;;  %v8519_v51 = vld [vmem:[#allocation7 + $0x300] ss:$16 sps:$4 sm:$0xff]  }
 0x12f   :  { %1457 = vmatprep.subr.bf16.mxu0 %v8467_v63  ;;  %v8537_v63 = vld [vmem:[#allocation7 + $0x360] ss:$16 sps:$4 sm:$0xff]  }
 0x130   :  { %1538 = vmatpush1.bf16.msra.mxu1 %v8462_v62  ;;  %v8542_v62 = vld [vmem:[#allocation7 + $0x36c] ss:$16 sps:$4 sm:$0xff]  }
 0x131   :  { %1539 = vmatprep.subr.bf16.mxu1 %v8470_v0  ;;  %v8540_v0 = vld [vmem:[#allocation7 + $0x368] ss:$16 sps:$4 sm:$0xff]  }
 0x132   :  { %1458 = vmatpush1.bf16.msra.mxu0 %v8465_v1  ;;  %v8545_v1 = vld [vmem:[#allocation7 + $0x384] ss:$16 sps:$4 sm:$0xff]  }
 0x133   :  { %1468 = vmatprep.subr.bf16.mxu0 %v8473_v3  ;;  %v8543_v3 = vld [vmem:[#allocation7 + $0x380] ss:$16 sps:$4 sm:$0xff]  }
 0x134   :  { %1540 = vmatpush1.bf16.msra.mxu1 %v8468_v2  ;;  %v8548_v2 = vld [vmem:[#allocation7 + $0x38c] ss:$16 sps:$4 sm:$0xff]  }
 0x135   :  { %1550 = vmatprep.subr.bf16.mxu1 %v8476_v4  ;;  %v8546_v4 = vld [vmem:[#allocation7 + $0x388] ss:$16 sps:$4 sm:$0xff]  }
 0x1c8   :  { %v603_v5 = vpop.f32.mrb[0].mxu0 }
 0x1c9   :  { %v651_v6 = vmax.f32 %v603_v5, 0.0  ;;  %v605_v7 = vpop.f32.mrb[1].mxu0  ;;  %v8551_v5 = vld [vmem:[#allocation7 + $0x3a4] ss:$16 sps:$4 sm:$0xff]  }
 0x1ca   :  { %v652_v8 = vmax.f32 %v605_v7, 0.0  ;;  %v607_v9 = vpop.f32.mrb[2].mxu0  ;;  %v10080_v33 = vpop.f32.mrb[0].mxu1  ;;  %v8549_v7 = vld [vmem:[#allocation7 + $0x3a0] ss:$16 sps:$4 sm:$0xff]  }
 0x1cb   :  { %v608_v12 = vpop.f32.mrb[3].mxu0  ;;  %v10074_v16 = vpack.c.bf16 %v651_v6, %v651_v6  ;;  %v646_v36 = vpop.f32.mrb[1].mxu1  ;;  %v8554_v6 = vld [vmem:[#allocation7 + $0x3ac] ss:$16 sps:$4 sm:$0xff]   ;;  %v8557_v9 = vld [vmem:[#allocation7 + $0x3c4] ss:$16 sps:$4 sm:$0xff]  }
 0x1cc   :  { %v10072_v15 = vpack.c.bf16 %v652_v8, %v652_v8  ;;  %v654_v39 = vmax.f32 %v646_v36, 0.0  ;;  %v648_v40 = vpop.f32.mrb[2].mxu1  ;;  %v8552_v8 = vld [vmem:[#allocation7 + $0x3a8] ss:$16 sps:$4 sm:$0xff]   ;;  %v8610_v36 = vld [vmem:[#allocation8 + $0x50] ss:$12 sps:$4 sm:$0xff]  }
 0x1cd   :  { %v649_v41 = vpop.f32.mrb[3].mxu1  ;;  %v8558_v12 = vld [vmem:[#allocation7 + $0x3c8] ss:$16 sps:$4 sm:$0xff]  }
 0x1ce   :  { %1459 = vmatprep.mubr.bf16.mxu0 %v10072_v15  ;;  %1541 = vmatprep.mubr.bf16.mxu1 %v10072_v15  ;;  %v10082_v42 = vpack.c.bf16 %v654_v39, %v654_v39  ;;  %v8579_v39 = vld [vmem:[#allocation8 + $0x60] ss:$12 sps:$4 sm:$0xff]   ;;  %v8615_v40 = vld [vmem:[#allocation8 + $0x68] ss:$12 sps:$4 sm:$0xff]  }
 0x1cf   :  { %1460 = vmatmul.mubr.bf16.vlgmr.msra.gmra.mrb[4].mxu0 %v10074_v16  ;;  %1542 = vmatmul.mubr.bf16.vlgmr.msra.gmra.mrb[4].mxu1 %v10074_v16  ;;  %v8584_v41 = vld [vmem:[#allocation8 + $0x7c] ss:$12 sps:$4 sm:$0xff]  }
 0x1d0   :  { %1469 = vmatpush1.bf16.msra.mxu0 %v8471_v10  ;;  %1551 = vmatpush1.bf16.msra.mxu1 %v8474_v11  ;;  %v8560_v10 = vld [vmem:[#allocation7 + $0x3cc] ss:$16 sps:$4 sm:$0xff]   ;;  %v8555_v11 = vld [vmem:[#allocation7 + $0x3c0] ss:$16 sps:$4 sm:$0xff]  }
 0x1d1   :  { %1470 = vmatprep.subr.bf16.mxu0 %v8479_v13  ;;  %1552 = vmatprep.subr.bf16.mxu1 %v8482_v14  ;;  %v8563_v13 = vld [vmem:[#allocation7 + $0x3e4] ss:$16 sps:$4 sm:$0xff]   ;;  %v8566_v14 = vld [vmem:[#allocation7 + $0x3ec] ss:$16 sps:$4 sm:$0xff]  }
 0x1d2   :  { %1500 = vmatprep.mubr.bf16.mxu0 %v10082_v42  ;;  %1582 = vmatprep.mubr.bf16.mxu1 %v10082_v42 }
 0x1d4   :  { %1471 = vmatpush1.bf16.msra.mxu0 %v8477_v17  ;;  %1553 = vmatpush1.bf16.msra.mxu1 %v8480_v18  ;;  %v8561_v17 = vld [vmem:[#allocation7 + $0x3e0] ss:$16 sps:$4 sm:$0xff]   ;;  %v8564_v18 = vld [vmem:[#allocation7 + $0x3e8] ss:$16 sps:$4 sm:$0xff]  }
 0x1d5   :  { %1472 = vmatprep.subr.bf16.mxu0 %v8485_v19  ;;  %1554 = vmatprep.subr.bf16.mxu1 %v8488_v20  ;;  %v8569_v19 = vld [vmem:[#allocation8 + $0x4] ss:$12 sps:$4 sm:$0xff]   ;;  %v8594_v20 = vld [vmem:[#allocation8 + $0xc8] ss:$12 sps:$4 sm:$0xff]  }
 0x1d8   :  { %1473 = vmatpush1.bf16.msra.mxu0 %v8483_v21  ;;  %1555 = vmatpush1.bf16.msra.mxu1 %v8486_v22  ;;  %v653_v21 = vmax.f32 %v10080_v33, 0.0  ;;  %v8567_v22 = vld [vmem:[#allocation8] ss:$12 sps:$4 sm:$0xff]  }
 0x1d9   :  { %1474 = vmatprep.subr.bf16.mxu0 %v8491_v23  ;;  %1556 = vmatprep.subr.bf16.mxu1 %v8494_v24  ;;  %v8595_v23 = vld [vmem:[#allocation8 + $0x8] ss:$12 sps:$4 sm:$0xff]   ;;  %v8578_v33 = vld [vmem:[#allocation8 + $0x4c] ss:$12 sps:$4 sm:$0xff]  }
 0x1da   :  { %v8572_v24 = vld [vmem:[#allocation8 + $0x1c] ss:$12 sps:$4 sm:$0xff]  }
 0x1dc   :  { %1475 = vmatpush1.bf16.msra.mxu0 %v8489_v25  ;;  %1557 = vmatpush1.bf16.msra.mxu1 %v8492_v26  ;;  %v8599_v25 = vld [vmem:[#allocation8 + $0xe0] ss:$12 sps:$4 sm:$0xff]   ;;  %v10087_v26 = vpack.c.bf16 %v653_v21, %v653_v21 }
 0x1dd   :  { %1476 = vmatprep.subr.bf16.mxu0 %v8497_v27  ;;  %1558 = vmatprep.subr.bf16.mxu1 %v8500_v28  ;;  %v8570_v27 = vld [vmem:[#allocation8 + $0x18] ss:$12 sps:$4 sm:$0xff]   ;;  %v8600_v28 = vld [vmem:[#allocation8 + $0x20] ss:$12 sps:$4 sm:$0xff]  }
 0x1e0   :  { %1477 = vmatpush1.bf16.msra.mxu0 %v8495_v29  ;;  %1559 = vmatpush1.bf16.msra.mxu1 %v8498_v30  ;;  %v8575_v29 = vld [vmem:[#allocation8 + $0x34] ss:$12 sps:$4 sm:$0xff]   ;;  %v8604_v30 = vld [vmem:[#allocation8 + $0xf8] ss:$12 sps:$4 sm:$0xff]  }
 0x1e1   :  { %1478 = vmatprep.subr.bf16.mxu0 %v8503_v31  ;;  %1560 = vmatprep.subr.bf16.mxu1 %v8506_v32  ;;  %v8573_v31 = vld [vmem:[#allocation8 + $0x30] ss:$12 sps:$4 sm:$0xff]   ;;  %v8605_v32 = vld [vmem:[#allocation8 + $0x38] ss:$12 sps:$4 sm:$0xff]  }
 0x1e4   :  { %1479 = vmatpush1.bf16.msra.mxu0 %v8501_v34  ;;  %1561 = vmatpush1.bf16.msra.mxu1 %v8504_v35  ;;  %v8609_v34 = vld [vmem:[#allocation8 + $0x110] ss:$12 sps:$4 sm:$0xff]   ;;  %v8576_v35 = vld [vmem:[#allocation8 + $0x48] ss:$12 sps:$4 sm:$0xff]  }
 0x1e5   :  { %1480 = vmatprep.subr.bf16.mxu0 %v8509_v37  ;;  %1562 = vmatprep.subr.bf16.mxu1 %v8512_v38  ;;  %v8581_v37 = vld [vmem:[#allocation8 + $0x64] ss:$12 sps:$4 sm:$0xff]   ;;  %v8614_v38 = vld [vmem:[#allocation8 + $0x128] ss:$12 sps:$4 sm:$0xff]  }
 0x1e8   :  { %1481 = vmatpush1.bf16.msra.mxu0 %v8507_v43  ;;  %1563 = vmatpush1.bf16.msra.mxu1 %v8510_v44  ;;  %v8619_v43 = vld [vmem:[#allocation8 + $0x140] ss:$12 sps:$4 sm:$0xff]   ;;  %v8582_v44 = vld [vmem:[#allocation8 + $0x78] ss:$12 sps:$4 sm:$0xff]  }
 0x1e9   :  { %1482 = vmatprep.subr.bf16.mxu0 %v8515_v45  ;;  %1564 = vmatprep.subr.bf16.mxu1 %v8518_v46  ;;  %v8620_v45 = vld [vmem:[#allocation8 + $0x80] ss:$12 sps:$4 sm:$0xff]  }
 0x1ea   :  { %v8587_v46 = vld [vmem:[#allocation8 + $0x94] ss:$12 sps:$4 sm:$0xff]  }
 0x1ec   :  { %1483 = vmatpush1.bf16.msra.mxu0 %v8513_v47  ;;  %1565 = vmatpush1.bf16.msra.mxu1 %v8516_v48  ;;  %v8624_v47 = vld [vmem:[#allocation8 + $0x158] ss:$12 sps:$4 sm:$0xff]   ;;  %v8585_v48 = vld [vmem:[#allocation8 + $0x90] ss:$12 sps:$4 sm:$0xff]  }
 0x1ed   :  { %1484 = vmatprep.subr.bf16.mxu0 %v8521_v49  ;;  %1566 = vmatprep.subr.bf16.mxu1 %v8524_v50  ;;  %v8625_v49 = vld [vmem:[#allocation8 + $0x98] ss:$12 sps:$4 sm:$0xff]  }
 0x1ee   :  { %v8590_v50 = vld [vmem:[#allocation8 + $0xac] ss:$12 sps:$4 sm:$0xff]  }
 0x1f0   :  { %1485 = vmatpush1.bf16.msra.mxu0 %v8519_v51  ;;  %1567 = vmatpush1.bf16.msra.mxu1 %v8522_v52  ;;  %v8588_v51 = vld [vmem:[#allocation8 + $0xa8] ss:$12 sps:$4 sm:$0xff]   ;;  %v8593_v52 = vld [vmem:[#allocation8 + $0xc4] ss:$12 sps:$4 sm:$0xff]  }
 0x1f1   :  { %1486 = vmatprep.subr.bf16.mxu0 %v8527_v53  ;;  %1568 = vmatprep.subr.bf16.mxu1 %v8530_v54  ;;  %v8591_v53 = vld [vmem:[#allocation8 + $0xc0] ss:$12 sps:$4 sm:$0xff]   ;;  %v8598_v54 = vld [vmem:[#allocation8 + $0xdc] ss:$12 sps:$4 sm:$0xff]  }
 0x1f4   :  { %1487 = vmatpush1.bf16.msra.mxu0 %v8525_v55  ;;  %1569 = vmatpush1.bf16.msra.mxu1 %v8528_v56  ;;  %v8596_v55 = vld [vmem:[#allocation8 + $0xd8] ss:$12 sps:$4 sm:$0xff]   ;;  %v8603_v56 = vld [vmem:[#allocation8 + $0xf4] ss:$12 sps:$4 sm:$0xff]  }
 0x1f5   :  { %1488 = vmatprep.subr.bf16.mxu0 %v8533_v57  ;;  %1570 = vmatprep.subr.bf16.mxu1 %v8536_v58  ;;  %v8601_v57 = vld [vmem:[#allocation8 + $0xf0] ss:$12 sps:$4 sm:$0xff]   ;;  %v8608_v58 = vld [vmem:[#allocation8 + $0x10c] ss:$12 sps:$4 sm:$0xff]  }
 0x1f8   :  { %1489 = vmatpush1.bf16.msra.mxu0 %v8531_v59  ;;  %1571 = vmatpush1.bf16.msra.mxu1 %v8534_v60  ;;  %v8606_v59 = vld [vmem:[#allocation8 + $0x108] ss:$12 sps:$4 sm:$0xff]   ;;  %v8613_v60 = vld [vmem:[#allocation8 + $0x124] ss:$12 sps:$4 sm:$0xff]  }
 0x1f9   :  { %1490 = vmatprep.subr.bf16.mxu0 %v8539_v61  ;;  %1572 = vmatprep.subr.bf16.mxu1 %v8542_v62  ;;  %v8611_v61 = vld [vmem:[#allocation8 + $0x120] ss:$12 sps:$4 sm:$0xff]   ;;  %v8618_v62 = vld [vmem:[#allocation8 + $0x13c] ss:$12 sps:$4 sm:$0xff]  }
 0x1fc   :  { %1491 = vmatpush1.bf16.msra.mxu0 %v8537_v63  ;;  %1573 = vmatpush1.bf16.msra.mxu1 %v8540_v0  ;;  %v8616_v63 = vld [vmem:[#allocation8 + $0x138] ss:$12 sps:$4 sm:$0xff]   ;;  %v8623_v0 = vld [vmem:[#allocation8 + $0x154] ss:$12 sps:$4 sm:$0xff]  }
 0x1fd   :  { %1492 = vmatprep.subr.bf16.mxu0 %v8545_v1  ;;  %1574 = vmatprep.subr.bf16.mxu1 %v8548_v2  ;;  %v8621_v1 = vld [vmem:[#allocation8 + $0x150] ss:$12 sps:$4 sm:$0xff]   ;;  %v8628_v2 = vld [vmem:[#allocation8 + $0x16c] ss:$12 sps:$4 sm:$0xff]  }
 0x200   :  { %1493 = vmatpush1.bf16.msra.mxu0 %v8543_v3  ;;  %1575 = vmatpush1.bf16.msra.mxu1 %v8546_v4  ;;  %v8629_v3 = vld [vmem:[#allocation8 + $0x170] ss:$12 sps:$4 sm:$0xff]   ;;  %v8626_v4 = vld [vmem:[#allocation8 + $0x168] ss:$12 sps:$4 sm:$0xff]  }
 0x201   :  { %1494 = vmatprep.subr.bf16.mxu0 %v8551_v5  ;;  %1576 = vmatprep.subr.bf16.mxu1 %v8554_v6  ;;  %v8630_v5 = vld [vmem:[#allocation8 + $0xb0] ss:$12 sps:$4 sm:$0xff]  }
 0x202   :  { %v8633_v6 = vld [vmem:[#allocation8 + $0x184] ss:$12 sps:$4 sm:$0xff]  }
 0x204   :  { %1495 = vmatpush1.bf16.msra.mxu0 %v8549_v7  ;;  %1577 = vmatpush1.bf16.msra.mxu1 %v8552_v8  ;;  %v8634_v7 = vld [vmem:[#allocation8 + $0x248] ss:$12 sps:$4 sm:$0xff]   ;;  %v2407_v8 = vld [vmem:[%s10176_s1] sm:$0xff]  ;;  %s9825_s1 = smov [#allocation19]  }
 0x205   :  { %1496 = vmatprep.subr.bf16.mxu0 %v8557_v9  ;;  %1578 = vmatprep.subr.bf16.mxu1 %v8560_v10  ;;  %v9823_v9 = vmov 0   ;;  %s7174_s9 = sshll.u32 %s9825_s1, 4  ;;  %s7175_s9 = int_to_ptr.vmem [resolvable:$true] %s7174_s9 }
 0x206   :  { %8276 = vset.pattern.permute.xlu0 %v9823_v9  ;;  %s9771_s17 = scalar_lea.vmem %s7175_s9, 256  ;;  %p9776_p11 = scmp.lt.s32.totalorder %s7175_s9, %s7175_s9 }
 0x207   :  { %2411 = vperm.xlu0 %8276, %v2407_v8   ;;  %v8685_v8 = vld [vmem:[#allocation8 + $0x2a4] ss:$12 sps:$4 sm:$0xff]   ;;  %p9772_p10 = scmp.ne.s32.totalorder %s7175_s9, %s9771_s17  ;;  %p9777_p12 = scmp.lt.s32.totalorder %s9771_s17, %s9771_s17 }
 0x208   :  { %1497 = vmatpush1.bf16.msra.mxu0 %v8555_v11  ;;  %1579 = vmatpush1.bf16.msra.mxu1 %v8558_v12 }
 0x209   :  { %1498 = vmatprep.subr.bf16.mxu0 %v8563_v13  ;;  %1580 = vmatprep.subr.bf16.mxu1 %v8566_v14  ;;  %p9778_p13 = por %p9777_p12, %p9776_p11 }
 0x20b   :  { %p9779_p0 = pnand %p9778_p13, %p9772_p10 }
 0x20c   :  { %1499 = vmatpush1.bf16.msra.mxu0 %v8561_v17  ;;  %1581 = vmatpush1.bf16.msra.mxu1 %v8564_v18 }
 0x20d   :  { %2239 = vmatprep.subr.bf16.mxu0 %v8569_v19  ;;  %8073 = vmatprep.subr.bf16.mxu1 %v8594_v20 }
 0x20f   :  { %1501 = vmatmul.mubr.bf16.vlgmr.msra.gmra.mrb[4].mxu0 %v10087_v26  ;;  %1583 = vmatmul.mubr.bf16.vlgmr.msra.gmra.mrb[4].mxu1 %v10087_v26 }
 0x210   :  { %2240 = vmatpush1.bf16.msra.mxu0 %v8567_v22  ;;  %8074 = vmatpush3.bf16.msra.mxu1 %v8595_v23 }
 0x211   :  { %2241 = vmatprep.subr.bf16.mxu0 %v8572_v24  ;;  %8075 = vmatprep.subr.bf16.mxu1 %v8599_v25  ;;  %v8631_v24 = vld [vmem:[#allocation8 + $0x180] ss:$12 sps:$4 sm:$0xff]   ;;  %v8635_v25 = vld [vmem:[#allocation8 + $0x188] ss:$12 sps:$4 sm:$0xff]  }
 0x214   :  { %2242 = vmatpush1.bf16.msra.mxu0 %v8570_v27  ;;  %8076 = vmatpush3.bf16.msra.mxu1 %v8600_v28  ;;  %v8638_v28 = vld [vmem:[#allocation8 + $0x19c] ss:$12 sps:$4 sm:$0xff]  }
 0x215   :  { %2243 = vmatprep.subr.bf16.mxu0 %v8575_v29  ;;  %8077 = vmatprep.subr.bf16.mxu1 %v8604_v30  ;;  %v8639_v29 = vld [vmem:[#allocation8 + $0x260] ss:$12 sps:$4 sm:$0xff]  }
 0x218   :  { %2244 = vmatpush1.bf16.msra.mxu0 %v8573_v31  ;;  %8078 = vmatpush3.bf16.msra.mxu1 %v8605_v32  ;;  %v8636_v31 = vld [vmem:[#allocation8 + $0x198] ss:$12 sps:$4 sm:$0xff]   ;;  %v8640_v32 = vld [vmem:[#allocation8 + $0x1a0] ss:$12 sps:$4 sm:$0xff]  }
 0x219   :  { %2245 = vmatprep.subr.bf16.mxu0 %v8578_v33  ;;  %8079 = vmatprep.subr.bf16.mxu1 %v8609_v34  ;;  %v8643_v33 = vld [vmem:[#allocation8 + $0x1b4] ss:$12 sps:$4 sm:$0xff]   ;;  %v8644_v34 = vld [vmem:[#allocation8 + $0x278] ss:$12 sps:$4 sm:$0xff]  }
 0x21c   :  { %2246 = vmatpush1.bf16.msra.mxu0 %v8576_v35  ;;  %8080 = vmatpush3.bf16.msra.mxu1 %v8610_v36  ;;  %v8641_v35 = vld [vmem:[#allocation8 + $0x1b0] ss:$12 sps:$4 sm:$0xff]   ;;  %v8645_v36 = vld [vmem:[#allocation8 + $0x1b8] ss:$12 sps:$4 sm:$0xff]  }
 0x21d   :  { %2247 = vmatprep.subr.bf16.mxu0 %v8581_v37  ;;  %8081 = vmatprep.subr.bf16.mxu1 %v8614_v38  ;;  %v8648_v37 = vld [vmem:[#allocation8 + $0x1cc] ss:$12 sps:$4 sm:$0xff]   ;;  %v8649_v38 = vld [vmem:[#allocation8 + $0x290] ss:$12 sps:$4 sm:$0xff]  }
 0x220   :  { %2248 = vmatpush1.bf16.msra.mxu0 %v8579_v39  ;;  %8082 = vmatpush3.bf16.msra.mxu1 %v8615_v40  ;;  %v8646_v39 = vld [vmem:[#allocation8 + $0x1c8] ss:$12 sps:$4 sm:$0xff]   ;;  %v8650_v40 = vld [vmem:[#allocation8 + $0x1d0] ss:$12 sps:$4 sm:$0xff]  }
 0x221   :  { %2249 = vmatprep.subr.bf16.mxu0 %v8584_v41  ;;  %8083 = vmatprep.subr.bf16.mxu1 %v8619_v43  ;;  %v8653_v41 = vld [vmem:[#allocation8 + $0x1e4] ss:$12 sps:$4 sm:$0xff]   ;;  %v8654_v43 = vld [vmem:[#allocation8 + $0x2a8] ss:$12 sps:$4 sm:$0xff]  }
 0x224   :  { %2250 = vmatpush1.bf16.msra.mxu0 %v8582_v44  ;;  %8084 = vmatpush3.bf16.msra.mxu1 %v8620_v45  ;;  %v8651_v44 = vld [vmem:[#allocation8 + $0x1e0] ss:$12 sps:$4 sm:$0xff]   ;;  %v8655_v45 = vld [vmem:[#allocation8 + $0x1e8] ss:$12 sps:$4 sm:$0xff]  }
 0x225   :  { %2251 = vmatprep.subr.bf16.mxu0 %v8587_v46  ;;  %8085 = vmatprep.subr.bf16.mxu1 %v8624_v47  ;;  %v8658_v46 = vld [vmem:[#allocation8 + $0x1fc] ss:$12 sps:$4 sm:$0xff]   ;;  %v8659_v47 = vld [vmem:[#allocation8 + $0x2c0] ss:$12 sps:$4 sm:$0xff]  }
 0x228   :  { %2252 = vmatpush1.bf16.msra.mxu0 %v8585_v48  ;;  %8086 = vmatpush3.bf16.msra.mxu1 %v8625_v49  ;;  %v8656_v48 = vld [vmem:[#allocation8 + $0x1f8] ss:$12 sps:$4 sm:$0xff]   ;;  %v8660_v49 = vld [vmem:[#allocation8 + $0x200] ss:$12 sps:$4 sm:$0xff]  }
 0x229   :  { %2253 = vmatprep.subr.bf16.mxu0 %v8590_v50  ;;  %8087 = vmatprep.subr.bf16.mxu1 %v8629_v3  ;;  %v8663_v50 = vld [vmem:[#allocation8 + $0x214] ss:$12 sps:$4 sm:$0xff]  }
 0x22a   :  { %v8679_v3 = vld [vmem:[#allocation8 + $0x274] ss:$12 sps:$4 sm:$0xff]  }
 0x22c   :  { %2254 = vmatpush1.bf16.msra.mxu0 %v8588_v51  ;;  %8088 = vmatpush3.bf16.msra.mxu1 %v8630_v5  ;;  %v8664_v51 = vld [vmem:[#allocation8 + $0x2d8] ss:$12 sps:$4 sm:$0xff]   ;;  %v8677_v5 = vld [vmem:[#allocation8 + $0x270] ss:$12 sps:$4 sm:$0xff]  }
 0x22d   :  { %2255 = vmatprep.subr.bf16.mxu0 %v8593_v52  ;;  %8095 = vmatprep.subr.bf16.mxu1 %v8634_v7  ;;  %v8661_v52 = vld [vmem:[#allocation8 + $0x210] ss:$12 sps:$4 sm:$0xff]   ;;  %v8680_v7 = vld [vmem:[#allocation8 + $0x288] ss:$12 sps:$4 sm:$0xff]  }
 0x230   :  { %2256 = vmatpush1.bf16.msra.mxu0 %v8591_v53  ;;  %v8665_v53 = vld [vmem:[#allocation8 + $0x218] ss:$12 sps:$4 sm:$0xff]  }
 0x231   :  { %2257 = vmatprep.subr.bf16.mxu0 %v8598_v54  ;;  %v8668_v54 = vld [vmem:[#allocation8 + $0x22c] ss:$12 sps:$4 sm:$0xff]  }
 0x234   :  { %2258 = vmatpush1.bf16.msra.mxu0 %v8596_v55  ;;  %v8669_v55 = vld [vmem:[#allocation8 + $0x2f0] ss:$12 sps:$4 sm:$0xff]  }
 0x235   :  { %2259 = vmatprep.subr.bf16.mxu0 %v8603_v56  ;;  %v8666_v56 = vld [vmem:[#allocation8 + $0x228] ss:$12 sps:$4 sm:$0xff]  }
 0x238   :  { %2260 = vmatpush1.bf16.msra.mxu0 %v8601_v57  ;;  %v8670_v57 = vld [vmem:[#allocation8 + $0x230] ss:$12 sps:$4 sm:$0xff]  }
 0x239   :  { %2261 = vmatprep.subr.bf16.mxu0 %v8608_v58 }
 0x23c   :  { %2262 = vmatpush1.bf16.msra.mxu0 %v8606_v59  ;;  %v8673_v59 = vld [vmem:[#allocation8 + $0x244] ss:$12 sps:$4 sm:$0xff]  }
 0x23d   :  { %2263 = vmatprep.subr.bf16.mxu0 %v8613_v60  ;;  %v2417_v60 = vld [vmem:[#allocation2 + $0x8] sm:$0xff] }
 0x240   :  { %2264 = vmatpush1.bf16.msra.mxu0 %v8611_v61  ;;  %v8671_v61 = vld [vmem:[#allocation8 + $0x240] ss:$12 sps:$4 sm:$0xff]  }
 0x241   :  { %2265 = vmatprep.subr.bf16.mxu0 %v8618_v62 }
 0x244   :  { %2266 = vmatpush1.bf16.msra.mxu0 %v8616_v63  ;;  %v8676_v63 = vld [vmem:[#allocation8 + $0x25c] ss:$12 sps:$4 sm:$0xff]  }
 0x245   :  { %2267 = vmatprep.subr.bf16.mxu0 %v8623_v0  ;;  %v2416_v0 = vld [vmem:[#allocation2] sm:$0xff] }
 0x248   :  { %2268 = vmatpush1.bf16.msra.mxu0 %v8621_v1  ;;  %v2419_v1 = vld [vmem:[#allocation2 + $0x18] sm:$0xff] }
 0x249   :  { %2269 = vmatprep.subr.bf16.mxu0 %v8628_v2  ;;  %v8674_v2 = vld [vmem:[#allocation8 + $0x258] ss:$12 sps:$4 sm:$0xff]  }
 0x24c   :  { %2270 = vmatpush1.bf16.msra.mxu0 %v8626_v4  ;;  %v9824_v4 = vmov 0.0  }
 0x24d   :  { %2280 = vmatprep.subr.bf16.mxu0 %v8633_v6  ;;  %v8682_v6 = vld [vmem:[#allocation8 + $0x28c] ss:$12 sps:$4 sm:$0xff]  }
 0x2e2   :  { %v1502_v10 = vpop.f32.mrb[4].mxu0  ;;  %v10095_v11 = vpop.f32.mrb[4].mxu1 }
 0x2e3   :  { %v1591_v12 = vmax.f32 %v1502_v10, 0.0  ;;  %v1504_v13 = vpop.f32.mrb[5].mxu0  ;;  %v1586_v14 = vpop.f32.mrb[5].mxu1  ;;  %v1593_v58 = vmax.f32 %v10095_v11, 0.0  ;;  %v8683_v10 = vld [vmem:[#allocation8 + $0x2a0] ss:$12 sps:$4 sm:$0xff]  }
 0x2e4   :  { %v1592_v17 = vmax.f32 %v1504_v13, 0.0  ;;  %v1506_v18 = vpop.f32.mrb[6].mxu0  ;;  %v1588_v19 = vpop.f32.mrb[6].mxu1  ;;  %v1594_v20 = vmax.f32 %v1586_v14, 0.0  ;;  %v8688_v11 = vld [vmem:[#allocation8 + $0x2bc] ss:$12 sps:$4 sm:$0xff]  }
 0x2e5   :  { %v1507_v21 = vpop.f32.mrb[7].mxu0  ;;  %v1589_v22 = vpop.f32.mrb[7].mxu1  ;;  %v10099_v27 = vpack.c.bf16 %v1591_v12, %v1591_v12  ;;  %v10110_v62 = vpack.c.bf16 %v1593_v58, %v1593_v58  ;;  %v8686_v12 = vld [vmem:[#allocation8 + $0x2b8] ss:$12 sps:$4 sm:$0xff]   ;;  %v8691_v13 = vld [vmem:[#allocation8 + $0x2d4] ss:$12 sps:$4 sm:$0xff]   ;;  %v2408_v19 = vlaneseq }
 0x2e6   :  { %v10097_v23 = vpack.c.bf16 %v1592_v17, %v1592_v17  ;;  %v10103_v30 = vpack.c.bf16 %v1594_v20, %v1594_v20  ;;  %v8689_v14 = vld [vmem:[#allocation8 + $0x2d0] ss:$12 sps:$4 sm:$0xff]   ;;  %v8694_v17 = vld [vmem:[#allocation8 + $0x2ec] ss:$12 sps:$4 sm:$0xff]   ;;  %v8692_v18 = vld [vmem:[#allocation8 + $0x2e8] ss:$12 sps:$4 sm:$0xff]   ;;  %v2412_v21 = vpop.permute.xlu0 %2411 }
 0x2e7   :  { %v2409_v20 = vand.u32 127, %v2408_v19  ;;  %v8737_v58 = vld [vmem:[#allocation10 + $0xe0] ss:$16 sps:$4 sm:$0xff]  }
 0x2e8   :  { %2271 = vmatprep.mubr.bf16.mxu0 %v10097_v23  ;;  %2353 = vmatprep.mubr.bf16.mxu1 %v10097_v23 }
 0x2e9   :  { %2272 = vmatmul.mubr.bf16.vlgmr.msra.gmra.mrb[8].mxu0 %v10099_v27  ;;  %2354 = vmatmul.mubr.bf16.vlgmr.msra.gmra.mrb[8].mxu1 %v10099_v27  ;;  %vm2413_vm1 = vcmp.eq.s32.totalorder %v2409_v20, %v2412_v21 }
 0x2ea   :  { %2281 = vmatpush1.bf16.msra.mxu0 %v8631_v24  ;;  %8096 = vmatpush3.bf16.msra.mxu1 %v8635_v25  ;;  %v7478_v22 = vsel %vm2413_vm1, 1.0, %v9824_v4  ;;  %v2418_v24 = vld [vmem:[#allocation2 + $0x10] sm:$0xff] }
 0x2eb   :  { %2312 = vmatprep.mubr.bf16.mxu0 %v10103_v30  ;;  %2393 = vmatprep.mubr.bf16.mxu1 %v10103_v30  ;;  %v8695_v25 = vld [vmem:[#allocation10] ss:$16 sps:$4 sm:$0xff]  }
 0x2ec   :  { %2282 = vmatprep.subr.bf16.mxu0 %v8638_v28  ;;  %8097 = vmatprep.subr.bf16.mxu1 %v8639_v29  ;;  %v8697_v28 = vld [vmem:[#allocation10 + $0x4] ss:$16 sps:$4 sm:$0xff]   ;;  %v8698_v29 = vld [vmem:[#allocation10 + $0x200] ss:$16 sps:$4 sm:$0xff]  }
 0x2ee   :  { %2283 = vmatpush1.bf16.msra.mxu0 %v8636_v31  ;;  %8098 = vmatpush3.bf16.msra.mxu1 %v8640_v32  ;;  %v8700_v31 = vld [vmem:[#allocation10 + $0x204] ss:$16 sps:$4 sm:$0xff]  }
 0x2ef   :  { %2284 = vmatprep.subr.bf16.mxu0 %v8643_v33  ;;  %8099 = vmatprep.subr.bf16.mxu1 %v8644_v34  ;;  %v8703_v32 = vld [vmem:[#allocation10 + $0x24] ss:$16 sps:$4 sm:$0xff]   ;;  %v8701_v34 = vld [vmem:[#allocation10 + $0x20] ss:$16 sps:$4 sm:$0xff]  }
 0x2f0   :  { %v8706_v33 = vld [vmem:[#allocation10 + $0x224] ss:$16 sps:$4 sm:$0xff]  }
 0x2f2   :  { %2285 = vmatpush1.bf16.msra.mxu0 %v8641_v35  ;;  %8100 = vmatpush3.bf16.msra.mxu1 %v8645_v36  ;;  %v8704_v35 = vld [vmem:[#allocation10 + $0x220] ss:$16 sps:$4 sm:$0xff]   ;;  %v8709_v36 = vld [vmem:[#allocation10 + $0x44] ss:$16 sps:$4 sm:$0xff]  }
 0x2f3   :  { %2286 = vmatprep.subr.bf16.mxu0 %v8648_v37  ;;  %8101 = vmatprep.subr.bf16.mxu1 %v8649_v38  ;;  %v8712_v37 = vld [vmem:[#allocation10 + $0x244] ss:$16 sps:$4 sm:$0xff]   ;;  %v8707_v38 = vld [vmem:[#allocation10 + $0x40] ss:$16 sps:$4 sm:$0xff]  }
 0x2f6   :  { %2287 = vmatpush1.bf16.msra.mxu0 %v8646_v39  ;;  %8102 = vmatpush3.bf16.msra.mxu1 %v8650_v40  ;;  %v8710_v39 = vld [vmem:[#allocation10 + $0x240] ss:$16 sps:$4 sm:$0xff]   ;;  %v8715_v40 = vld [vmem:[#allocation10 + $0x64] ss:$16 sps:$4 sm:$0xff]  }
 0x2f7   :  { %2288 = vmatprep.subr.bf16.mxu0 %v8653_v41  ;;  %8103 = vmatprep.subr.bf16.mxu1 %v8654_v43  ;;  %v8718_v41 = vld [vmem:[#allocation10 + $0x264] ss:$16 sps:$4 sm:$0xff]   ;;  %v8713_v43 = vld [vmem:[#allocation10 + $0x60] ss:$16 sps:$4 sm:$0xff]  }
 0x2fa   :  { %2289 = vmatpush1.bf16.msra.mxu0 %v8651_v44  ;;  %8104 = vmatpush3.bf16.msra.mxu1 %v8655_v45  ;;  %v8716_v44 = vld [vmem:[#allocation10 + $0x260] ss:$16 sps:$4 sm:$0xff]   ;;  %v8721_v45 = vld [vmem:[#allocation10 + $0x84] ss:$16 sps:$4 sm:$0xff]  }
 0x2fb   :  { %2290 = vmatprep.subr.bf16.mxu0 %v8658_v46  ;;  %8105 = vmatprep.subr.bf16.mxu1 %v8659_v47  ;;  %v8724_v46 = vld [vmem:[#allocation10 + $0x284] ss:$16 sps:$4 sm:$0xff]   ;;  %v8719_v47 = vld [vmem:[#allocation10 + $0x80] ss:$16 sps:$4 sm:$0xff]  }
 0x2fe   :  { %2291 = vmatpush1.bf16.msra.mxu0 %v8656_v48  ;;  %8106 = vmatpush3.bf16.msra.mxu1 %v8660_v49  ;;  %v8722_v48 = vld [vmem:[#allocation10 + $0x280] ss:$16 sps:$4 sm:$0xff]   ;;  %v8727_v49 = vld [vmem:[#allocation10 + $0xa4] ss:$16 sps:$4 sm:$0xff]  }
 0x2ff   :  { %2292 = vmatprep.subr.bf16.mxu0 %v8663_v50  ;;  %8107 = vmatprep.subr.bf16.mxu1 %v8664_v51  ;;  %v8730_v50 = vld [vmem:[#allocation10 + $0x2a4] ss:$16 sps:$4 sm:$0xff]   ;;  %v8725_v51 = vld [vmem:[#allocation10 + $0xa0] ss:$16 sps:$4 sm:$0xff]  }
 0x302   :  { %2293 = vmatpush1.bf16.msra.mxu0 %v8661_v52  ;;  %8108 = vmatpush3.bf16.msra.mxu1 %v8665_v53  ;;  %v8728_v52 = vld [vmem:[#allocation10 + $0x2a0] ss:$16 sps:$4 sm:$0xff]   ;;  %v8733_v53 = vld [vmem:[#allocation10 + $0xc4] ss:$16 sps:$4 sm:$0xff]  }
 0x303   :  { %2294 = vmatprep.subr.bf16.mxu0 %v8668_v54  ;;  %8109 = vmatprep.subr.bf16.mxu1 %v8669_v55  ;;  %v8731_v54 = vld [vmem:[#allocation10 + $0xc0] ss:$16 sps:$4 sm:$0xff]   ;;  %v8736_v55 = vld [vmem:[#allocation10 + $0x2c4] ss:$16 sps:$4 sm:$0xff]  }
 0x306   :  { %2295 = vmatpush1.bf16.msra.mxu0 %v8666_v56  ;;  %8110 = vmatpush3.bf16.msra.mxu1 %v8670_v57  ;;  %v8734_v56 = vld [vmem:[#allocation10 + $0x2c0] ss:$16 sps:$4 sm:$0xff]   ;;  %v8739_v57 = vld [vmem:[#allocation10 + $0xe4] ss:$16 sps:$4 sm:$0xff]  }
 0x307   :  { %2296 = vmatprep.subr.bf16.mxu0 %v8673_v59  ;;  %2424 = vmatprep.subr.mxu1 %v2417_v60  ;;  %v8742_v59 = vld [vmem:[#allocation10 + $0x2e4] ss:$16 sps:$4 sm:$0xff]   ;;  %v8740_v60 = vld [vmem:[#allocation10 + $0x2e0] ss:$16 sps:$4 sm:$0xff]  }
 0x309   :  { %2394 = vmatmul.mubr.bf16.vlgmr.msra.gmra.mrb[12].mxu1 %v10110_v62 }
 0x30a   :  { %2297 = vmatpush1.bf16.msra.mxu0 %v8671_v61  ;;  %2425 = vmatpush1.msra.mxu1 %v2416_v0  ;;  %v8745_v61 = vld [vmem:[#allocation10 + $0x104] ss:$16 sps:$4 sm:$0xff]   ;;  %v8748_v0 = vld [vmem:[#allocation10 + $0x20c] ss:$16 sps:$4 sm:$0xff]  }
 0x30b   :  { %2298 = vmatprep.subr.bf16.mxu0 %v8676_v63  ;;  %2488 = vmatprep.mubr.f32.mxu1 %v9824_v4  ;;  %v8743_v63 = vld [vmem:[#allocation10 + $0x100] ss:$16 sps:$4 sm:$0xff]  }
 0x30c   :  { %2495 = vmatprep.subr.mxu1 %v2419_v1  ;;  %v8749_v1 = vld [vmem:[#allocation10 + $0x120] ss:$16 sps:$4 sm:$0xff]  }
 0x30e   :  { %2299 = vmatpush1.bf16.msra.mxu0 %v8674_v2  ;;  %v8751_v2 = vld [vmem:[#allocation10 + $0x124] ss:$16 sps:$4 sm:$0xff]  }
 0x30f   :  { %2300 = vmatprep.subr.bf16.mxu0 %v8679_v3  ;;  %v8755_v3 = vld [vmem:[#allocation10 + $0x140] ss:$16 sps:$4 sm:$0xff]  }
 0x311   :  { %7479 = vmatmul.mubr.msk.f32.vlgmr.msra.gmra.mrb[16].mxu1 %vm2420_vm0, %v7478_v22 }
 0x312   :  { %2301 = vmatpush1.bf16.msra.mxu0 %v8677_v5  ;;  %2559 = vmatprep.mubr.f32.mxu1 %v9824_v4  ;;  %v8757_v4 = vld [vmem:[#allocation10 + $0x144] ss:$16 sps:$4 sm:$0xff]   ;;  %v8761_v5 = vld [vmem:[#allocation10 + $0x160] ss:$16 sps:$4 sm:$0xff]  }
 0x313   :  { %2302 = vmatprep.subr.bf16.mxu0 %v8682_v6  ;;  %2496 = vmatpush1.msra.mxu1 %v2418_v24  ;;  %v8763_v6 = vld [vmem:[#allocation10 + $0x164] ss:$16 sps:$4 sm:$0xff]  }
 0x314   :  { %3142 = vmatprep.subr.bf16.mxu1 %v8697_v28 }
 0x315   :  { %7480 = vmatmul.mubr.msk.f32.vlgmr.msra.gmra.mrb[18].mxu1 %vm2420_vm0, %v7478_v22 }
 0x316   :  { %2303 = vmatpush1.bf16.msra.mxu0 %v8680_v7  ;;  %3143 = vmatpush1.bf16.msra.mxu1 %v8695_v25  ;;  %v8767_v7 = vld [vmem:[#allocation10 + $0x180] ss:$16 sps:$4 sm:$0xff]  }
 0x317   :  { %2304 = vmatprep.subr.bf16.mxu0 %v8685_v8  ;;  %3144 = vmatprep.subr.bf16.mxu1 %v8703_v32  ;;  %v8769_v8 = vld [vmem:[#allocation10 + $0x184] ss:$16 sps:$4 sm:$0xff]  }
 0x31a   :  { %2305 = vmatpush1.bf16.msra.mxu0 %v8683_v10  ;;  %3145 = vmatpush1.bf16.msra.mxu1 %v8701_v34  ;;  %v8773_v10 = vld [vmem:[#allocation10 + $0x1a0] ss:$16 sps:$4 sm:$0xff]  }
 0x31b   :  { %2306 = vmatprep.subr.bf16.mxu0 %v8688_v11  ;;  %3146 = vmatprep.subr.bf16.mxu1 %v8709_v36  ;;  %v8775_v11 = vld [vmem:[#allocation10 + $0x1a4] ss:$16 sps:$4 sm:$0xff]  }
 0x31e   :  { %2307 = vmatpush1.bf16.msra.mxu0 %v8686_v12  ;;  %3147 = vmatpush1.bf16.msra.mxu1 %v8707_v38  ;;  %v8779_v12 = vld [vmem:[#allocation10 + $0x1c0] ss:$16 sps:$4 sm:$0xff]   ;;  %v8752_v38 = vld [vmem:[#allocation10 + $0x228] ss:$16 sps:$4 sm:$0xff]  }
 0x31f   :  { %2308 = vmatprep.subr.bf16.mxu0 %v8691_v13  ;;  %3148 = vmatprep.subr.bf16.mxu1 %v8715_v40  ;;  %v8781_v13 = vld [vmem:[#allocation10 + $0x1c4] ss:$16 sps:$4 sm:$0xff]   ;;  %v8758_v40 = vld [vmem:[#allocation10 + $0x248] ss:$16 sps:$4 sm:$0xff]  }
 0x322   :  { %2309 = vmatpush1.bf16.msra.mxu0 %v8689_v14  ;;  %3149 = vmatpush1.bf16.msra.mxu1 %v8713_v43  ;;  %v8787_v14 = vld [vmem:[#allocation10 + $0x1e4] ss:$16 sps:$4 sm:$0xff]   ;;  %v8764_v43 = vld [vmem:[#allocation10 + $0x268] ss:$16 sps:$4 sm:$0xff]  }
 0x323   :  { %2310 = vmatprep.subr.bf16.mxu0 %v8694_v17  ;;  %3150 = vmatprep.subr.bf16.mxu1 %v8721_v45  ;;  %v8785_v17 = vld [vmem:[#allocation10 + $0x1e0] ss:$16 sps:$4 sm:$0xff]   ;;  %v8770_v45 = vld [vmem:[#allocation10 + $0x288] ss:$16 sps:$4 sm:$0xff]  }
 0x326   :  { %2311 = vmatpush1.bf16.msra.mxu0 %v8692_v18  ;;  %3151 = vmatpush1.bf16.msra.mxu1 %v8719_v47  ;;  %v8793_v18 = vld [vmem:[#allocation10 + $0xc] ss:$16 sps:$4 sm:$0xff]   ;;  %v8776_v47 = vld [vmem:[#allocation10 + $0x2a8] ss:$16 sps:$4 sm:$0xff]  }
 0x327   :  { %3183 = vmatprep.subr.bf16.mxu0 %v8700_v31  ;;  %3152 = vmatprep.subr.bf16.mxu1 %v8727_v49  ;;  %v8782_v49 = vld [vmem:[#allocation10 + $0x2c8] ss:$16 sps:$4 sm:$0xff]  }
 0x329   :  { %2313 = vmatmul.mubr.bf16.vlgmr.msra.gmra.mrb[8].mxu0 %v10110_v62 }
 0x32a   :  { %3215 = vmatprep.mubr.bf16.mxu0 %v9823_v9  ;;  %3184 = vmatpush1.bf16.msra.mxu0 %v8698_v29 }
 0x32b   :  { %3185 = vmatprep.subr.bf16.mxu0 %v8706_v33  ;;  %3153 = vmatpush1.bf16.msra.mxu1 %v8725_v51  ;;  %v8790_v51 = vld [vmem:[#allocation10 + $0x2ec] ss:$16 sps:$4 sm:$0xff]  }
 0x32c   :  { %3154 = vmatprep.subr.bf16.mxu1 %v8733_v53 }
 0x32e   :  { %3186 = vmatpush1.bf16.msra.mxu0 %v8704_v35  ;;  %v8746_v35 = vld [vmem:[#allocation10 + $0x208] ss:$16 sps:$4 sm:$0xff]  }
 0x32f   :  { %3187 = vmatprep.subr.bf16.mxu0 %v8712_v37  ;;  %3155 = vmatpush1.bf16.msra.mxu1 %v8731_v54  ;;  %v8754_v37 = vld [vmem:[#allocation10 + $0x22c] ss:$16 sps:$4 sm:$0xff]  }
 0x330   :  { %3156 = vmatprep.subr.bf16.mxu1 %v8739_v57  ;;  %v8788_v57 = vld [vmem:[#allocation10 + $0x2e8] ss:$16 sps:$4 sm:$0xff]  }
 0x332   :  { %3188 = vmatpush1.bf16.msra.mxu0 %v8710_v39  ;;  %v8760_v39 = vld [vmem:[#allocation10 + $0x24c] ss:$16 sps:$4 sm:$0xff]  }
 0x333   :  { %3189 = vmatprep.subr.bf16.mxu0 %v8718_v41  ;;  %3157 = vmatpush1.bf16.msra.mxu1 %v8737_v58  ;;  %v8766_v41 = vld [vmem:[#allocation10 + $0x26c] ss:$16 sps:$4 sm:$0xff]  }
 0x334   :  { %3158 = vmatprep.subr.bf16.mxu1 %v8745_v61  ;;  %v8796_v61 = vld [vmem:[#allocation13 + $0x4] ss:$16 sps:$4 sm:$0xff]  }
 0x336   :  { %3190 = vmatpush1.bf16.msra.mxu0 %v8716_v44  ;;  %v8772_v44 = vld [vmem:[#allocation10 + $0x28c] ss:$16 sps:$4 sm:$0xff]  }
 0x337   :  { %3191 = vmatprep.subr.bf16.mxu0 %v8724_v46  ;;  %3159 = vmatpush1.bf16.msra.mxu1 %v8743_v63  ;;  %v8778_v46 = vld [vmem:[#allocation10 + $0x2ac] ss:$16 sps:$4 sm:$0xff]  }
 0x338   :  { %3160 = vmatprep.subr.bf16.mxu1 %v8751_v2  ;;  %v8799_v63 = vld [vmem:[#allocation10 + $0x2c] ss:$16 sps:$4 sm:$0xff]   ;;  %v8802_v2 = vld [vmem:[#allocation13 + $0x24] ss:$16 sps:$4 sm:$0xff]  }
 0x33a   :  { %3192 = vmatpush1.bf16.msra.mxu0 %v8722_v48  ;;  %v8784_v48 = vld [vmem:[#allocation10 + $0x2cc] ss:$16 sps:$4 sm:$0xff]  }
 0x33b   :  { %3193 = vmatprep.subr.bf16.mxu0 %v8730_v50  ;;  %3161 = vmatpush1.bf16.msra.mxu1 %v8749_v1  ;;  %v8797_v1 = vld [vmem:[#allocation10 + $0x28] ss:$16 sps:$4 sm:$0xff]  }
 0x33c   :  { %3162 = vmatprep.subr.bf16.mxu1 %v8757_v4  ;;  %v8800_v4 = vld [vmem:[#allocation13 + $0x20] ss:$16 sps:$4 sm:$0xff]  }
 0x33e   :  { %3194 = vmatpush1.bf16.msra.mxu0 %v8728_v52 }
 0x33f   :  { %3195 = vmatprep.subr.bf16.mxu0 %v8736_v55  ;;  %3163 = vmatpush1.bf16.msra.mxu1 %v8755_v3  ;;  %v8805_v3 = vld [vmem:[#allocation10 + $0x4c] ss:$16 sps:$4 sm:$0xff]  }
 0x340   :  { %3164 = vmatprep.subr.bf16.mxu1 %v8763_v6  ;;  %v8808_v6 = vld [vmem:[#allocation13 + $0x44] ss:$16 sps:$4 sm:$0xff]  }
 0x342   :  { %3196 = vmatpush1.bf16.msra.mxu0 %v8734_v56 }
 0x343   :  { %3197 = vmatprep.subr.bf16.mxu0 %v8742_v59  ;;  %3165 = vmatpush1.bf16.msra.mxu1 %v8761_v5  ;;  %v8791_v59 = vld [vmem:[#allocation10 + $0x8] ss:$16 sps:$4 sm:$0xff]  }
 0x344   :  { %3166 = vmatprep.subr.bf16.mxu1 %v8769_v8  ;;  %v8803_v5 = vld [vmem:[#allocation10 + $0x48] ss:$16 sps:$4 sm:$0xff]   ;;  %v8806_v8 = vld [vmem:[#allocation13 + $0x40] ss:$16 sps:$4 sm:$0xff]  }
 0x346   :  { %3198 = vmatpush1.bf16.msra.mxu0 %v8740_v60 }
 0x347   :  { %3265 = vmatprep.subr.bf16.mxu0 %v8748_v0  ;;  %3167 = vmatpush1.bf16.msra.mxu1 %v8767_v7  ;;  %v8794_v0 = vld [vmem:[#allocation13] ss:$16 sps:$4 sm:$0xff]   ;;  %v8811_v7 = vld [vmem:[#allocation10 + $0x6c] ss:$16 sps:$4 sm:$0xff]  }
 0x348   :  { %3168 = vmatprep.subr.bf16.mxu1 %v8775_v11  ;;  %v8814_v11 = vld [vmem:[#allocation13 + $0x64] ss:$16 sps:$4 sm:$0xff]  }
 0x34b   :  { %3169 = vmatpush1.bf16.msra.mxu1 %v8773_v10  ;;  %v8809_v10 = vld [vmem:[#allocation10 + $0x68] ss:$16 sps:$4 sm:$0xff]  }
 0x34c   :  { %3170 = vmatprep.subr.bf16.mxu1 %v8781_v13 }
 0x34f   :  { %3171 = vmatpush1.bf16.msra.mxu1 %v8779_v12  ;;  %v8817_v12 = vld [vmem:[#allocation10 + $0x8c] ss:$16 sps:$4 sm:$0xff]  }
 0x350   :  { %3172 = vmatprep.subr.bf16.mxu1 %v8787_v14  ;;  %v8812_v14 = vld [vmem:[#allocation13 + $0x60] ss:$16 sps:$4 sm:$0xff]  }
 0x353   :  { %3173 = vmatpush1.bf16.msra.mxu1 %v8785_v17  ;;  %v8815_v17 = vld [vmem:[#allocation10 + $0x88] ss:$16 sps:$4 sm:$0xff]  }
 0x354   :  { %3224 = vmatprep.subr.bf16.mxu1 %v8793_v18  ;;  %v8820_v18 = vld [vmem:[#allocation13 + $0x84] ss:$16 sps:$4 sm:$0xff]  }
 0x3bc   :  { %v8089_v19 = vpop.f32.mrb[8].mxu1 }
 0x3bd   :  { %v8090_v20 = vpop.f32.mrb[9].mxu1 }
 0x3be   :  { %v8091_v21 = vadd.f32 %v8090_v20, %v8089_v19  ;;  %v8092_v22 = vpop.f32.mrb[10].mxu1  ;;  %v8823_v20 = vld [vmem:[#allocation10 + $0xac] ss:$16 sps:$4 sm:$0xff]  }
 0x3bf   :  { %v8093_v24 = vpop.f32.mrb[11].mxu1 }
 0x3c0   :  { %v8818_v24 = vld [vmem:[#allocation13 + $0x80] ss:$16 sps:$4 sm:$0xff]  }
 0x3dc   :  { %v8111_v25 = vpop.f32.mrb[12].mxu1 }
 0x3dd   :  { %v8112_v28 = vpop.f32.mrb[13].mxu1 }
 0x3de   :  { %v8113_v29 = vadd.f32 %v8112_v28, %v8111_v25  ;;  %v8114_v31 = vpop.f32.mrb[14].mxu1  ;;  %v8821_v25 = vld [vmem:[#allocation10 + $0xa8] ss:$16 sps:$4 sm:$0xff]   ;;  %v8826_v28 = vld [vmem:[#allocation13 + $0xa4] ss:$16 sps:$4 sm:$0xff]  }
 0x3df   :  { %v8115_v32 = vpop.f32.mrb[15].mxu1  ;;  %v8824_v31 = vld [vmem:[#allocation13 + $0xa0] ss:$16 sps:$4 sm:$0xff]  }
 0x3e0   :  { %v2396_v33 = vadd.f32 %v8113_v29, %v8091_v21  ;;  %v8829_v29 = vld [vmem:[#allocation10 + $0xcc] ss:$16 sps:$4 sm:$0xff]   ;;  %v8827_v32 = vld [vmem:[#allocation10 + $0xc8] ss:$16 sps:$4 sm:$0xff]  }
 0x3e2   :  { %v2403_v34 = vmax.f32 %v2396_v33, 0.0  ;;  %v8832_v33 = vld [vmem:[#allocation13 + $0xc4] ss:$16 sps:$4 sm:$0xff]  }
 0x3e4   :  { %v2406_v36 = vpack.c.bf16 %v2403_v34, %v2403_v34  ;;  %v10120_v13 = vpop.f32.mrb[16].mxu1  ;;  %v8835_v34 = vld [vmem:[#allocation10 + $0xec] ss:$16 sps:$4 sm:$0xff]  }
 0x3e5   :  { %v10122_v19 = vpop.f32.mrb[17].mxu1 }
 0x3e6   :  { %3216 = vmatmul.mubr.bf16.vlgmr.msra.gmra.mrb[12].mxu0 %v2406_v36 }
 0x3e7   :  { %3266 = vmatpush1.bf16.msra.mxu0 %v8746_v35  ;;  %3297 = vmatprep.mubr.bf16.mxu0 %v9823_v9  ;;  %v8830_v35 = vld [vmem:[#allocation13 + $0xc0] ss:$16 sps:$4 sm:$0xff]  }
 0x3e8   :  { %3267 = vmatprep.subr.bf16.mxu0 %v8754_v37  ;;  %v10124_v21 = vpop.f32.mrb[18].mxu1  ;;  %v8838_v37 = vld [vmem:[#allocation13 + $0xe4] ss:$16 sps:$4 sm:$0xff]  }
 0x3e9   :  { %v10126_v22 = vpop.f32.mrb[19].mxu1 }
 0x3eb   :  { %3268 = vmatpush1.bf16.msra.mxu0 %v8752_v38  ;;  %v8841_v38 = vld [vmem:[#allocation10 + $0x10c] ss:$16 sps:$4 sm:$0xff]  }
 0x3ec   :  { %3269 = vmatprep.subr.bf16.mxu0 %v8760_v39  ;;  %v8836_v39 = vld [vmem:[#allocation13 + $0xe0] ss:$16 sps:$4 sm:$0xff]  }
 0x3ef   :  { %3270 = vmatpush1.bf16.msra.mxu0 %v8758_v40  ;;  %v8839_v40 = vld [vmem:[#allocation10 + $0x108] ss:$16 sps:$4 sm:$0xff]  }
 0x3f0   :  { %3271 = vmatprep.subr.bf16.mxu0 %v8766_v41  ;;  %v8844_v41 = vld [vmem:[#allocation13 + $0x104] ss:$16 sps:$4 sm:$0xff]  }
 0x3f3   :  { %3272 = vmatpush1.bf16.msra.mxu0 %v8764_v43  ;;  %v8847_v43 = vld [vmem:[#allocation10 + $0x12c] ss:$16 sps:$4 sm:$0xff]  }
 0x3f4   :  { %3273 = vmatprep.subr.bf16.mxu0 %v8772_v44  ;;  %v8842_v44 = vld [vmem:[#allocation13 + $0x100] ss:$16 sps:$4 sm:$0xff]  }
 0x3f7   :  { %3274 = vmatpush1.bf16.msra.mxu0 %v8770_v45  ;;  %v8845_v45 = vld [vmem:[#allocation10 + $0x128] ss:$16 sps:$4 sm:$0xff]  }
 0x3f8   :  { %3275 = vmatprep.subr.bf16.mxu0 %v8778_v46  ;;  %v8850_v46 = vld [vmem:[#allocation13 + $0x124] ss:$16 sps:$4 sm:$0xff]  }
 0x3fb   :  { %3276 = vmatpush1.bf16.msra.mxu0 %v8776_v47  ;;  %v8853_v47 = vld [vmem:[#allocation10 + $0x14c] ss:$16 sps:$4 sm:$0xff]  }
 0x3fc   :  { %v2314_v50 = vpop.f32.mrb[8].mxu0  ;;  %3277 = vmatprep.subr.bf16.mxu0 %v8784_v48  ;;  %v8848_v48 = vld [vmem:[#allocation13 + $0x120] ss:$16 sps:$4 sm:$0xff]  }
 0x3fd   :  { %v2401_v52 = vmax.f32 %v2314_v50, 0.0  ;;  %v2316_v53 = vpop.f32.mrb[9].mxu0  ;;  %v8856_v50 = vld [vmem:[#allocation13 + $0x144] ss:$16 sps:$4 sm:$0xff]  }
 0x3fe   :  { %v2402_v54 = vmax.f32 %v2316_v53, 0.0  ;;  %v2318_v55 = vpop.f32.mrb[10].mxu0  ;;  %v8857_v53 = vld [vmem:[#allocation10 + $0x168] ss:$16 sps:$4 sm:$0xff]  }
 0x3ff   :  { %3278 = vmatpush1.bf16.msra.mxu0 %v8782_v49  ;;  %v2319_v56 = vpop.f32.mrb[11].mxu0  ;;  %v10116_v60 = vpack.c.bf16 %v2401_v52, %v2401_v52  ;;  %v8851_v49 = vld [vmem:[#allocation10 + $0x148] ss:$16 sps:$4 sm:$0xff]   ;;  %v8854_v52 = vld [vmem:[#allocation13 + $0x140] ss:$16 sps:$4 sm:$0xff]  }
 0x400   :  { %v2405_v58 = vpack.c.bf16 %v2402_v54, %v2402_v54  ;;  %3279 = vmatprep.subr.bf16.mxu0 %v8790_v51  ;;  %v8859_v51 = vld [vmem:[#allocation10 + $0x16c] ss:$16 sps:$4 sm:$0xff]   ;;  %v8862_v54 = vld [vmem:[#allocation13 + $0x164] ss:$16 sps:$4 sm:$0xff]   ;;  %v8860_v56 = vld [vmem:[#allocation13 + $0x160] ss:$16 sps:$4 sm:$0xff]  }
 0x401   :  { %v8865_v55 = vld [vmem:[#allocation10 + $0x18c] ss:$16 sps:$4 sm:$0xff]  }
 0x402   :  { %3174 = vmatprep.mubr.bf16.mxu1 %v2405_v58 }
 0x403   :  { %3280 = vmatpush1.bf16.msra.mxu0 %v8788_v57  ;;  %3175 = vmatmul.mubr.bf16.vlgmr.msra.gmra.mrb[20].mxu1 %v10116_v60  ;;  %v8863_v57 = vld [vmem:[#allocation10 + $0x188] ss:$16 sps:$4 sm:$0xff]  }
 0x404   :  { %3225 = vmatpush1.bf16.msra.mxu1 %v8791_v59  ;;  %3256 = vmatprep.mubr.bf16.mxu1 %v2405_v58  ;;  %v8868_v58 = vld [vmem:[#allocation13 + $0x184] ss:$16 sps:$4 sm:$0xff]   ;;  %v8871_v59 = vld [vmem:[#allocation10 + $0x1ac] ss:$16 sps:$4 sm:$0xff]  }
 0x405   :  { %4210 = vmatprep.subr.bf16.mxu0 %v8796_v61  ;;  %3226 = vmatprep.subr.bf16.mxu1 %v8799_v63  ;;  %v8866_v61 = vld [vmem:[#allocation13 + $0x180] ss:$16 sps:$4 sm:$0xff]   ;;  %v8869_v63 = vld [vmem:[#allocation10 + $0x1a8] ss:$16 sps:$4 sm:$0xff]  }
 0x406   :  { %3298 = vmatmul.mubr.bf16.vlgmr.msra.gmra.mrb[16].mxu0 %v2406_v36  ;;  %v8833_v36 = vld [vmem:[#allocation10 + $0xe8] ss:$16 sps:$4 sm:$0xff]  }
 0x407   :  { %4211 = vmatpush1.bf16.msra.mxu0 %v8794_v0  ;;  %4242 = vmatprep.mubr.bf16.mxu0 %v10097_v23  ;;  %v8874_v0 = vld [vmem:[#allocation13 + $0x1a4] ss:$16 sps:$4 sm:$0xff]  }
 0x408   :  { %3227 = vmatpush1.bf16.msra.mxu1 %v8797_v1  ;;  %4212 = vmatprep.subr.bf16.mxu0 %v8802_v2  ;;  %v8877_v1 = vld [vmem:[#allocation10 + $0x1cc] ss:$16 sps:$4 sm:$0xff]   ;;  %v8872_v2 = vld [vmem:[#allocation13 + $0x1a0] ss:$16 sps:$4 sm:$0xff]  }
 0x409   :  { %3228 = vmatprep.subr.bf16.mxu1 %v8805_v3  ;;  %v8875_v3 = vld [vmem:[#allocation10 + $0x1c8] ss:$16 sps:$4 sm:$0xff]  }
 0x40b   :  { %4213 = vmatpush1.bf16.msra.mxu0 %v8800_v4  ;;  %v8880_v4 = vld [vmem:[#allocation13 + $0x1c4] ss:$16 sps:$4 sm:$0xff]  }
 0x40c   :  { %3229 = vmatpush1.bf16.msra.mxu1 %v8803_v5  ;;  %4214 = vmatprep.subr.bf16.mxu0 %v8808_v6  ;;  %v8883_v5 = vld [vmem:[#allocation10 + $0x1ec] ss:$16 sps:$4 sm:$0xff]   ;;  %v8878_v6 = vld [vmem:[#allocation13 + $0x1c0] ss:$16 sps:$4 sm:$0xff]  }
 0x40d   :  { %3230 = vmatprep.subr.bf16.mxu1 %v8811_v7  ;;  %v8881_v7 = vld [vmem:[#allocation10 + $0x1e8] ss:$16 sps:$4 sm:$0xff]  }
 0x40f   :  { %4215 = vmatpush1.bf16.msra.mxu0 %v8806_v8  ;;  %v8886_v8 = vld [vmem:[#allocation13 + $0x1e4] ss:$16 sps:$4 sm:$0xff]  }
 0x410   :  { %3231 = vmatpush1.bf16.msra.mxu1 %v8809_v10  ;;  %4216 = vmatprep.subr.bf16.mxu0 %v8814_v11  ;;  %v8889_v10 = vld [vmem:[#allocation13 + $0xc] ss:$16 sps:$4 sm:$0xff]   ;;  %v8884_v11 = vld [vmem:[#allocation13 + $0x1e0] ss:$16 sps:$4 sm:$0xff]  }
 0x411   :  { %3232 = vmatprep.subr.bf16.mxu1 %v8817_v12  ;;  %v8887_v12 = vld [vmem:[#allocation13 + $0x8] ss:$16 sps:$4 sm:$0xff]  }
 0x413   :  { %4217 = vmatpush1.bf16.msra.mxu0 %v8812_v14  ;;  %v8892_v14 = vld [vmem:[#allocation13 + $0x204] ss:$16 sps:$4 sm:$0xff]  }
 0x414   :  { %3233 = vmatpush1.bf16.msra.mxu1 %v8815_v17  ;;  %4218 = vmatprep.subr.bf16.mxu0 %v8820_v18  ;;  %v8895_v17 = vld [vmem:[#allocation13 + $0x2c] ss:$16 sps:$4 sm:$0xff]   ;;  %v8890_v18 = vld [vmem:[#allocation13 + $0x200] ss:$16 sps:$4 sm:$0xff]  }
 0x415   :  { %3234 = vmatprep.subr.bf16.mxu1 %v8823_v20  ;;  %v8893_v20 = vld [vmem:[#allocation13 + $0x28] ss:$16 sps:$4 sm:$0xff]  }
 0x417   :  { %4219 = vmatpush1.bf16.msra.mxu0 %v8818_v24  ;;  %v8898_v24 = vld [vmem:[#allocation13 + $0x224] ss:$16 sps:$4 sm:$0xff]  }
 0x418   :  { %3235 = vmatpush1.bf16.msra.mxu1 %v8821_v25  ;;  %4220 = vmatprep.subr.bf16.mxu0 %v8826_v28  ;;  %v8901_v25 = vld [vmem:[#allocation13 + $0x4c] ss:$16 sps:$4 sm:$0xff]   ;;  %v8896_v28 = vld [vmem:[#allocation13 + $0x220] ss:$16 sps:$4 sm:$0xff]  }
 0x419   :  { %3236 = vmatprep.subr.bf16.mxu1 %v8829_v29  ;;  %v8899_v29 = vld [vmem:[#allocation13 + $0x48] ss:$16 sps:$4 sm:$0xff]  }
 0x41b   :  { %4221 = vmatpush1.bf16.msra.mxu0 %v8824_v31  ;;  %v8907_v31 = vld [vmem:[#allocation13 + $0x6c] ss:$16 sps:$4 sm:$0xff]  }
 0x41c   :  { %3237 = vmatpush1.bf16.msra.mxu1 %v8827_v32  ;;  %4222 = vmatprep.subr.bf16.mxu0 %v8832_v33  ;;  %v8902_v32 = vld [vmem:[#allocation13 + $0x240] ss:$16 sps:$4 sm:$0xff]   ;;  %v8910_v33 = vld [vmem:[#allocation13 + $0x264] ss:$16 sps:$4 sm:$0xff]  }
 0x41d   :  { %3238 = vmatprep.subr.bf16.mxu1 %v8835_v34  ;;  %v8913_v34 = vld [vmem:[#allocation13 + $0x8c] ss:$16 sps:$4 sm:$0xff]  }
 0x41f   :  { %4223 = vmatpush1.bf16.msra.mxu0 %v8830_v35  ;;  %v8908_v35 = vld [vmem:[#allocation13 + $0x260] ss:$16 sps:$4 sm:$0xff]  }
 0x420   :  { %3239 = vmatpush1.bf16.msra.mxu1 %v8833_v36  ;;  %4224 = vmatprep.subr.bf16.mxu0 %v8838_v37  ;;  %v8911_v36 = vld [vmem:[#allocation13 + $0x88] ss:$16 sps:$4 sm:$0xff]   ;;  %v8916_v37 = vld [vmem:[#allocation13 + $0x284] ss:$16 sps:$4 sm:$0xff]  }
 0x421   :  { %3240 = vmatprep.subr.bf16.mxu1 %v8841_v38  ;;  %v8919_v38 = vld [vmem:[#allocation13 + $0xac] ss:$16 sps:$4 sm:$0xff]  }
 0x423   :  { %4225 = vmatpush1.bf16.msra.mxu0 %v8836_v39  ;;  %v8914_v39 = vld [vmem:[#allocation13 + $0x280] ss:$16 sps:$4 sm:$0xff]  }
 0x424   :  { %3241 = vmatpush1.bf16.msra.mxu1 %v8839_v40  ;;  %4226 = vmatprep.subr.bf16.mxu0 %v8844_v41  ;;  %v8917_v40 = vld [vmem:[#allocation13 + $0xa8] ss:$16 sps:$4 sm:$0xff]   ;;  %v8922_v41 = vld [vmem:[#allocation13 + $0x2a4] ss:$16 sps:$4 sm:$0xff]  }
 0x425   :  { %3242 = vmatprep.subr.bf16.mxu1 %v8847_v43  ;;  %v8925_v43 = vld [vmem:[#allocation13 + $0xcc] ss:$16 sps:$4 sm:$0xff]  }
 0x427   :  { %4227 = vmatpush1.bf16.msra.mxu0 %v8842_v44  ;;  %v8920_v44 = vld [vmem:[#allocation13 + $0x2a0] ss:$16 sps:$4 sm:$0xff]  }
 0x428   :  { %3243 = vmatpush1.bf16.msra.mxu1 %v8845_v45  ;;  %4228 = vmatprep.subr.bf16.mxu0 %v8850_v46  ;;  %v8923_v45 = vld [vmem:[#allocation13 + $0xc8] ss:$16 sps:$4 sm:$0xff]   ;;  %v8928_v46 = vld [vmem:[#allocation13 + $0x2c4] ss:$16 sps:$4 sm:$0xff]  }
 0x429   :  { %3244 = vmatprep.subr.bf16.mxu1 %v8853_v47  ;;  %v8931_v47 = vld [vmem:[#allocation13 + $0xec] ss:$16 sps:$4 sm:$0xff]  }
 0x42b   :  { %4229 = vmatpush1.bf16.msra.mxu0 %v8848_v48  ;;  %v8926_v48 = vld [vmem:[#allocation13 + $0x2c0] ss:$16 sps:$4 sm:$0xff]  }
 0x42c   :  { %3245 = vmatpush1.bf16.msra.mxu1 %v8851_v49  ;;  %4230 = vmatprep.subr.bf16.mxu0 %v8856_v50  ;;  %v8929_v49 = vld [vmem:[#allocation13 + $0xe8] ss:$16 sps:$4 sm:$0xff]   ;;  %v8934_v50 = vld [vmem:[#allocation13 + $0x2e4] ss:$16 sps:$4 sm:$0xff]  }
 0x42d   :  { %3246 = vmatprep.subr.bf16.mxu1 %v8859_v51  ;;  %v8937_v51 = vld [vmem:[#allocation13 + $0x10c] ss:$16 sps:$4 sm:$0xff]  }
 0x42f   :  { %4231 = vmatpush1.bf16.msra.mxu0 %v8854_v52  ;;  %v8932_v52 = vld [vmem:[#allocation13 + $0x2e0] ss:$16 sps:$4 sm:$0xff]  }
 0x430   :  { %3247 = vmatpush1.bf16.msra.mxu1 %v8857_v53  ;;  %4232 = vmatprep.subr.bf16.mxu0 %v8862_v54  ;;  %v8935_v53 = vld [vmem:[#allocation13 + $0x108] ss:$16 sps:$4 sm:$0xff]   ;;  %v8940_v54 = vld [vmem:[#allocation13 + $0x304] ss:$16 sps:$4 sm:$0xff]  }
 0x431   :  { %3248 = vmatprep.subr.bf16.mxu1 %v8865_v55  ;;  %v8943_v55 = vld [vmem:[#allocation13 + $0x12c] ss:$16 sps:$4 sm:$0xff]  }
 0x433   :  { %4233 = vmatpush1.bf16.msra.mxu0 %v8860_v56  ;;  %v8938_v56 = vld [vmem:[#allocation13 + $0x300] ss:$16 sps:$4 sm:$0xff]  }
 0x434   :  { %3249 = vmatpush1.bf16.msra.mxu1 %v8863_v57  ;;  %4234 = vmatprep.subr.bf16.mxu0 %v8868_v58  ;;  %v8941_v57 = vld [vmem:[#allocation13 + $0x128] ss:$16 sps:$4 sm:$0xff]   ;;  %v8946_v58 = vld [vmem:[#allocation13 + $0x324] ss:$16 sps:$4 sm:$0xff]  }
 0x435   :  { %3250 = vmatprep.subr.bf16.mxu1 %v8871_v59  ;;  %v8949_v59 = vld [vmem:[#allocation13 + $0x14c] ss:$16 sps:$4 sm:$0xff]  }
 0x437   :  { %4235 = vmatpush1.bf16.msra.mxu0 %v8866_v61  ;;  %v8944_v61 = vld [vmem:[#allocation13 + $0x320] ss:$16 sps:$4 sm:$0xff]  }
 0x438   :  { %3251 = vmatpush1.bf16.msra.mxu1 %v8869_v63  ;;  %4236 = vmatprep.subr.bf16.mxu0 %v8874_v0  ;;  %v8947_v63 = vld [vmem:[#allocation13 + $0x148] ss:$16 sps:$4 sm:$0xff]   ;;  %v8952_v0 = vld [vmem:[#allocation13 + $0x344] ss:$16 sps:$4 sm:$0xff]  }
 0x439   :  { %3252 = vmatprep.subr.bf16.mxu1 %v8877_v1  ;;  %v8955_v1 = vld [vmem:[#allocation13 + $0x16c] ss:$16 sps:$4 sm:$0xff]  }
 0x43b   :  { %4237 = vmatpush1.bf16.msra.mxu0 %v8872_v2  ;;  %v8950_v2 = vld [vmem:[#allocation13 + $0x340] ss:$16 sps:$4 sm:$0xff]  }
 0x43c   :  { %3253 = vmatpush1.bf16.msra.mxu1 %v8875_v3  ;;  %4238 = vmatprep.subr.bf16.mxu0 %v8880_v4  ;;  %v8953_v3 = vld [vmem:[#allocation13 + $0x168] ss:$16 sps:$4 sm:$0xff]   ;;  %v8958_v4 = vld [vmem:[#allocation13 + $0x364] ss:$16 sps:$4 sm:$0xff]  }
 0x43d   :  { %3254 = vmatprep.subr.bf16.mxu1 %v8883_v5  ;;  %v8961_v5 = vld [vmem:[#allocation13 + $0x18c] ss:$16 sps:$4 sm:$0xff]  }
 0x43f   :  { %4239 = vmatpush1.bf16.msra.mxu0 %v8878_v6  ;;  %v8956_v6 = vld [vmem:[#allocation13 + $0x360] ss:$16 sps:$4 sm:$0xff]  }
 0x440   :  { %3255 = vmatpush1.bf16.msra.mxu1 %v8881_v7  ;;  %4240 = vmatprep.subr.bf16.mxu0 %v8886_v8  ;;  %v8959_v7 = vld [vmem:[#allocation13 + $0x188] ss:$16 sps:$4 sm:$0xff]   ;;  %v8964_v8 = vld [vmem:[#allocation13 + $0x384] ss:$16 sps:$4 sm:$0xff]  }
 0x441   :  { %4292 = vmatprep.subr.bf16.mxu1 %v8889_v10  ;;  %v8967_v10 = vld [vmem:[#allocation13 + $0x1ac] ss:$16 sps:$4 sm:$0xff]  }
 0x443   :  { %3257 = vmatmul.mubr.bf16.vlgmr.msra.gmra.mrb[24].mxu1 %v10116_v60  ;;  %4241 = vmatpush1.bf16.msra.mxu0 %v8884_v11  ;;  %v8904_v60 = vld [vmem:[#allocation13 + $0x244] ss:$16 sps:$4 sm:$0xff]   ;;  %v8962_v11 = vld [vmem:[#allocation13 + $0x380] ss:$16 sps:$4 sm:$0xff]  }
 0x444   :  { %4293 = vmatpush1.bf16.msra.mxu1 %v8887_v12  ;;  %4324 = vmatprep.mubr.bf16.mxu1 %v10097_v23  ;;  %v8905_v23 = vld [vmem:[#allocation13 + $0x68] ss:$16 sps:$4 sm:$0xff]  }
 0x445   :  { %4251 = vmatprep.subr.bf16.mxu0 %v8892_v14  ;;  %4294 = vmatprep.subr.bf16.mxu1 %v8895_v17  ;;  %v8965_v12 = vld [vmem:[#allocation13 + $0x1a8] ss:$16 sps:$4 sm:$0xff]   ;;  %v8970_v14 = vld [vmem:[#allocation13 + $0x3a4] ss:$16 sps:$4 sm:$0xff]   ;;  %v8973_v17 = vld [vmem:[#allocation13 + $0x1cc] ss:$16 sps:$4 sm:$0xff]  }
 0x446   :  { %4243 = vmatmul.mubr.bf16.vlgmr.msra.gmra.mrb[20].mxu0 %v10099_v27 }
 0x447   :  { %4252 = vmatpush1.bf16.msra.mxu0 %v8890_v18  ;;  %4283 = vmatprep.mubr.bf16.mxu0 %v10103_v30  ;;  %v8968_v18 = vld [vmem:[#allocation13 + $0x3a0] ss:$16 sps:$4 sm:$0xff]  }
 0x448   :  { %4295 = vmatpush1.bf16.msra.mxu1 %v8893_v20  ;;  %4253 = vmatprep.subr.bf16.mxu0 %v8898_v24  ;;  %v8971_v20 = vld [vmem:[#allocation13 + $0x1c8] ss:$16 sps:$4 sm:$0xff]   ;;  %v8976_v24 = vld [vmem:[#allocation13 + $0x3c4] ss:$16 sps:$4 sm:$0xff]  }
 0x449   :  { %4296 = vmatprep.subr.bf16.mxu1 %v8901_v25  ;;  %v8979_v25 = vld [vmem:[#allocation13 + $0x1ec] ss:$16 sps:$4 sm:$0xff]  }
 0x44b   :  { %4254 = vmatpush1.bf16.msra.mxu0 %v8896_v28  ;;  %v8974_v28 = vld [vmem:[#allocation13 + $0x3c0] ss:$16 sps:$4 sm:$0xff]  }
 0x44c   :  { %4297 = vmatpush1.bf16.msra.mxu1 %v8899_v29  ;;  %4255 = vmatprep.subr.bf16.mxu0 %v8904_v60  ;;  %v8977_v29 = vld [vmem:[#allocation13 + $0x1e8] ss:$16 sps:$4 sm:$0xff]   ;;  %v8982_v60 = vld [vmem:[#allocation13 + $0x3e4] ss:$16 sps:$4 sm:$0xff]  }
 0x44d   :  { %4298 = vmatprep.subr.bf16.mxu1 %v8907_v31  ;;  %v8985_v31 = vld [vmem:[#allocation13 + $0x20c] ss:$16 sps:$4 sm:$0xff]  }
 0x44f   :  { %4256 = vmatpush1.bf16.msra.mxu0 %v8902_v32  ;;  %v8980_v32 = vld [vmem:[#allocation13 + $0x3e0] ss:$16 sps:$4 sm:$0xff]  }
 0x450   :  { %4299 = vmatpush1.bf16.msra.mxu1 %v8905_v23  ;;  %4257 = vmatprep.subr.bf16.mxu0 %v8910_v33  ;;  %v8983_v23 = vld [vmem:[#allocation13 + $0x208] ss:$16 sps:$4 sm:$0xff]   ;;  %v8988_v33 = vld [vmem:[#allocation13 + $0x22c] ss:$16 sps:$4 sm:$0xff]  }
 0x451   :  { %4300 = vmatprep.subr.bf16.mxu1 %v8913_v34  ;;  %v9009_v34 = vld [vmem:[#allocation11 + $0x4] ss:$16 sps:$4 sm:$0xff]  }
 0x453   :  { %4258 = vmatpush1.bf16.msra.mxu0 %v8908_v35  ;;  %v9007_v35 = vld [vmem:[#allocation11] ss:$16 sps:$4 sm:$0xff]  }
 0x454   :  { %4301 = vmatpush1.bf16.msra.mxu1 %v8911_v36  ;;  %4259 = vmatprep.subr.bf16.mxu0 %v8916_v37  ;;  %v8986_v36 = vld [vmem:[#allocation13 + $0x228] ss:$16 sps:$4 sm:$0xff]   ;;  %v9015_v37 = vld [vmem:[#allocation11 + $0x24] ss:$16 sps:$4 sm:$0xff]  }
 0x455   :  { %4302 = vmatprep.subr.bf16.mxu1 %v8919_v38  ;;  %v8991_v38 = vld [vmem:[#allocation13 + $0x24c] ss:$16 sps:$4 sm:$0xff]  }
 0x457   :  { %4260 = vmatpush1.bf16.msra.mxu0 %v8914_v39  ;;  %v9013_v39 = vld [vmem:[#allocation11 + $0x20] ss:$16 sps:$4 sm:$0xff]  }
 0x458   :  { %4303 = vmatpush1.bf16.msra.mxu1 %v8917_v40  ;;  %4261 = vmatprep.subr.bf16.mxu0 %v8922_v41  ;;  %v8989_v40 = vld [vmem:[#allocation13 + $0x248] ss:$16 sps:$4 sm:$0xff]   ;;  %v9021_v41 = vld [vmem:[#allocation11 + $0x44] ss:$16 sps:$4 sm:$0xff]  }
 0x459   :  { %4304 = vmatprep.subr.bf16.mxu1 %v8925_v43  ;;  %v8994_v43 = vld [vmem:[#allocation13 + $0x26c] ss:$16 sps:$4 sm:$0xff]  }
 0x45b   :  { %4262 = vmatpush1.bf16.msra.mxu0 %v8920_v44  ;;  %v8992_v44 = vld [vmem:[#allocation13 + $0x268] ss:$16 sps:$4 sm:$0xff]  }
 0x45c   :  { %4305 = vmatpush1.bf16.msra.mxu1 %v8923_v45  ;;  %4263 = vmatprep.subr.bf16.mxu0 %v8928_v46  ;;  %v8997_v45 = vld [vmem:[#allocation13 + $0x28c] ss:$16 sps:$4 sm:$0xff]   ;;  %v9025_v46 = vld [vmem:[#allocation11 + $0x60] ss:$16 sps:$4 sm:$0xff]  }
 0x45d   :  { %4306 = vmatprep.subr.bf16.mxu1 %v8931_v47  ;;  %v8995_v47 = vld [vmem:[#allocation13 + $0x288] ss:$16 sps:$4 sm:$0xff]  }
 0x45f   :  { %4264 = vmatpush1.bf16.msra.mxu0 %v8926_v48  ;;  %v9033_v48 = vld [vmem:[#allocation11 + $0x84] ss:$16 sps:$4 sm:$0xff]  }
 0x460   :  { %4307 = vmatpush1.bf16.msra.mxu1 %v8929_v49  ;;  %4265 = vmatprep.subr.bf16.mxu0 %v8934_v50  ;;  %v9000_v49 = vld [vmem:[#allocation13 + $0x2ac] ss:$16 sps:$4 sm:$0xff]   ;;  %v9031_v50 = vld [vmem:[#allocation11 + $0x80] ss:$16 sps:$4 sm:$0xff]  }
 0x461   :  { %4308 = vmatprep.subr.bf16.mxu1 %v8937_v51  ;;  %v8998_v51 = vld [vmem:[#allocation13 + $0x2a8] ss:$16 sps:$4 sm:$0xff]  }
 0x463   :  { %4266 = vmatpush1.bf16.msra.mxu0 %v8932_v52  ;;  %v9039_v52 = vld [vmem:[#allocation11 + $0xa4] ss:$16 sps:$4 sm:$0xff]  }
 0x464   :  { %4309 = vmatpush1.bf16.msra.mxu1 %v8935_v53  ;;  %4267 = vmatprep.subr.bf16.mxu0 %v8940_v54  ;;  %v9003_v53 = vld [vmem:[#allocation13 + $0x2cc] ss:$16 sps:$4 sm:$0xff]   ;;  %v9037_v54 = vld [vmem:[#allocation11 + $0xa0] ss:$16 sps:$4 sm:$0xff]  }
 0x465   :  { %4310 = vmatprep.subr.bf16.mxu1 %v8943_v55  ;;  %v9001_v55 = vld [vmem:[#allocation13 + $0x2c8] ss:$16 sps:$4 sm:$0xff]  }
 0x467   :  { %4268 = vmatpush1.bf16.msra.mxu0 %v8938_v56  ;;  %v9045_v56 = vld [vmem:[#allocation11 + $0xc4] ss:$16 sps:$4 sm:$0xff]  }
 0x468   :  { %4311 = vmatpush1.bf16.msra.mxu1 %v8941_v57  ;;  %4269 = vmatprep.subr.bf16.mxu0 %v8946_v58  ;;  %v9006_v57 = vld [vmem:[#allocation13 + $0x2ec] ss:$16 sps:$4 sm:$0xff]   ;;  %v9043_v58 = vld [vmem:[#allocation11 + $0xc0] ss:$16 sps:$4 sm:$0xff]  }
 0x469   :  { %4312 = vmatprep.subr.bf16.mxu1 %v8949_v59  ;;  %v9004_v59 = vld [vmem:[#allocation13 + $0x2e8] ss:$16 sps:$4 sm:$0xff]  }
 0x46b   :  { %4270 = vmatpush1.bf16.msra.mxu0 %v8944_v61  ;;  %v9051_v61 = vld [vmem:[#allocation11 + $0xe4] ss:$16 sps:$4 sm:$0xff]  }
 0x46c   :  { %4313 = vmatpush1.bf16.msra.mxu1 %v8947_v63  ;;  %4271 = vmatprep.subr.bf16.mxu0 %v8952_v0  ;;  %v9012_v63 = vld [vmem:[#allocation13 + $0x30c] ss:$16 sps:$4 sm:$0xff]   ;;  %v9049_v0 = vld [vmem:[#allocation11 + $0xe0] ss:$16 sps:$4 sm:$0xff]  }
 0x46d   :  { %4314 = vmatprep.subr.bf16.mxu1 %v8955_v1  ;;  %v9010_v1 = vld [vmem:[#allocation13 + $0x308] ss:$16 sps:$4 sm:$0xff]  }
 0x46f   :  { %4272 = vmatpush1.bf16.msra.mxu0 %v8950_v2  ;;  %v9057_v2 = vld [vmem:[#allocation11 + $0x104] ss:$16 sps:$4 sm:$0xff]  }
 0x470   :  { %4315 = vmatpush1.bf16.msra.mxu1 %v8953_v3  ;;  %4273 = vmatprep.subr.bf16.mxu0 %v8958_v4  ;;  %v9018_v3 = vld [vmem:[#allocation13 + $0x32c] ss:$16 sps:$4 sm:$0xff]   ;;  %v9055_v4 = vld [vmem:[#allocation11 + $0x100] ss:$16 sps:$4 sm:$0xff]  }
 0x471   :  { %4316 = vmatprep.subr.bf16.mxu1 %v8961_v5  ;;  %v9016_v5 = vld [vmem:[#allocation13 + $0x328] ss:$16 sps:$4 sm:$0xff]  }
 0x473   :  { %4274 = vmatpush1.bf16.msra.mxu0 %v8956_v6  ;;  %v9063_v6 = vld [vmem:[#allocation11 + $0x124] ss:$16 sps:$4 sm:$0xff]  }
 0x474   :  { %4317 = vmatpush1.bf16.msra.mxu1 %v8959_v7  ;;  %4275 = vmatprep.subr.bf16.mxu0 %v8964_v8  ;;  %v9024_v7 = vld [vmem:[#allocation13 + $0x34c] ss:$16 sps:$4 sm:$0xff]   ;;  %v9061_v8 = vld [vmem:[#allocation11 + $0x120] ss:$16 sps:$4 sm:$0xff]  }
 0x475   :  { %4318 = vmatprep.subr.bf16.mxu1 %v8967_v10  ;;  %v9022_v10 = vld [vmem:[#allocation13 + $0x348] ss:$16 sps:$4 sm:$0xff]  }
 0x477   :  { %4276 = vmatpush1.bf16.msra.mxu0 %v8962_v11  ;;  %v9069_v11 = vld [vmem:[#allocation11 + $0x144] ss:$16 sps:$4 sm:$0xff]  }
 0x478   :  { %4319 = vmatpush1.bf16.msra.mxu1 %v8965_v12  ;;  %4277 = vmatprep.subr.bf16.mxu0 %v8970_v14  ;;  %v9030_v12 = vld [vmem:[#allocation13 + $0x36c] ss:$16 sps:$4 sm:$0xff]   ;;  %v9067_v14 = vld [vmem:[#allocation11 + $0x140] ss:$16 sps:$4 sm:$0xff]  }
 0x479   :  { %4320 = vmatprep.subr.bf16.mxu1 %v8973_v17  ;;  %v9028_v17 = vld [vmem:[#allocation13 + $0x368] ss:$16 sps:$4 sm:$0xff]  }
 0x47b   :  { %4278 = vmatpush1.bf16.msra.mxu0 %v8968_v18  ;;  %v9075_v18 = vld [vmem:[#allocation11 + $0x164] ss:$16 sps:$4 sm:$0xff]  }
 0x47c   :  { %4321 = vmatpush1.bf16.msra.mxu1 %v8971_v20  ;;  %4279 = vmatprep.subr.bf16.mxu0 %v8976_v24  ;;  %v9036_v20 = vld [vmem:[#allocation13 + $0x38c] ss:$16 sps:$4 sm:$0xff]   ;;  %v9073_v24 = vld [vmem:[#allocation11 + $0x160] ss:$16 sps:$4 sm:$0xff]  }
 0x47d   :  { %4322 = vmatprep.subr.bf16.mxu1 %v8979_v25  ;;  %v9034_v25 = vld [vmem:[#allocation13 + $0x388] ss:$16 sps:$4 sm:$0xff]  }
 0x47f   :  { %4280 = vmatpush1.bf16.msra.mxu0 %v8974_v28  ;;  %v9081_v28 = vld [vmem:[#allocation11 + $0x184] ss:$16 sps:$4 sm:$0xff]  }
 0x480   :  { %4323 = vmatpush1.bf16.msra.mxu1 %v8977_v29  ;;  %4281 = vmatprep.subr.bf16.mxu0 %v8982_v60  ;;  %v9042_v29 = vld [vmem:[#allocation13 + $0x3ac] ss:$16 sps:$4 sm:$0xff]   ;;  %v9079_v60 = vld [vmem:[#allocation11 + $0x180] ss:$16 sps:$4 sm:$0xff]  }
 0x481   :  { %4333 = vmatprep.subr.bf16.mxu1 %v8985_v31  ;;  %v9040_v31 = vld [vmem:[#allocation13 + $0x3a8] ss:$16 sps:$4 sm:$0xff]  }
 0x483   :  { %4282 = vmatpush1.bf16.msra.mxu0 %v8980_v32  ;;  %4325 = vmatmul.mubr.bf16.vlgmr.msra.gmra.mrb[28].mxu1 %v10099_v27  ;;  %v9019_v27 = vld [vmem:[#allocation11 + $0x40] ss:$16 sps:$4 sm:$0xff]   ;;  %v9087_v32 = vld [vmem:[#allocation11 + $0x1a4] ss:$16 sps:$4 sm:$0xff]  }
 0x484   :  { %4334 = vmatpush1.bf16.msra.mxu1 %v8983_v23  ;;  %4365 = vmatprep.mubr.bf16.mxu1 %v10103_v30  ;;  %v9027_v30 = vld [vmem:[#allocation11 + $0x64] ss:$16 sps:$4 sm:$0xff]   ;;  %v9048_v23 = vld [vmem:[#allocation13 + $0x3cc] ss:$16 sps:$4 sm:$0xff]  }
 0x485   :  { %4335 = vmatprep.subr.bf16.mxu1 %v8988_v33  ;;  %5014 = vmatprep.subr.bf16.mxu0 %v9009_v34  ;;  %v9085_v33 = vld [vmem:[#allocation11 + $0x1a0] ss:$16 sps:$4 sm:$0xff]   ;;  %v9046_v34 = vld [vmem:[#allocation13 + $0x3c8] ss:$16 sps:$4 sm:$0xff]  }
 0x486   :  { %4284 = vmatmul.mubr.bf16.vlgmr.msra.gmra.mrb[20].mxu0 %v10110_v62 }
 0x487   :  { %5015 = vmatpush1.bf16.msra.mxu0 %v9007_v35  ;;  %v9093_v35 = vld [vmem:[#allocation11 + $0x1c4] ss:$16 sps:$4 sm:$0xff]  }
 0x488   :  { %4336 = vmatpush1.bf16.msra.mxu1 %v8986_v36  ;;  %5016 = vmatprep.subr.bf16.mxu0 %v9015_v37  ;;  %v9054_v37 = vld [vmem:[#allocation13 + $0x3ec] ss:$16 sps:$4 sm:$0xff]  }
 0x489   :  { %4337 = vmatprep.subr.bf16.mxu1 %v8991_v38 }
 0x48b   :  { %5017 = vmatpush1.bf16.msra.mxu0 %v9013_v39 }
 0x48c   :  { %4338 = vmatpush1.bf16.msra.mxu1 %v8989_v40  ;;  %5018 = vmatprep.subr.bf16.mxu0 %v9021_v41  ;;  %v9091_v40 = vld [vmem:[#allocation11 + $0x1c0] ss:$16 sps:$4 sm:$0xff]  }
 0x48d   :  { %4339 = vmatprep.subr.bf16.mxu1 %v8994_v43  ;;  %v9052_v43 = vld [vmem:[#allocation13 + $0x3e8] ss:$16 sps:$4 sm:$0xff]  }
 0x48f   :  { %5019 = vmatpush1.bf16.msra.mxu0 %v9019_v27  ;;  %v9099_v27 = vld [vmem:[#allocation11 + $0x1e4] ss:$16 sps:$4 sm:$0xff]  }
 0x490   :  { %4340 = vmatpush1.bf16.msra.mxu1 %v8992_v44  ;;  %5020 = vmatprep.subr.bf16.mxu0 %v9027_v30  ;;  %v9060_v44 = vld [vmem:[#allocation11 + $0xc] ss:$16 sps:$4 sm:$0xff]   ;;  %v9097_v30 = vld [vmem:[#allocation11 + $0x1e0] ss:$16 sps:$4 sm:$0xff]  }
 0x491   :  { %4341 = vmatprep.subr.bf16.mxu1 %v8997_v45  ;;  %v9058_v45 = vld [vmem:[#allocation11 + $0x8] ss:$16 sps:$4 sm:$0xff]  }
 0x493   :  { %5021 = vmatpush1.bf16.msra.mxu0 %v9025_v46  ;;  %v9105_v46 = vld [vmem:[#allocation11 + $0x204] ss:$16 sps:$4 sm:$0xff]  }
 0x494   :  { %4342 = vmatpush1.bf16.msra.mxu1 %v8995_v47  ;;  %5022 = vmatprep.subr.bf16.mxu0 %v9033_v48  ;;  %v9066_v47 = vld [vmem:[#allocation11 + $0x2c] ss:$16 sps:$4 sm:$0xff]   ;;  %v9064_v48 = vld [vmem:[#allocation11 + $0x28] ss:$16 sps:$4 sm:$0xff]  }
 0x495   :  { %4343 = vmatprep.subr.bf16.mxu1 %v9000_v49  ;;  %v9072_v49 = vld [vmem:[#allocation11 + $0x4c] ss:$16 sps:$4 sm:$0xff]  }
 0x497   :  { %5023 = vmatpush1.bf16.msra.mxu0 %v9031_v50  ;;  %v9070_v50 = vld [vmem:[#allocation11 + $0x48] ss:$16 sps:$4 sm:$0xff]  }
 0x498   :  { %4344 = vmatpush1.bf16.msra.mxu1 %v8998_v51  ;;  %5024 = vmatprep.subr.bf16.mxu0 %v9039_v52  ;;  %v9078_v51 = vld [vmem:[#allocation11 + $0x6c] ss:$16 sps:$4 sm:$0xff]   ;;  %v9076_v52 = vld [vmem:[#allocation11 + $0x68] ss:$16 sps:$4 sm:$0xff]  }
 0x499   :  { %4345 = vmatprep.subr.bf16.mxu1 %v9003_v53  ;;  %v9084_v53 = vld [vmem:[#allocation11 + $0x8c] ss:$16 sps:$4 sm:$0xff]  }
 0x49b   :  { %5025 = vmatpush1.bf16.msra.mxu0 %v9037_v54  ;;  %v9082_v54 = vld [vmem:[#allocation11 + $0x88] ss:$16 sps:$4 sm:$0xff]  }
 0x49c   :  { %4346 = vmatpush1.bf16.msra.mxu1 %v9001_v55  ;;  %5026 = vmatprep.subr.bf16.mxu0 %v9045_v56  ;;  %v9090_v55 = vld [vmem:[#allocation11 + $0xac] ss:$16 sps:$4 sm:$0xff]  }
 0x49d   :  { %4347 = vmatprep.subr.bf16.mxu1 %v9006_v57  ;;  %v9096_v56 = vld [vmem:[#allocation11 + $0xcc] ss:$16 sps:$4 sm:$0xff]  }
 0x49f   :  { %5027 = vmatpush1.bf16.msra.mxu0 %v9043_v58 }
 0x4a0   :  { %4348 = vmatpush1.bf16.msra.mxu1 %v9004_v59  ;;  %5028 = vmatprep.subr.bf16.mxu0 %v9051_v61 }
 0x4a1   :  { %4349 = vmatprep.subr.bf16.mxu1 %v9012_v63 }
 0x4a3   :  { %5029 = vmatpush1.bf16.msra.mxu0 %v9049_v0  ;;  %v9094_v0 = vld [vmem:[#allocation11 + $0xc8] ss:$16 sps:$4 sm:$0xff]  }
 0x4a4   :  { %4350 = vmatpush1.bf16.msra.mxu1 %v9010_v1  ;;  %5030 = vmatprep.subr.bf16.mxu0 %v9057_v2 }
 0x4a5   :  { %4351 = vmatprep.subr.bf16.mxu1 %v9018_v3 }
 0x4a7   :  { %5031 = vmatpush1.bf16.msra.mxu0 %v9055_v4  ;;  %v9102_v4 = vld [vmem:[#allocation11 + $0xec] ss:$16 sps:$4 sm:$0xff]  }
 0x4a8   :  { %4352 = vmatpush1.bf16.msra.mxu1 %v9016_v5  ;;  %5032 = vmatprep.subr.bf16.mxu0 %v9063_v6 }
 0x4a9   :  { %4353 = vmatprep.subr.bf16.mxu1 %v9024_v7 }
 0x4ab   :  { %5033 = vmatpush1.bf16.msra.mxu0 %v9061_v8 }
 0x4ac   :  { %4354 = vmatpush1.bf16.msra.mxu1 %v9022_v10  ;;  %5034 = vmatprep.subr.bf16.mxu0 %v9069_v11 }
 0x4ad   :  { %4355 = vmatprep.subr.bf16.mxu1 %v9030_v12  ;;  %v9103_v12 = vld [vmem:[#allocation11 + $0x200] ss:$16 sps:$4 sm:$0xff]  }
 0x4af   :  { %5035 = vmatpush1.bf16.msra.mxu0 %v9067_v14  ;;  %v9108_v14 = vld [vmem:[#allocation11 + $0x10c] ss:$16 sps:$4 sm:$0xff]  }
 0x4b0   :  { %4356 = vmatpush1.bf16.msra.mxu1 %v9028_v17  ;;  %5036 = vmatprep.subr.bf16.mxu0 %v9075_v18  ;;  %v9111_v18 = vld [vmem:[#allocation11 + $0x224] ss:$16 sps:$4 sm:$0xff]  }
 0x4b1   :  { %4357 = vmatprep.subr.bf16.mxu1 %v9036_v20  ;;  %v9106_v20 = vld [vmem:[#allocation11 + $0x108] ss:$16 sps:$4 sm:$0xff]  }
 0x4b3   :  { %5037 = vmatpush1.bf16.msra.mxu0 %v9073_v24  ;;  %v9114_v24 = vld [vmem:[#allocation11 + $0x12c] ss:$16 sps:$4 sm:$0xff]  }
 0x4b4   :  { %4358 = vmatpush1.bf16.msra.mxu1 %v9034_v25  ;;  %5038 = vmatprep.subr.bf16.mxu0 %v9081_v28  ;;  %v9109_v25 = vld [vmem:[#allocation11 + $0x220] ss:$16 sps:$4 sm:$0xff]   ;;  %v9117_v28 = vld [vmem:[#allocation11 + $0x244] ss:$16 sps:$4 sm:$0xff]  }
 0x4b5   :  { %4359 = vmatprep.subr.bf16.mxu1 %v9042_v29  ;;  %v9112_v29 = vld [vmem:[#allocation11 + $0x128] ss:$16 sps:$4 sm:$0xff]  }
 0x4b7   :  { %5039 = vmatpush1.bf16.msra.mxu0 %v9079_v60  ;;  %v9120_v60 = vld [vmem:[#allocation11 + $0x14c] ss:$16 sps:$4 sm:$0xff]  }
 0x4b8   :  { %4360 = vmatpush1.bf16.msra.mxu1 %v9040_v31  ;;  %5040 = vmatprep.subr.bf16.mxu0 %v9087_v32  ;;  %v9115_v31 = vld [vmem:[#allocation11 + $0x240] ss:$16 sps:$4 sm:$0xff]   ;;  %v9123_v32 = vld [vmem:[#allocation11 + $0x264] ss:$16 sps:$4 sm:$0xff]  }
 0x4b9   :  { %v3217_v36 = vpop.f32.mrb[12].mxu0  ;;  %4361 = vmatprep.subr.bf16.mxu1 %v9048_v23  ;;  %v9118_v23 = vld [vmem:[#allocation11 + $0x148] ss:$16 sps:$4 sm:$0xff]  }
 0x4ba   :  { %v3219_v38 = vpop.f32.mrb[13].mxu0 }
 0x4bb   :  { %v3221_v39 = vpop.f32.mrb[14].mxu0  ;;  %5041 = vmatpush1.bf16.msra.mxu0 %v9085_v33  ;;  %v9126_v33 = vld [vmem:[#allocation11 + $0x16c] ss:$16 sps:$4 sm:$0xff]  }
 0x4bc   :  { %4362 = vmatpush1.bf16.msra.mxu1 %v9046_v34  ;;  %v3222_v41 = vpop.f32.mrb[15].mxu0  ;;  %5042 = vmatprep.subr.bf16.mxu0 %v9093_v35  ;;  %v9121_v34 = vld [vmem:[#allocation11 + $0x260] ss:$16 sps:$4 sm:$0xff]   ;;  %v9129_v35 = vld [vmem:[#allocation11 + $0x284] ss:$16 sps:$4 sm:$0xff]  }
 0x4bd   :  { %4363 = vmatprep.subr.bf16.mxu1 %v9054_v37  ;;  %v9132_v37 = vld [vmem:[#allocation11 + $0x18c] ss:$16 sps:$4 sm:$0xff]   ;;  %v9135_v39 = vld [vmem:[#allocation11 + $0x2a4] ss:$16 sps:$4 sm:$0xff]  }
 0x4be   :  { %v9138_v41 = vld [vmem:[#allocation11 + $0x1ac] ss:$16 sps:$4 sm:$0xff]  }
 0x4bf   :  { %5043 = vmatpush1.bf16.msra.mxu0 %v9091_v40  ;;  %v9130_v40 = vld [vmem:[#allocation11 + $0x188] ss:$16 sps:$4 sm:$0xff]  }
 0x4c0   :  { %4364 = vmatpush1.bf16.msra.mxu1 %v9052_v43  ;;  %5044 = vmatprep.subr.bf16.mxu0 %v9099_v27  ;;  %v9133_v43 = vld [vmem:[#allocation11 + $0x2a0] ss:$16 sps:$4 sm:$0xff]   ;;  %v9141_v27 = vld [vmem:[#allocation11 + $0x2c4] ss:$16 sps:$4 sm:$0xff]  }
 0x4c1   :  { %5096 = vmatprep.subr.bf16.mxu1 %v9060_v44  ;;  %v9136_v44 = vld [vmem:[#allocation11 + $0x1a8] ss:$16 sps:$4 sm:$0xff]  }
 0x4c3   :  { %4366 = vmatmul.mubr.bf16.vlgmr.msra.gmra.mrb[28].mxu1 %v10110_v62  ;;  %5045 = vmatpush1.bf16.msra.mxu0 %v9097_v30  ;;  %v9088_v62 = vld [vmem:[#allocation11 + $0xa8] ss:$16 sps:$4 sm:$0xff]   ;;  %v9144_v30 = vld [vmem:[#allocation11 + $0x1cc] ss:$16 sps:$4 sm:$0xff]  }
 0x4c4   :  { %5097 = vmatpush1.bf16.msra.mxu1 %v9058_v45  ;;  %5055 = vmatprep.subr.bf16.mxu0 %v9105_v46  ;;  %v9139_v45 = vld [vmem:[#allocation11 + $0x2c0] ss:$16 sps:$4 sm:$0xff]   ;;  %v9147_v46 = vld [vmem:[#allocation11 + $0x2e4] ss:$16 sps:$4 sm:$0xff]  }
 0x4c5   :  { %5098 = vmatprep.subr.bf16.mxu1 %v9066_v47  ;;  %v9142_v47 = vld [vmem:[#allocation11 + $0x1c8] ss:$16 sps:$4 sm:$0xff]  }
 0x4c8   :  { %5099 = vmatpush1.bf16.msra.mxu1 %v9064_v48  ;;  %v9150_v48 = vld [vmem:[#allocation11 + $0x1ec] ss:$16 sps:$4 sm:$0xff]  }
 0x4c9   :  { %5100 = vmatprep.subr.bf16.mxu1 %v9072_v49  ;;  %v9145_v49 = vld [vmem:[#allocation11 + $0x2e0] ss:$16 sps:$4 sm:$0xff]  }
 0x4cc   :  { %5101 = vmatpush1.bf16.msra.mxu1 %v9070_v50  ;;  %v9153_v50 = vld [vmem:[#allocation11 + $0x304] ss:$16 sps:$4 sm:$0xff]  }
 0x4cd   :  { %5102 = vmatprep.subr.bf16.mxu1 %v9078_v51  ;;  %v9148_v51 = vld [vmem:[#allocation11 + $0x1e8] ss:$16 sps:$4 sm:$0xff]  }
 0x4d0   :  { %5103 = vmatpush1.bf16.msra.mxu1 %v9076_v52  ;;  %v9156_v52 = vld [vmem:[#allocation11 + $0x20c] ss:$16 sps:$4 sm:$0xff]  }
 0x4d1   :  { %5104 = vmatprep.subr.bf16.mxu1 %v9084_v53  ;;  %v9151_v53 = vld [vmem:[#allocation11 + $0x300] ss:$16 sps:$4 sm:$0xff]  }
 0x4d4   :  { %5105 = vmatpush1.bf16.msra.mxu1 %v9082_v54  ;;  %v9159_v54 = vld [vmem:[#allocation11 + $0x324] ss:$16 sps:$4 sm:$0xff]  }
 0x4d5   :  { %5106 = vmatprep.subr.bf16.mxu1 %v9090_v55  ;;  %v9154_v55 = vld [vmem:[#allocation11 + $0x208] ss:$16 sps:$4 sm:$0xff]  }
 0x4d6   :  { %v3176_v57 = vpop.f32.mrb[20].mxu1 }
 0x4d7   :  { %v3177_v58 = vadd.f32 %v3176_v57, %v10120_v13  ;;  %v3178_v59 = vpop.f32.mrb[21].mxu1  ;;  %v9100_v13 = vld [vmem:[#allocation11 + $0xe8] ss:$16 sps:$4 sm:$0xff]   ;;  %v9165_v57 = vld [vmem:[#allocation11 + $0x344] ss:$16 sps:$4 sm:$0xff]  }
 0x4d8   :  { %v3179_v61 = vadd.f32 %v3178_v59, %v10122_v19  ;;  %5107 = vmatpush1.bf16.msra.mxu1 %v9088_v62  ;;  %v3180_v63 = vpop.f32.mrb[22].mxu1  ;;  %v9162_v62 = vld [vmem:[#allocation11 + $0x22c] ss:$16 sps:$4 sm:$0xff]  }
 0x4d9   :  { %v3218_v1 = vadd.f32 %v3217_v36, %v3177_v58  ;;  %v10138_v2 = vpop.f32.mrb[16].mxu0  ;;  %v3181_v3 = vpop.f32.mrb[23].mxu1  ;;  %5108 = vmatprep.subr.bf16.mxu1 %v9096_v56  ;;  %v9124_v36 = vld [vmem:[#allocation11 + $0x168] ss:$16 sps:$4 sm:$0xff]   ;;  %v9157_v56 = vld [vmem:[#allocation11 + $0x320] ss:$16 sps:$4 sm:$0xff]  }
 0x4da   :  { %v3220_v5 = vadd.f32 %v3219_v38, %v3179_v61  ;;  %v10140_v6 = vpop.f32.mrb[17].mxu0  ;;  %v9127_v38 = vld [vmem:[#allocation11 + $0x280] ss:$16 sps:$4 sm:$0xff]   ;;  %v9160_v58 = vld [vmem:[#allocation11 + $0x228] ss:$16 sps:$4 sm:$0xff]  }
 0x4db   :  { %v3306_v7 = vmax.f32 %v3218_v1, 0.0  ;;  %v3303_v8 = vpop.f32.mrb[18].mxu0  ;;  %v9168_v59 = vld [vmem:[#allocation11 + $0x24c] ss:$16 sps:$4 sm:$0xff]   ;;  %v9163_v61 = vld [vmem:[#allocation11 + $0x340] ss:$16 sps:$4 sm:$0xff]  }
 0x4dc   :  { %v3307_v10 = vmax.f32 %v3220_v5, 0.0  ;;  %v3304_v11 = vpop.f32.mrb[19].mxu0  ;;  %5109 = vmatpush1.bf16.msra.mxu1 %v9094_v0  ;;  %v9171_v63 = vld [vmem:[#allocation11 + $0x364] ss:$16 sps:$4 sm:$0xff]   ;;  %v9166_v0 = vld [vmem:[#allocation11 + $0x248] ss:$16 sps:$4 sm:$0xff]  }
 0x4dd   :  { %5110 = vmatprep.subr.bf16.mxu1 %v9102_v4  ;;  %v10142_v17 = vpack.c.bf16 %v3306_v7, %v3306_v7  ;;  %v9174_v1 = vld [vmem:[#allocation11 + $0x26c] ss:$16 sps:$4 sm:$0xff]   ;;  %v9169_v3 = vld [vmem:[#allocation11 + $0x360] ss:$16 sps:$4 sm:$0xff]   ;;  %v9177_v4 = vld [vmem:[#allocation11 + $0x384] ss:$16 sps:$4 sm:$0xff]  }
 0x4de   :  { %v3311_v19 = vpack.c.bf16 %v3307_v10, %v3307_v10  ;;  %v9172_v5 = vld [vmem:[#allocation11 + $0x268] ss:$16 sps:$4 sm:$0xff]   ;;  %v9180_v7 = vld [vmem:[#allocation11 + $0x28c] ss:$16 sps:$4 sm:$0xff]   ;;  %v9175_v8 = vld [vmem:[#allocation11 + $0x380] ss:$16 sps:$4 sm:$0xff]  }
 0x4df   :  { %v9183_v10 = vld [vmem:[#allocation11 + $0x3a4] ss:$16 sps:$4 sm:$0xff]   ;;  %v9178_v11 = vld [vmem:[#allocation11 + $0x288] ss:$16 sps:$4 sm:$0xff]  }
 0x4e0   :  { %5111 = vmatpush1.bf16.msra.mxu1 %v9100_v13  ;;  %5046 = vmatprep.mubr.bf16.mxu0 %v3311_v19  ;;  %v9186_v13 = vld [vmem:[#allocation11 + $0x2ac] ss:$16 sps:$4 sm:$0xff]  }
 0x4e1   :  { %5128 = vmatprep.mubr.bf16.mxu1 %v3311_v19  ;;  %5047 = vmatmul.mubr.bf16.vlgmr.msra.gmra.mrb[20].mxu0 %v10142_v17  ;;  %v9181_v19 = vld [vmem:[#allocation11 + $0x3a0] ss:$16 sps:$4 sm:$0xff]  }
 0x4e2   :  { %5056 = vmatpush1.bf16.msra.mxu0 %v9103_v12  ;;  %5112 = vmatprep.subr.bf16.mxu1 %v9108_v14  ;;  %v9189_v12 = vld [vmem:[#allocation11 + $0x3c4] ss:$16 sps:$4 sm:$0xff]   ;;  %v9184_v14 = vld [vmem:[#allocation11 + $0x2a8] ss:$16 sps:$4 sm:$0xff]  }
 0x4e3   :  { %5057 = vmatprep.subr.bf16.mxu0 %v9111_v18 }
 0x4e4   :  { %5113 = vmatpush1.bf16.msra.mxu1 %v9106_v20  ;;  %v9187_v20 = vld [vmem:[#allocation11 + $0x3c0] ss:$16 sps:$4 sm:$0xff]  }
 0x4e5   :  { %5114 = vmatprep.subr.bf16.mxu1 %v9114_v24 }
 0x4e6   :  { %5058 = vmatpush1.bf16.msra.mxu0 %v9109_v25 }
 0x4e7   :  { %5059 = vmatprep.subr.bf16.mxu0 %v9117_v28  ;;  %v9195_v28 = vld [vmem:[#allocation11 + $0x3e4] ss:$16 sps:$4 sm:$0xff]  }
 0x4e8   :  { %5115 = vmatpush1.bf16.msra.mxu1 %v9112_v29 }
 0x4e9   :  { %5116 = vmatprep.subr.bf16.mxu1 %v9120_v60 }
 0x4ea   :  { %5060 = vmatpush1.bf16.msra.mxu0 %v9115_v31  ;;  %v9190_v31 = vld [vmem:[#allocation11 + $0x2c8] ss:$16 sps:$4 sm:$0xff]  }
 0x4eb   :  { %5061 = vmatprep.subr.bf16.mxu0 %v9123_v32 }
 0x4ec   :  { %5117 = vmatpush1.bf16.msra.mxu1 %v9118_v23 }
 0x4ed   :  { %5118 = vmatprep.subr.bf16.mxu1 %v9126_v33  ;;  %v9198_v33 = vld [vmem:[#allocation11 + $0x2ec] ss:$16 sps:$4 sm:$0xff]  }
 0x4ee   :  { %5062 = vmatpush1.bf16.msra.mxu0 %v9121_v34 }
 0x4ef   :  { %5063 = vmatprep.subr.bf16.mxu0 %v9129_v35  ;;  %v9193_v35 = vld [vmem:[#allocation11 + $0x3e0] ss:$16 sps:$4 sm:$0xff]  }
 0x4f0   :  { %5119 = vmatpush1.bf16.msra.mxu1 %v9124_v36 }
 0x4f1   :  { %5120 = vmatprep.subr.bf16.mxu1 %v9132_v37 }
 0x4f2   :  { %5064 = vmatpush1.bf16.msra.mxu0 %v9127_v38  ;;  %v9196_v38 = vld [vmem:[#allocation11 + $0x2e8] ss:$16 sps:$4 sm:$0xff]  }
 0x4f3   :  { %5065 = vmatprep.subr.bf16.mxu0 %v9135_v39  ;;  %v9199_v39 = vld [vmem:[#allocation16] ss:$12 sps:$4 sm:$0xff]  }
 0x4f4   :  { %5121 = vmatpush1.bf16.msra.mxu1 %v9130_v40 }
 0x4f5   :  { %5122 = vmatprep.subr.bf16.mxu1 %v9138_v41  ;;  %v9207_v41 = vld [vmem:[#allocation16 + $0x1c] ss:$12 sps:$4 sm:$0xff]  }
 0x4f6   :  { %5066 = vmatpush1.bf16.msra.mxu0 %v9133_v43  ;;  %v9210_v43 = vld [vmem:[#allocation11 + $0x32c] ss:$16 sps:$4 sm:$0xff]  }
 0x4f7   :  { %5067 = vmatprep.subr.bf16.mxu0 %v9141_v27  ;;  %v9205_v27 = vld [vmem:[#allocation16 + $0x18] ss:$12 sps:$4 sm:$0xff]  }
 0x4f8   :  { %5123 = vmatpush1.bf16.msra.mxu1 %v9136_v44  ;;  %v9213_v44 = vld [vmem:[#allocation16 + $0x34] ss:$12 sps:$4 sm:$0xff]  }
 0x4f9   :  { %5124 = vmatprep.subr.bf16.mxu1 %v9144_v30  ;;  %v9208_v30 = vld [vmem:[#allocation11 + $0x328] ss:$16 sps:$4 sm:$0xff]  }
 0x4fa   :  { %5068 = vmatpush1.bf16.msra.mxu0 %v9139_v45  ;;  %v9216_v45 = vld [vmem:[#allocation11 + $0x34c] ss:$16 sps:$4 sm:$0xff]  }
 0x4fb   :  { %5069 = vmatprep.subr.bf16.mxu0 %v9147_v46  ;;  %v9211_v46 = vld [vmem:[#allocation16 + $0x30] ss:$12 sps:$4 sm:$0xff]  }
 0x4fc   :  { %5125 = vmatpush1.bf16.msra.mxu1 %v9142_v47  ;;  %v9219_v47 = vld [vmem:[#allocation16 + $0x4c] ss:$12 sps:$4 sm:$0xff]  }
 0x4fd   :  { %5126 = vmatprep.subr.bf16.mxu1 %v9150_v48  ;;  %v9214_v48 = vld [vmem:[#allocation11 + $0x348] ss:$16 sps:$4 sm:$0xff]  }
 0x4fe   :  { %5070 = vmatpush1.bf16.msra.mxu0 %v9145_v49  ;;  %v9222_v49 = vld [vmem:[#allocation11 + $0x36c] ss:$16 sps:$4 sm:$0xff]  }
 0x4ff   :  { %5071 = vmatprep.subr.bf16.mxu0 %v9153_v50  ;;  %v9217_v50 = vld [vmem:[#allocation16 + $0x48] ss:$12 sps:$4 sm:$0xff]  }
 0x500   :  { %5127 = vmatpush1.bf16.msra.mxu1 %v9148_v51  ;;  %v9225_v51 = vld [vmem:[#allocation16 + $0x64] ss:$12 sps:$4 sm:$0xff]  }
 0x501   :  { %5137 = vmatprep.subr.bf16.mxu1 %v9156_v52  ;;  %v9220_v52 = vld [vmem:[#allocation11 + $0x368] ss:$16 sps:$4 sm:$0xff]  }
 0x502   :  { %5072 = vmatpush1.bf16.msra.mxu0 %v9151_v53  ;;  %v9228_v53 = vld [vmem:[#allocation11 + $0x38c] ss:$16 sps:$4 sm:$0xff]  }
 0x503   :  { %5129 = vmatmul.mubr.bf16.vlgmr.msra.gmra.mrb[28].mxu1 %v10142_v17  ;;  %5073 = vmatprep.subr.bf16.mxu0 %v9159_v54  ;;  %v9192_v17 = vld [vmem:[#allocation11 + $0x2cc] ss:$16 sps:$4 sm:$0xff]  }
 0x504   :  { %5138 = vmatpush1.bf16.msra.mxu1 %v9154_v55  ;;  %v9223_v54 = vld [vmem:[#allocation16 + $0x60] ss:$12 sps:$4 sm:$0xff]   ;;  %v9231_v55 = vld [vmem:[#allocation16 + $0x7c] ss:$12 sps:$4 sm:$0xff]  }
 0x505   :  { %5139 = vmatprep.subr.bf16.mxu1 %v9162_v62  ;;  %v9226_v62 = vld [vmem:[#allocation11 + $0x388] ss:$16 sps:$4 sm:$0xff]  }
 0x506   :  { %5074 = vmatpush1.bf16.msra.mxu0 %v9157_v56  ;;  %v9234_v56 = vld [vmem:[#allocation11 + $0x3ac] ss:$16 sps:$4 sm:$0xff]  }
 0x507   :  { %5075 = vmatprep.subr.bf16.mxu0 %v9165_v57  ;;  %v9229_v57 = vld [vmem:[#allocation16 + $0x78] ss:$12 sps:$4 sm:$0xff]  }
 0x508   :  { %5140 = vmatpush1.bf16.msra.mxu1 %v9160_v58  ;;  %v9237_v58 = vld [vmem:[#allocation16 + $0x94] ss:$12 sps:$4 sm:$0xff]  }
 0x509   :  { %5141 = vmatprep.subr.bf16.mxu1 %v9168_v59  ;;  %v9232_v59 = vld [vmem:[#allocation11 + $0x3a8] ss:$16 sps:$4 sm:$0xff]  }
 0x50a   :  { %5076 = vmatpush1.bf16.msra.mxu0 %v9163_v61  ;;  %v9240_v61 = vld [vmem:[#allocation11 + $0x3cc] ss:$16 sps:$4 sm:$0xff]  }
 0x50b   :  { %5077 = vmatprep.subr.bf16.mxu0 %v9171_v63  ;;  %v9235_v63 = vld [vmem:[#allocation16 + $0x90] ss:$12 sps:$4 sm:$0xff]  }
 0x50c   :  { %5142 = vmatpush1.bf16.msra.mxu1 %v9166_v0  ;;  %v9243_v0 = vld [vmem:[#allocation16 + $0xac] ss:$12 sps:$4 sm:$0xff]  }
 0x50d   :  { %5143 = vmatprep.subr.bf16.mxu1 %v9174_v1  ;;  %v9238_v1 = vld [vmem:[#allocation11 + $0x3c8] ss:$16 sps:$4 sm:$0xff]  }
 0x50e   :  { %5078 = vmatpush1.bf16.msra.mxu0 %v9169_v3  ;;  %v9246_v3 = vld [vmem:[#allocation11 + $0x3ec] ss:$16 sps:$4 sm:$0xff]  }
 0x50f   :  { %5079 = vmatprep.subr.bf16.mxu0 %v9177_v4  ;;  %v9241_v4 = vld [vmem:[#allocation16 + $0xa8] ss:$12 sps:$4 sm:$0xff]  }
 0x510   :  { %5144 = vmatpush1.bf16.msra.mxu1 %v9172_v5  ;;  %v9249_v5 = vld [vmem:[#allocation16 + $0xc4] ss:$12 sps:$4 sm:$0xff]  }
 0x511   :  { %5145 = vmatprep.subr.bf16.mxu1 %v9180_v7  ;;  %v9244_v7 = vld [vmem:[#allocation11 + $0x3e8] ss:$16 sps:$4 sm:$0xff]  }
 0x512   :  { %5080 = vmatpush1.bf16.msra.mxu0 %v9175_v8  ;;  %v9250_v8 = vld [vmem:[#allocation16 + $0xc8] ss:$12 sps:$4 sm:$0xff]  }
 0x513   :  { %5081 = vmatprep.subr.bf16.mxu0 %v9183_v10  ;;  %v9247_v10 = vld [vmem:[#allocation16 + $0xc0] ss:$12 sps:$4 sm:$0xff]  }
 0x514   :  { %5146 = vmatpush1.bf16.msra.mxu1 %v9178_v11  ;;  %v9254_v11 = vld [vmem:[#allocation16 + $0xdc] ss:$12 sps:$4 sm:$0xff]  }
 0x515   :  { %5147 = vmatprep.subr.bf16.mxu1 %v9186_v13  ;;  %v9251_v13 = vld [vmem:[#allocation16 + $0x8] ss:$12 sps:$4 sm:$0xff]  }
 0x516   :  { %v3258_v18 = vpop.f32.mrb[24].mxu1  ;;  %5082 = vmatpush1.bf16.msra.mxu0 %v9181_v19  ;;  %v9255_v19 = vld [vmem:[#allocation16 + $0xe0] ss:$12 sps:$4 sm:$0xff]  }
 0x517   :  { %v3259_v24 = vadd.f32 %v3258_v18, %v10124_v21  ;;  %v3260_v25 = vpop.f32.mrb[25].mxu1  ;;  %5083 = vmatprep.subr.bf16.mxu0 %v9189_v12  ;;  %v9201_v21 = vld [vmem:[#allocation16 + $0x4] ss:$12 sps:$4 sm:$0xff]  }
 0x518   :  { %v3261_v29 = vadd.f32 %v3260_v25, %v10126_v22  ;;  %v3262_v60 = vpop.f32.mrb[26].mxu1  ;;  %5148 = vmatpush1.bf16.msra.mxu1 %v9184_v14  ;;  %v9252_v12 = vld [vmem:[#allocation16 + $0xd8] ss:$12 sps:$4 sm:$0xff]   ;;  %v9259_v14 = vld [vmem:[#allocation16 + $0xf4] ss:$12 sps:$4 sm:$0xff]  }
 0x519   :  { %v3300_v32 = vadd.f32 %v10138_v2, %v3259_v24  ;;  %v3263_v23 = vpop.f32.mrb[27].mxu1  ;;  %5149 = vmatprep.subr.bf16.mxu1 %v9192_v17  ;;  %v9204_v2 = vld [vmem:[#allocation11 + $0x30c] ss:$16 sps:$4 sm:$0xff]   ;;  %v9260_v18 = vld [vmem:[#allocation16 + $0xf8] ss:$12 sps:$4 sm:$0xff]  }
 0x51a   :  { %v3302_v34 = vadd.f32 %v10140_v6, %v3261_v29  ;;  %5084 = vmatpush1.bf16.msra.mxu0 %v9187_v20  ;;  %v9202_v6 = vld [vmem:[#allocation11 + $0x308] ss:$16 sps:$4 sm:$0xff]   ;;  %v9256_v17 = vld [vmem:[#allocation16 + $0x20] ss:$12 sps:$4 sm:$0xff]   ;;  %v9257_v20 = vld [vmem:[#allocation16 + $0xf0] ss:$12 sps:$4 sm:$0xff]  }
 0x51b   :  { %v3308_v36 = vmax.f32 %v3300_v32, 0.0  ;;  %5085 = vmatprep.subr.bf16.mxu0 %v9195_v28  ;;  %v9264_v24 = vld [vmem:[#allocation16 + $0x10c] ss:$12 sps:$4 sm:$0xff]   ;;  %v9265_v28 = vld [vmem:[#allocation16 + $0x110] ss:$12 sps:$4 sm:$0xff]  }
 0x51c   :  { %v3309_v37 = vmax.f32 %v3302_v34, 0.0  ;;  %5150 = vmatpush1.bf16.msra.mxu1 %v9190_v31  ;;  %v9261_v25 = vld [vmem:[#allocation16 + $0x38] ss:$12 sps:$4 sm:$0xff]   ;;  %v9262_v29 = vld [vmem:[#allocation16 + $0x108] ss:$12 sps:$4 sm:$0xff]  }
 0x51d   :  { %5151 = vmatprep.subr.bf16.mxu1 %v9198_v33  ;;  %v10150_v40 = vpack.c.bf16 %v3308_v36, %v3308_v36  ;;  %v9269_v60 = vld [vmem:[#allocation16 + $0x124] ss:$12 sps:$4 sm:$0xff]   ;;  %v9270_v32 = vld [vmem:[#allocation16 + $0x128] ss:$12 sps:$4 sm:$0xff]   ;;  %v9275_v34 = vld [vmem:[#allocation16 + $0x140] ss:$12 sps:$4 sm:$0xff]  }
 0x51e   :  { %v3313_v22 = vpack.c.bf16 %v3309_v37, %v3309_v37  ;;  %5086 = vmatpush1.bf16.msra.mxu0 %v9193_v35  ;;  %v9266_v31 = vld [vmem:[#allocation16 + $0x50] ss:$12 sps:$4 sm:$0xff]   ;;  %v9271_v33 = vld [vmem:[#allocation16 + $0x68] ss:$12 sps:$4 sm:$0xff]   ;;  %v9272_v35 = vld [vmem:[#allocation16 + $0x138] ss:$12 sps:$4 sm:$0xff]  }
 0x51f   :  { %5954 = vmatprep.subr.bf16.mxu0 %v9201_v21  ;;  %v9274_v23 = vld [vmem:[#allocation16 + $0x13c] ss:$12 sps:$4 sm:$0xff]   ;;  %v9279_v36 = vld [vmem:[#allocation16 + $0x154] ss:$12 sps:$4 sm:$0xff]   ;;  %v9280_v37 = vld [vmem:[#allocation16 + $0x158] ss:$12 sps:$4 sm:$0xff]  }
 0x520   :  { %5087 = vmatprep.mubr.bf16.mxu0 %v3313_v22  ;;  %5152 = vmatpush1.bf16.msra.mxu1 %v9196_v38  ;;  %v9276_v21 = vld [vmem:[#allocation16 + $0x80] ss:$12 sps:$4 sm:$0xff]   ;;  %v9277_v38 = vld [vmem:[#allocation16 + $0x150] ss:$12 sps:$4 sm:$0xff]  }
 0x521   :  { %5169 = vmatprep.mubr.bf16.mxu1 %v3313_v22  ;;  %5088 = vmatmul.mubr.bf16.vlgmr.msra.gmra.mrb[20].mxu0 %v10150_v40  ;;  %v9284_v22 = vld [vmem:[#allocation16 + $0x16c] ss:$12 sps:$4 sm:$0xff]  }
 0x522   :  { %5955 = vmatpush1.bf16.msra.mxu0 %v9199_v39  ;;  %5986 = vmatprep.mubr.bf16.mxu0 %v10072_v15  ;;  %v9281_v39 = vld [vmem:[#allocation16 + $0x98] ss:$12 sps:$4 sm:$0xff]  }
 0x523   :  { %5153 = vmatprep.subr.bf16.mxu1 %v9204_v2  ;;  %5956 = vmatprep.subr.bf16.mxu0 %v9207_v41  ;;  %v9282_v2 = vld [vmem:[#allocation16 + $0x168] ss:$12 sps:$4 sm:$0xff]   ;;  %v9289_v41 = vld [vmem:[#allocation16 + $0x184] ss:$12 sps:$4 sm:$0xff]  }
 0x524   :  { %5154 = vmatpush1.bf16.msra.mxu1 %v9202_v6  ;;  %v9286_v6 = vld [vmem:[#allocation16 + $0xb0] ss:$12 sps:$4 sm:$0xff]  }
 0x525   :  { %5155 = vmatprep.subr.bf16.mxu1 %v9210_v43  ;;  %v9290_v43 = vld [vmem:[#allocation16 + $0x248] ss:$12 sps:$4 sm:$0xff]  }
 0x526   :  { %5957 = vmatpush1.bf16.msra.mxu0 %v9205_v27  ;;  %v9287_v27 = vld [vmem:[#allocation16 + $0x180] ss:$12 sps:$4 sm:$0xff]  }
 0x527   :  { %5958 = vmatprep.subr.bf16.mxu0 %v9213_v44  ;;  %v9294_v44 = vld [vmem:[#allocation16 + $0x19c] ss:$12 sps:$4 sm:$0xff]  }
 0x528   :  { %5156 = vmatpush1.bf16.msra.mxu1 %v9208_v30  ;;  %v9291_v30 = vld [vmem:[#allocation16 + $0x188] ss:$12 sps:$4 sm:$0xff]  }
 0x529   :  { %5157 = vmatprep.subr.bf16.mxu1 %v9216_v45  ;;  %v9295_v45 = vld [vmem:[#allocation16 + $0x260] ss:$12 sps:$4 sm:$0xff]  }
 0x52a   :  { %5959 = vmatpush1.bf16.msra.mxu0 %v9211_v46  ;;  %v9292_v46 = vld [vmem:[#allocation16 + $0x198] ss:$12 sps:$4 sm:$0xff]  }
 0x52b   :  { %5960 = vmatprep.subr.bf16.mxu0 %v9219_v47  ;;  %v9299_v47 = vld [vmem:[#allocation16 + $0x1b4] ss:$12 sps:$4 sm:$0xff]  }
 0x52c   :  { %5158 = vmatpush1.bf16.msra.mxu1 %v9214_v48  ;;  %v9296_v48 = vld [vmem:[#allocation16 + $0x1a0] ss:$12 sps:$4 sm:$0xff]  }
 0x52d   :  { %5159 = vmatprep.subr.bf16.mxu1 %v9222_v49  ;;  %v9300_v49 = vld [vmem:[#allocation16 + $0x278] ss:$12 sps:$4 sm:$0xff]  }
 0x52e   :  { %5961 = vmatpush1.bf16.msra.mxu0 %v9217_v50  ;;  %v9297_v50 = vld [vmem:[#allocation16 + $0x1b0] ss:$12 sps:$4 sm:$0xff]  }
 0x52f   :  { %5962 = vmatprep.subr.bf16.mxu0 %v9225_v51  ;;  %v9304_v51 = vld [vmem:[#allocation16 + $0x1cc] ss:$12 sps:$4 sm:$0xff]  }
 0x530   :  { %5160 = vmatpush1.bf16.msra.mxu1 %v9220_v52  ;;  %v9301_v52 = vld [vmem:[#allocation16 + $0x1b8] ss:$12 sps:$4 sm:$0xff]  }
 0x531   :  { %5161 = vmatprep.subr.bf16.mxu1 %v9228_v53  ;;  %v9305_v53 = vld [vmem:[#allocation16 + $0x290] ss:$12 sps:$4 sm:$0xff]  }
 0x532   :  { %5963 = vmatpush1.bf16.msra.mxu0 %v9223_v54  ;;  %v9302_v54 = vld [vmem:[#allocation16 + $0x1c8] ss:$12 sps:$4 sm:$0xff]  }
 0x533   :  { %5964 = vmatprep.subr.bf16.mxu0 %v9231_v55  ;;  %v9306_v55 = vld [vmem:[#allocation16 + $0x1d0] ss:$12 sps:$4 sm:$0xff]  }
 0x534   :  { %5162 = vmatpush1.bf16.msra.mxu1 %v9226_v62  ;;  %v9310_v62 = vld [vmem:[#allocation16 + $0x2a8] ss:$12 sps:$4 sm:$0xff]  }
 0x535   :  { %5163 = vmatprep.subr.bf16.mxu1 %v9234_v56  ;;  %v9314_v56 = vld [vmem:[#allocation16 + $0x1fc] ss:$12 sps:$4 sm:$0xff]  }
 0x536   :  { %5965 = vmatpush1.bf16.msra.mxu0 %v9229_v57  ;;  %v9311_v57 = vld [vmem:[#allocation16 + $0x1e8] ss:$12 sps:$4 sm:$0xff]  }
 0x537   :  { %5966 = vmatprep.subr.bf16.mxu0 %v9237_v58  ;;  %v9315_v58 = vld [vmem:[#allocation16 + $0x2c0] ss:$12 sps:$4 sm:$0xff]  }
 0x538   :  { %5164 = vmatpush1.bf16.msra.mxu1 %v9232_v59  ;;  %v9312_v59 = vld [vmem:[#allocation16 + $0x1f8] ss:$12 sps:$4 sm:$0xff]  }
 0x539   :  { %5165 = vmatprep.subr.bf16.mxu1 %v9240_v61  ;;  %v9319_v61 = vld [vmem:[#allocation16 + $0x214] ss:$12 sps:$4 sm:$0xff]  }
 0x53a   :  { %5967 = vmatpush1.bf16.msra.mxu0 %v9235_v63  ;;  %v9316_v63 = vld [vmem:[#allocation16 + $0x200] ss:$12 sps:$4 sm:$0xff]  }
 0x53b   :  { %5968 = vmatprep.subr.bf16.mxu0 %v9243_v0  ;;  %v9320_v0 = vld [vmem:[#allocation16 + $0x2d8] ss:$12 sps:$4 sm:$0xff]  }
 0x53c   :  { %5166 = vmatpush1.bf16.msra.mxu1 %v9238_v1  ;;  %v9317_v1 = vld [vmem:[#allocation16 + $0x210] ss:$12 sps:$4 sm:$0xff]  }
 0x53d   :  { %5167 = vmatprep.subr.bf16.mxu1 %v9246_v3  ;;  %v9324_v3 = vld [vmem:[#allocation16 + $0x22c] ss:$12 sps:$4 sm:$0xff]  }
 0x53e   :  { %5969 = vmatpush1.bf16.msra.mxu0 %v9241_v4  ;;  %v9321_v4 = vld [vmem:[#allocation16 + $0x218] ss:$12 sps:$4 sm:$0xff]  }
 0x53f   :  { %5970 = vmatprep.subr.bf16.mxu0 %v9249_v5  ;;  %v9325_v5 = vld [vmem:[#allocation16 + $0x2f0] ss:$12 sps:$4 sm:$0xff]  }
 0x540   :  { %5168 = vmatpush1.bf16.msra.mxu1 %v9244_v7  ;;  %v9322_v7 = vld [vmem:[#allocation16 + $0x228] ss:$12 sps:$4 sm:$0xff]  }
 0x541   :  { %8117 = vmatprep.subr.bf16.mxu1 %v9250_v8  ;;  %v9329_v8 = vld [vmem:[#allocation16 + $0x244] ss:$12 sps:$4 sm:$0xff]  }
 0x542   :  { %5971 = vmatpush1.bf16.msra.mxu0 %v9247_v10  ;;  %v9326_v10 = vld [vmem:[#allocation16 + $0x230] ss:$12 sps:$4 sm:$0xff]  }
 0x543   :  { %5170 = vmatmul.mubr.bf16.vlgmr.msra.gmra.mrb[28].mxu1 %v10150_v40  ;;  %5972 = vmatprep.subr.bf16.mxu0 %v9254_v11  ;;  %v9285_v40 = vld [vmem:[#allocation16 + $0x170] ss:$12 sps:$4 sm:$0xff]   ;;  %v9378_v11 = vld [vmem:[#allocation14 + $0xc8] ss:$12 sps:$4 sm:$0xff]  }
 0x544   :  { %8118 = vmatpush3.bf16.msra.mxu1 %v9251_v13  ;;  %6068 = vmatprep.mubr.bf16.mxu1 %v10072_v15  ;;  %v9267_v15 = vld [vmem:[#allocation16 + $0x120] ss:$12 sps:$4 sm:$0xff]  }
 0x545   :  { %8119 = vmatprep.subr.bf16.mxu1 %v9255_v19  ;;  %v9327_v13 = vld [vmem:[#allocation16 + $0x240] ss:$12 sps:$4 sm:$0xff]   ;;  %v9332_v19 = vld [vmem:[#allocation16 + $0x25c] ss:$12 sps:$4 sm:$0xff]  }
 0x546   :  { %5973 = vmatpush1.bf16.msra.mxu0 %v9252_v12  ;;  %v9379_v12 = vld [vmem:[#allocation14 + $0x8] ss:$12 sps:$4 sm:$0xff]  }
 0x547   :  { %5974 = vmatprep.subr.bf16.mxu0 %v9259_v14  ;;  %v9383_v14 = vld [vmem:[#allocation14 + $0xe0] ss:$12 sps:$4 sm:$0xff]  }
 0x548   :  { %8120 = vmatpush3.bf16.msra.mxu1 %v9256_v17  ;;  %v9330_v17 = vld [vmem:[#allocation16 + $0x258] ss:$12 sps:$4 sm:$0xff]  }
 0x549   :  { %8121 = vmatprep.subr.bf16.mxu1 %v9260_v18  ;;  %v9335_v18 = vld [vmem:[#allocation16 + $0x274] ss:$12 sps:$4 sm:$0xff]  }
 0x54a   :  { %5975 = vmatpush1.bf16.msra.mxu0 %v9257_v20  ;;  %v9384_v20 = vld [vmem:[#allocation14 + $0x20] ss:$12 sps:$4 sm:$0xff]  }
 0x54b   :  { %5976 = vmatprep.subr.bf16.mxu0 %v9264_v24  ;;  %v9388_v24 = vld [vmem:[#allocation14 + $0xf8] ss:$12 sps:$4 sm:$0xff]  }
 0x54c   :  { %8122 = vmatpush3.bf16.msra.mxu1 %v9261_v25  ;;  %v9333_v25 = vld [vmem:[#allocation16 + $0x270] ss:$12 sps:$4 sm:$0xff]  }
 0x54d   :  { %8123 = vmatprep.subr.bf16.mxu1 %v9265_v28  ;;  %v9338_v28 = vld [vmem:[#allocation16 + $0x28c] ss:$12 sps:$4 sm:$0xff]  }
 0x54e   :  { %5977 = vmatpush1.bf16.msra.mxu0 %v9262_v29  ;;  %v9389_v29 = vld [vmem:[#allocation14 + $0x38] ss:$12 sps:$4 sm:$0xff]  }
 0x54f   :  { %5978 = vmatprep.subr.bf16.mxu0 %v9269_v60  ;;  %v9393_v60 = vld [vmem:[#allocation14 + $0x110] ss:$12 sps:$4 sm:$0xff]  }
 0x550   :  { %8124 = vmatpush3.bf16.msra.mxu1 %v9266_v31  ;;  %v9336_v31 = vld [vmem:[#allocation16 + $0x288] ss:$12 sps:$4 sm:$0xff]  }
 0x551   :  { %8125 = vmatprep.subr.bf16.mxu1 %v9270_v32  ;;  %v9341_v32 = vld [vmem:[#allocation16 + $0x2a4] ss:$12 sps:$4 sm:$0xff]  }
 0x552   :  { %5979 = vmatpush1.bf16.msra.mxu0 %v9267_v15  ;;  %v9394_v15 = vld [vmem:[#allocation14 + $0x50] ss:$12 sps:$4 sm:$0xff]  }
 0x553   :  { %5980 = vmatprep.subr.bf16.mxu0 %v9274_v23  ;;  %v9398_v23 = vld [vmem:[#allocation14 + $0x128] ss:$12 sps:$4 sm:$0xff]  }
 0x554   :  { %8126 = vmatpush3.bf16.msra.mxu1 %v9271_v33  ;;  %v9339_v33 = vld [vmem:[#allocation16 + $0x2a0] ss:$12 sps:$4 sm:$0xff]  }
 0x555   :  { %8127 = vmatprep.subr.bf16.mxu1 %v9275_v34  ;;  %v9344_v34 = vld [vmem:[#allocation16 + $0x2bc] ss:$12 sps:$4 sm:$0xff]  }
 0x556   :  { %5981 = vmatpush1.bf16.msra.mxu0 %v9272_v35  ;;  %v9399_v35 = vld [vmem:[#allocation14 + $0x68] ss:$12 sps:$4 sm:$0xff]  }
 0x557   :  { %5982 = vmatprep.subr.bf16.mxu0 %v9279_v36  ;;  %v9403_v36 = vld [vmem:[#allocation14 + $0x140] ss:$12 sps:$4 sm:$0xff]  }
 0x558   :  { %8128 = vmatpush3.bf16.msra.mxu1 %v9276_v21  ;;  %v9342_v21 = vld [vmem:[#allocation16 + $0x2b8] ss:$12 sps:$4 sm:$0xff]  }
 0x559   :  { %8129 = vmatprep.subr.bf16.mxu1 %v9280_v37  ;;  %v9347_v37 = vld [vmem:[#allocation16 + $0x2d4] ss:$12 sps:$4 sm:$0xff]  }
 0x55a   :  { %5983 = vmatpush1.bf16.msra.mxu0 %v9277_v38  ;;  %v9404_v38 = vld [vmem:[#allocation14 + $0x80] ss:$12 sps:$4 sm:$0xff]  }
 0x55b   :  { %5984 = vmatprep.subr.bf16.mxu0 %v9284_v22  ;;  %v9408_v22 = vld [vmem:[#allocation14 + $0x158] ss:$12 sps:$4 sm:$0xff]  }
 0x55c   :  { %8130 = vmatpush3.bf16.msra.mxu1 %v9281_v39  ;;  %v9345_v39 = vld [vmem:[#allocation16 + $0x2d0] ss:$12 sps:$4 sm:$0xff]  }
 0x55d   :  { %8131 = vmatprep.subr.bf16.mxu1 %v9285_v40  ;;  %v9350_v40 = vld [vmem:[#allocation16 + $0x2ec] ss:$12 sps:$4 sm:$0xff]  }
 0x55e   :  { %5985 = vmatpush1.bf16.msra.mxu0 %v9282_v2  ;;  %v9409_v2 = vld [vmem:[#allocation14 + $0x98] ss:$12 sps:$4 sm:$0xff]  }
 0x55f   :  { %5995 = vmatprep.subr.bf16.mxu0 %v9289_v41  ;;  %v9413_v41 = vld [vmem:[#allocation14 + $0x170] ss:$12 sps:$4 sm:$0xff]  }
 0x560   :  { %8132 = vmatpush3.bf16.msra.mxu1 %v9286_v6  ;;  %v9348_v6 = vld [vmem:[#allocation16 + $0x2e8] ss:$12 sps:$4 sm:$0xff]  }
 0x561   :  { %5987 = vmatmul.mubr.bf16.vlgmr.msra.gmra.mrb[24].mxu0 %v10074_v16  ;;  %8139 = vmatprep.subr.bf16.mxu1 %v9290_v43  ;;  %v9353_v43 = vld [vmem:[#allocation14 + $0x4] ss:$12 sps:$4 sm:$0xff]  }
 0x562   :  { %5996 = vmatpush1.bf16.msra.mxu0 %v9287_v27  ;;  %6027 = vmatprep.mubr.bf16.mxu0 %v10082_v42  ;;  %v9414_v27 = vld [vmem:[#allocation14 + $0xb0] ss:$12 sps:$4 sm:$0xff]  }
 0x563   :  { %6069 = vmatmul.mubr.bf16.vlgmr.msra.gmra.mrb[32].mxu1 %v10074_v16  ;;  %5997 = vmatprep.subr.bf16.mxu0 %v9294_v44  ;;  %v9309_v16 = vld [vmem:[#allocation16 + $0x1e4] ss:$12 sps:$4 sm:$0xff]   ;;  %v9418_v44 = vld [vmem:[#allocation14 + $0x248] ss:$12 sps:$4 sm:$0xff]  }
 0x564   :  { %8140 = vmatpush3.bf16.msra.mxu1 %v9291_v30  ;;  %6108 = vmatprep.mubr.bf16.mxu1 %v10082_v42  ;;  %v9307_v42 = vld [vmem:[#allocation16 + $0x1e0] ss:$12 sps:$4 sm:$0xff]  }
 0x565   :  { %8141 = vmatprep.subr.bf16.mxu1 %v9295_v45  ;;  %v9351_v30 = vld [vmem:[#allocation14] ss:$12 sps:$4 sm:$0xff]   ;;  %v9356_v45 = vld [vmem:[#allocation14 + $0x1c] ss:$12 sps:$4 sm:$0xff]  }
 0x566   :  { %5998 = vmatpush1.bf16.msra.mxu0 %v9292_v46  ;;  %v9354_v46 = vld [vmem:[#allocation14 + $0x18] ss:$12 sps:$4 sm:$0xff]  }
 0x567   :  { %5999 = vmatprep.subr.bf16.mxu0 %v9299_v47  ;;  %v9359_v47 = vld [vmem:[#allocation14 + $0x34] ss:$12 sps:$4 sm:$0xff]  }
 0x568   :  { %8142 = vmatpush3.bf16.msra.mxu1 %v9296_v48  ;;  %v9357_v48 = vld [vmem:[#allocation14 + $0x30] ss:$12 sps:$4 sm:$0xff]  }
 0x569   :  { %8143 = vmatprep.subr.bf16.mxu1 %v9300_v49  ;;  %v9362_v49 = vld [vmem:[#allocation14 + $0x4c] ss:$12 sps:$4 sm:$0xff]  }
 0x56a   :  { %6000 = vmatpush1.bf16.msra.mxu0 %v9297_v50  ;;  %v9360_v50 = vld [vmem:[#allocation14 + $0x48] ss:$12 sps:$4 sm:$0xff]  }
 0x56b   :  { %6001 = vmatprep.subr.bf16.mxu0 %v9304_v51  ;;  %v9365_v51 = vld [vmem:[#allocation14 + $0x64] ss:$12 sps:$4 sm:$0xff]  }
 0x56c   :  { %8144 = vmatpush3.bf16.msra.mxu1 %v9301_v52  ;;  %v9363_v52 = vld [vmem:[#allocation14 + $0x60] ss:$12 sps:$4 sm:$0xff]  }
 0x56d   :  { %8145 = vmatprep.subr.bf16.mxu1 %v9305_v53  ;;  %v9368_v53 = vld [vmem:[#allocation14 + $0x7c] ss:$12 sps:$4 sm:$0xff]  }
 0x56e   :  { %6002 = vmatpush1.bf16.msra.mxu0 %v9302_v54  ;;  %v9366_v54 = vld [vmem:[#allocation14 + $0x78] ss:$12 sps:$4 sm:$0xff]  }
 0x56f   :  { %6003 = vmatprep.subr.bf16.mxu0 %v9309_v16  ;;  %v9369_v16 = vld [vmem:[#allocation14 + $0x90] ss:$12 sps:$4 sm:$0xff]  }
 0x570   :  { %8146 = vmatpush3.bf16.msra.mxu1 %v9306_v55  ;;  %v9374_v55 = vld [vmem:[#allocation14 + $0xac] ss:$12 sps:$4 sm:$0xff]  }
 0x571   :  { %8147 = vmatprep.subr.bf16.mxu1 %v9310_v62  ;;  %v9372_v62 = vld [vmem:[#allocation14 + $0xa8] ss:$12 sps:$4 sm:$0xff]  }
 0x572   :  { %6004 = vmatpush1.bf16.msra.mxu0 %v9307_v42  ;;  %v9377_v42 = vld [vmem:[#allocation14 + $0xc4] ss:$12 sps:$4 sm:$0xff]  }
 0x573   :  { %6005 = vmatprep.subr.bf16.mxu0 %v9314_v56  ;;  %v9375_v56 = vld [vmem:[#allocation14 + $0xc0] ss:$12 sps:$4 sm:$0xff]  }
 0x574   :  { %8148 = vmatpush3.bf16.msra.mxu1 %v9311_v57  ;;  %v9382_v57 = vld [vmem:[#allocation14 + $0xdc] ss:$12 sps:$4 sm:$0xff]  }
 0x575   :  { %8149 = vmatprep.subr.bf16.mxu1 %v9315_v58  ;;  %v9380_v58 = vld [vmem:[#allocation14 + $0xd8] ss:$12 sps:$4 sm:$0xff]  }
 0x576   :  { %6006 = vmatpush1.bf16.msra.mxu0 %v9312_v59  ;;  %v9387_v59 = vld [vmem:[#allocation14 + $0xf4] ss:$12 sps:$4 sm:$0xff]  }
 0x577   :  { %6007 = vmatprep.subr.bf16.mxu0 %v9319_v61  ;;  %v9385_v61 = vld [vmem:[#allocation14 + $0xf0] ss:$12 sps:$4 sm:$0xff]  }
 0x578   :  { %8150 = vmatpush3.bf16.msra.mxu1 %v9316_v63  ;;  %v9392_v63 = vld [vmem:[#allocation14 + $0x10c] ss:$12 sps:$4 sm:$0xff]  }
 0x579   :  { %8151 = vmatprep.subr.bf16.mxu1 %v9320_v0  ;;  %v9390_v0 = vld [vmem:[#allocation14 + $0x108] ss:$12 sps:$4 sm:$0xff]  }
 0x57a   :  { %6008 = vmatpush1.bf16.msra.mxu0 %v9317_v1  ;;  %v9397_v1 = vld [vmem:[#allocation14 + $0x124] ss:$12 sps:$4 sm:$0xff]  }
 0x57b   :  { %6009 = vmatprep.subr.bf16.mxu0 %v9324_v3  ;;  %v9395_v3 = vld [vmem:[#allocation14 + $0x120] ss:$12 sps:$4 sm:$0xff]  }
 0x57c   :  { %8152 = vmatpush3.bf16.msra.mxu1 %v9321_v4  ;;  %v9402_v4 = vld [vmem:[#allocation14 + $0x13c] ss:$12 sps:$4 sm:$0xff]  }
 0x57d   :  { %8153 = vmatprep.subr.bf16.mxu1 %v9325_v5  ;;  %v9400_v5 = vld [vmem:[#allocation14 + $0x138] ss:$12 sps:$4 sm:$0xff]  }
 0x57e   :  { %6010 = vmatpush1.bf16.msra.mxu0 %v9322_v7  ;;  %v9407_v7 = vld [vmem:[#allocation14 + $0x154] ss:$12 sps:$4 sm:$0xff]  }
 0x57f   :  { %6011 = vmatprep.subr.bf16.mxu0 %v9329_v8  ;;  %v9405_v8 = vld [vmem:[#allocation14 + $0x150] ss:$12 sps:$4 sm:$0xff]  }
 0x580   :  { %8154 = vmatpush3.bf16.msra.mxu1 %v9326_v10  ;;  %v9412_v10 = vld [vmem:[#allocation14 + $0x16c] ss:$12 sps:$4 sm:$0xff]  }
 0x581   :  { %8161 = vmatprep.subr.bf16.mxu1 %v9378_v11  ;;  %v9410_v11 = vld [vmem:[#allocation14 + $0x168] ss:$12 sps:$4 sm:$0xff]  }
 0x582   :  { %6012 = vmatpush1.bf16.msra.mxu0 %v9327_v13  ;;  %v9417_v13 = vld [vmem:[#allocation14 + $0x184] ss:$12 sps:$4 sm:$0xff]  }
 0x583   :  { %6109 = vmatmul.mubr.bf16.vlgmr.msra.gmra.mrb[36].mxu1 %v10087_v26  ;;  %6013 = vmatprep.subr.bf16.mxu0 %v9332_v19 }
 0x584   :  { %8162 = vmatpush3.bf16.msra.mxu1 %v9379_v12 }
 0x585   :  { %8163 = vmatprep.subr.bf16.mxu1 %v9383_v14 }
 0x586   :  { %6014 = vmatpush1.bf16.msra.mxu0 %v9330_v17 }
 0x587   :  { %6015 = vmatprep.subr.bf16.mxu0 %v9335_v18 }
 0x588   :  { %8164 = vmatpush3.bf16.msra.mxu1 %v9384_v20 }
 0x589   :  { %8165 = vmatprep.subr.bf16.mxu1 %v9388_v24 }
 0x58a   :  { %6016 = vmatpush1.bf16.msra.mxu0 %v9333_v25  ;;  %v9415_v25 = vld [vmem:[#allocation14 + $0x180] ss:$12 sps:$4 sm:$0xff]  }
 0x58b   :  { %6017 = vmatprep.subr.bf16.mxu0 %v9338_v28  ;;  %v9422_v28 = vld [vmem:[#allocation14 + $0x188] ss:$12 sps:$4 sm:$0xff]  }
 0x58c   :  { %8166 = vmatpush3.bf16.msra.mxu1 %v9389_v29 }
 0x58d   :  { %8167 = vmatprep.subr.bf16.mxu1 %v9393_v60  ;;  %v9421_v60 = vld [vmem:[#allocation14 + $0x19c] ss:$12 sps:$4 sm:$0xff]  }
 0x58e   :  { %6018 = vmatpush1.bf16.msra.mxu0 %v9336_v31  ;;  %v9423_v31 = vld [vmem:[#allocation14 + $0x260] ss:$12 sps:$4 sm:$0xff]  }
 0x58f   :  { %6019 = vmatprep.subr.bf16.mxu0 %v9341_v32  ;;  %v9419_v32 = vld [vmem:[#allocation14 + $0x198] ss:$12 sps:$4 sm:$0xff]  }
 0x590   :  { %8168 = vmatpush3.bf16.msra.mxu1 %v9394_v15  ;;  %v9427_v15 = vld [vmem:[#allocation14 + $0x1a0] ss:$12 sps:$4 sm:$0xff]  }
 0x591   :  { %8169 = vmatprep.subr.bf16.mxu1 %v9398_v23  ;;  %v9426_v23 = vld [vmem:[#allocation14 + $0x1b4] ss:$12 sps:$4 sm:$0xff]  }
 0x592   :  { %6020 = vmatpush1.bf16.msra.mxu0 %v9339_v33  ;;  %v9428_v33 = vld [vmem:[#allocation14 + $0x278] ss:$12 sps:$4 sm:$0xff]  }
 0x593   :  { %6021 = vmatprep.subr.bf16.mxu0 %v9344_v34  ;;  %v9424_v34 = vld [vmem:[#allocation14 + $0x1b0] ss:$12 sps:$4 sm:$0xff]  }
 0x594   :  { %8170 = vmatpush3.bf16.msra.mxu1 %v9399_v35  ;;  %v9432_v35 = vld [vmem:[#allocation14 + $0x1b8] ss:$12 sps:$4 sm:$0xff]  }
 0x595   :  { %8171 = vmatprep.subr.bf16.mxu1 %v9403_v36  ;;  %v9431_v36 = vld [vmem:[#allocation14 + $0x1cc] ss:$12 sps:$4 sm:$0xff]  }
 0x596   :  { %6022 = vmatpush1.bf16.msra.mxu0 %v9342_v21  ;;  %v9433_v21 = vld [vmem:[#allocation14 + $0x290] ss:$12 sps:$4 sm:$0xff]  }
 0x597   :  { %6023 = vmatprep.subr.bf16.mxu0 %v9347_v37  ;;  %v9429_v37 = vld [vmem:[#allocation14 + $0x1c8] ss:$12 sps:$4 sm:$0xff]  }
 0x598   :  { %8172 = vmatpush3.bf16.msra.mxu1 %v9404_v38  ;;  %v9437_v38 = vld [vmem:[#allocation14 + $0x1d0] ss:$12 sps:$4 sm:$0xff]  }
 0x599   :  { %8173 = vmatprep.subr.bf16.mxu1 %v9408_v22  ;;  %v9436_v22 = vld [vmem:[#allocation14 + $0x1e4] ss:$12 sps:$4 sm:$0xff]  }
 0x59a   :  { %6024 = vmatpush1.bf16.msra.mxu0 %v9345_v39  ;;  %v9438_v39 = vld [vmem:[#allocation14 + $0x2a8] ss:$12 sps:$4 sm:$0xff]  }
 0x59b   :  { %6025 = vmatprep.subr.bf16.mxu0 %v9350_v40  ;;  %v9434_v40 = vld [vmem:[#allocation14 + $0x1e0] ss:$12 sps:$4 sm:$0xff]  }
 0x59c   :  { %8174 = vmatpush3.bf16.msra.mxu1 %v9409_v2  ;;  %v9442_v2 = vld [vmem:[#allocation14 + $0x1e8] ss:$12 sps:$4 sm:$0xff]  }
 0x59d   :  { %8175 = vmatprep.subr.bf16.mxu1 %v9413_v41  ;;  %v9441_v41 = vld [vmem:[#allocation14 + $0x1fc] ss:$12 sps:$4 sm:$0xff]  }
 0x59e   :  { %6026 = vmatpush1.bf16.msra.mxu0 %v9348_v6  ;;  %v9443_v6 = vld [vmem:[#allocation14 + $0x2c0] ss:$12 sps:$4 sm:$0xff]  }
 0x59f   :  { %6628 = vmatprep.subr.bf16.mxu0 %v9353_v43  ;;  %v9439_v43 = vld [vmem:[#allocation14 + $0x1f8] ss:$12 sps:$4 sm:$0xff]  }
 0x5a0   :  { %8176 = vmatpush3.bf16.msra.mxu1 %v9414_v27  ;;  %v9447_v27 = vld [vmem:[#allocation14 + $0x200] ss:$12 sps:$4 sm:$0xff]  }
 0x5a1   :  { %6028 = vmatmul.mubr.bf16.vlgmr.msra.gmra.mrb[24].mxu0 %v10087_v26  ;;  %8183 = vmatprep.subr.bf16.mxu1 %v9418_v44  ;;  %v9371_v26 = vld [vmem:[#allocation14 + $0x94] ss:$12 sps:$4 sm:$0xff]  }
 0x5a2   :  { %6629 = vmatpush1.bf16.msra.mxu0 %v9351_v30  ;;  %v9446_v44 = vld [vmem:[#allocation14 + $0x214] ss:$12 sps:$4 sm:$0xff]   ;;  %v9448_v30 = vld [vmem:[#allocation14 + $0x2d8] ss:$12 sps:$4 sm:$0xff]  }
 0x5a3   :  { %6630 = vmatprep.subr.bf16.mxu0 %v9356_v45  ;;  %v9444_v45 = vld [vmem:[#allocation14 + $0x210] ss:$12 sps:$4 sm:$0xff]  }
 0x5a6   :  { %6631 = vmatpush1.bf16.msra.mxu0 %v9354_v46  ;;  %v9452_v46 = vld [vmem:[#allocation14 + $0x218] ss:$12 sps:$4 sm:$0xff]  }
 0x5a7   :  { %6632 = vmatprep.subr.bf16.mxu0 %v9359_v47  ;;  %v9451_v47 = vld [vmem:[#allocation14 + $0x22c] ss:$12 sps:$4 sm:$0xff]  }
 0x5aa   :  { %6633 = vmatpush1.bf16.msra.mxu0 %v9357_v48  ;;  %v9453_v48 = vld [vmem:[#allocation14 + $0x2f0] ss:$12 sps:$4 sm:$0xff]  }
 0x5ab   :  { %6634 = vmatprep.subr.bf16.mxu0 %v9362_v49  ;;  %v9449_v49 = vld [vmem:[#allocation14 + $0x228] ss:$12 sps:$4 sm:$0xff]  }
 0x5ae   :  { %6635 = vmatpush1.bf16.msra.mxu0 %v9360_v50  ;;  %v9457_v50 = vld [vmem:[#allocation14 + $0x230] ss:$12 sps:$4 sm:$0xff]  }
 0x5af   :  { %6636 = vmatprep.subr.bf16.mxu0 %v9365_v51  ;;  %v9456_v51 = vld [vmem:[#allocation14 + $0x244] ss:$12 sps:$4 sm:$0xff]  }
 0x5b2   :  { %6637 = vmatpush1.bf16.msra.mxu0 %v9363_v52 }
 0x5b3   :  { %6638 = vmatprep.subr.bf16.mxu0 %v9368_v53 }
 0x5b6   :  { %6639 = vmatpush1.bf16.msra.mxu0 %v9366_v54 }
 0x5b7   :  { %6640 = vmatprep.subr.bf16.mxu0 %v9371_v26 }
 0x5ba   :  { %6641 = vmatpush1.bf16.msra.mxu0 %v9369_v16 }
 0x5bb   :  { %6642 = vmatprep.subr.bf16.mxu0 %v9374_v55  ;;  %v9454_v55 = vld [vmem:[#allocation14 + $0x240] ss:$12 sps:$4 sm:$0xff]  }
 0x5be   :  { %6643 = vmatpush1.bf16.msra.mxu0 %v9372_v62 }
 0x5bf   :  { %6644 = vmatprep.subr.bf16.mxu0 %v9377_v42  ;;  %v9460_v42 = vld [vmem:[#allocation14 + $0x25c] ss:$12 sps:$4 sm:$0xff]  }
 0x5c2   :  { %6645 = vmatpush1.bf16.msra.mxu0 %v9375_v56 }
 0x5c3   :  { %6646 = vmatprep.subr.bf16.mxu0 %v9382_v57 }
 0x5c6   :  { %6647 = vmatpush1.bf16.msra.mxu0 %v9380_v58  ;;  %v9458_v58 = vld [vmem:[#allocation14 + $0x258] ss:$12 sps:$4 sm:$0xff]  }
 0x5c7   :  { %6648 = vmatprep.subr.bf16.mxu0 %v9387_v59  ;;  %v9463_v59 = vld [vmem:[#allocation14 + $0x274] ss:$12 sps:$4 sm:$0xff]  }
 0x5ca   :  { %6649 = vmatpush1.bf16.msra.mxu0 %v9385_v61  ;;  %v9461_v61 = vld [vmem:[#allocation14 + $0x270] ss:$12 sps:$4 sm:$0xff]  }
 0x5cb   :  { %6650 = vmatprep.subr.bf16.mxu0 %v9392_v63  ;;  %v9466_v63 = vld [vmem:[#allocation14 + $0x28c] ss:$12 sps:$4 sm:$0xff]  }
 0x5ce   :  { %6651 = vmatpush1.bf16.msra.mxu0 %v9390_v0  ;;  %v9464_v0 = vld [vmem:[#allocation14 + $0x288] ss:$12 sps:$4 sm:$0xff]  }
 0x5cf   :  { %6652 = vmatprep.subr.bf16.mxu0 %v9397_v1  ;;  %v9469_v1 = vld [vmem:[#allocation14 + $0x2a4] ss:$12 sps:$4 sm:$0xff]  }
 0x5d2   :  { %6653 = vmatpush1.bf16.msra.mxu0 %v9395_v3  ;;  %v9467_v3 = vld [vmem:[#allocation14 + $0x2a0] ss:$12 sps:$4 sm:$0xff]  }
 0x5d3   :  { %6654 = vmatprep.subr.bf16.mxu0 %v9402_v4  ;;  %v9472_v4 = vld [vmem:[#allocation14 + $0x2bc] ss:$12 sps:$4 sm:$0xff]  }
 0x5d6   :  { %6655 = vmatpush1.bf16.msra.mxu0 %v9400_v5  ;;  %v9470_v5 = vld [vmem:[#allocation14 + $0x2b8] ss:$12 sps:$4 sm:$0xff]  }
 0x5d7   :  { %6656 = vmatprep.subr.bf16.mxu0 %v9407_v7  ;;  %v9475_v7 = vld [vmem:[#allocation14 + $0x2d4] ss:$12 sps:$4 sm:$0xff]  }
 0x5da   :  { %6657 = vmatpush1.bf16.msra.mxu0 %v9405_v8  ;;  %v9473_v8 = vld [vmem:[#allocation14 + $0x2d0] ss:$12 sps:$4 sm:$0xff]  }
 0x5db   :  { %6658 = vmatprep.subr.bf16.mxu0 %v9412_v10  ;;  %v9478_v10 = vld [vmem:[#allocation14 + $0x2ec] ss:$12 sps:$4 sm:$0xff]  }
 0x5de   :  { %6659 = vmatpush1.bf16.msra.mxu0 %v9410_v11  ;;  %v9476_v11 = vld [vmem:[#allocation14 + $0x2e8] ss:$12 sps:$4 sm:$0xff]  }
 0x5df   :  { %6669 = vmatprep.subr.bf16.mxu0 %v9417_v13 }
 0x5f4   :  { %v5089_v19 = vpop.f32.mrb[20].mxu0 }
 0x5f5   :  { %v5178_v12 = vmax.f32 %v5089_v19, 0.0  ;;  %v5091_v14 = vpop.f32.mrb[21].mxu0 }
 0x5f6   :  { %v5179_v17 = vmax.f32 %v5091_v14, 0.0  ;;  %v5093_v18 = vpop.f32.mrb[22].mxu0 }
 0x5f7   :  { %v5094_v20 = vpop.f32.mrb[23].mxu0  ;;  %v5182_v29 = vpack.c.bf16 %v5178_v12, %v5178_v12  ;;  %v9479_v18 = vld [vmem:[#allocation17] ss:$8 sps:$4 sm:$0xff]  }
 0x5f8   :  { %v5183_v24 = vpack.c.bf16 %v5179_v17, %v5179_v17  ;;  %v9481_v20 = vld [vmem:[#allocation17 + $0x4] ss:$8 sps:$4 sm:$0xff]  }
 0x5fa   :  { %6660 = vmatprep.mubr.bf16.mxu0 %v5183_v24  ;;  %6742 = vmatprep.mubr.bf16.mxu1 %v5183_v24  ;;  %v9484_v24 = vld [vmem:[#allocation17 + $0x14] ss:$8 sps:$4 sm:$0xff]  }
 0x5fb   :  { %6661 = vmatmul.mubr.bf16.vlgmr.msra.gmra.mrb[24].mxu0 %v5182_v29  ;;  %6743 = vmatmul.mubr.bf16.vlgmr.msra.gmra.mrb[40].mxu1 %v5182_v29  ;;  %v9487_v29 = vld [vmem:[#allocation17 + $0x24] ss:$8 sps:$4 sm:$0xff]  }
 0x5fc   :  { %6670 = vmatpush1.bf16.msra.mxu0 %v9415_v25  ;;  %8184 = vmatpush3.bf16.msra.mxu1 %v9422_v28  ;;  %v9482_v25 = vld [vmem:[#allocation17 + $0x10] ss:$8 sps:$4 sm:$0xff]  }
 0x5fd   :  { %6671 = vmatprep.subr.bf16.mxu0 %v9421_v60  ;;  %8185 = vmatprep.subr.bf16.mxu1 %v9423_v31 }
 0x600   :  { %6672 = vmatpush1.bf16.msra.mxu0 %v9419_v32  ;;  %8186 = vmatpush3.bf16.msra.mxu1 %v9427_v15 }
 0x601   :  { %6673 = vmatprep.subr.bf16.mxu0 %v9426_v23  ;;  %8187 = vmatprep.subr.bf16.mxu1 %v9428_v33  ;;  %v9485_v23 = vld [vmem:[#allocation17 + $0x20] ss:$8 sps:$4 sm:$0xff]  }
 0x604   :  { %6674 = vmatpush1.bf16.msra.mxu0 %v9424_v34  ;;  %8188 = vmatpush3.bf16.msra.mxu1 %v9432_v35  ;;  %v9490_v34 = vld [vmem:[#allocation17 + $0x34] ss:$8 sps:$4 sm:$0xff]   ;;  %v9488_v35 = vld [vmem:[#allocation17 + $0x30] ss:$8 sps:$4 sm:$0xff]  }
 0x605   :  { %6675 = vmatprep.subr.bf16.mxu0 %v9431_v36  ;;  %8189 = vmatprep.subr.bf16.mxu1 %v9433_v21  ;;  %v9493_v36 = vld [vmem:[#allocation17 + $0x44] ss:$8 sps:$4 sm:$0xff]   ;;  %v9491_v21 = vld [vmem:[#allocation17 + $0x40] ss:$8 sps:$4 sm:$0xff]  }
 0x608   :  { %6676 = vmatpush1.bf16.msra.mxu0 %v9429_v37  ;;  %8190 = vmatpush3.bf16.msra.mxu1 %v9437_v38  ;;  %v9496_v37 = vld [vmem:[#allocation17 + $0x54] ss:$8 sps:$4 sm:$0xff]   ;;  %v9494_v38 = vld [vmem:[#allocation17 + $0x50] ss:$8 sps:$4 sm:$0xff]  }
 0x609   :  { %6677 = vmatprep.subr.bf16.mxu0 %v9436_v22  ;;  %8191 = vmatprep.subr.bf16.mxu1 %v9438_v39  ;;  %v9499_v22 = vld [vmem:[#allocation17 + $0x64] ss:$8 sps:$4 sm:$0xff]   ;;  %v9497_v39 = vld [vmem:[#allocation17 + $0x60] ss:$8 sps:$4 sm:$0xff]  }
 0x60c   :  { %6678 = vmatpush1.bf16.msra.mxu0 %v9434_v40  ;;  %8192 = vmatpush3.bf16.msra.mxu1 %v9442_v2  ;;  %v9502_v40 = vld [vmem:[#allocation17 + $0x74] ss:$8 sps:$4 sm:$0xff]   ;;  %v9500_v2 = vld [vmem:[#allocation17 + $0x70] ss:$8 sps:$4 sm:$0xff]  }
 0x60d   :  { %6679 = vmatprep.subr.bf16.mxu0 %v9441_v41  ;;  %8193 = vmatprep.subr.bf16.mxu1 %v9443_v6  ;;  %v9505_v41 = vld [vmem:[#allocation17 + $0x84] ss:$8 sps:$4 sm:$0xff]   ;;  %v9503_v6 = vld [vmem:[#allocation17 + $0x80] ss:$8 sps:$4 sm:$0xff]  }
 0x610   :  { %6680 = vmatpush1.bf16.msra.mxu0 %v9439_v43  ;;  %8194 = vmatpush3.bf16.msra.mxu1 %v9447_v27  ;;  %v9508_v43 = vld [vmem:[#allocation17 + $0x94] ss:$8 sps:$4 sm:$0xff]   ;;  %v9506_v27 = vld [vmem:[#allocation17 + $0x90] ss:$8 sps:$4 sm:$0xff]  }
 0x611   :  { %6681 = vmatprep.subr.bf16.mxu0 %v9446_v44  ;;  %8195 = vmatprep.subr.bf16.mxu1 %v9448_v30  ;;  %v9509_v44 = vld [vmem:[#allocation17 + $0xa0] ss:$8 sps:$4 sm:$0xff]   ;;  %v9511_v30 = vld [vmem:[#allocation17 + $0xa4] ss:$8 sps:$4 sm:$0xff]  }
 0x614   :  { %6682 = vmatpush1.bf16.msra.mxu0 %v9444_v45  ;;  %8196 = vmatpush3.bf16.msra.mxu1 %v9452_v46  ;;  %v9514_v45 = vld [vmem:[#allocation17 + $0xb4] ss:$8 sps:$4 sm:$0xff]   ;;  %v9512_v46 = vld [vmem:[#allocation17 + $0xb0] ss:$8 sps:$4 sm:$0xff]  }
 0x615   :  { %6683 = vmatprep.subr.bf16.mxu0 %v9451_v47  ;;  %8197 = vmatprep.subr.bf16.mxu1 %v9453_v48  ;;  %v9517_v47 = vld [vmem:[#allocation17 + $0xc4] ss:$8 sps:$4 sm:$0xff]   ;;  %v9515_v48 = vld [vmem:[#allocation17 + $0xc0] ss:$8 sps:$4 sm:$0xff]  }
 0x616   :  { %v5171_v52 = vpop.f32.mrb[28].mxu1 }
 0x617   :  { %v5173_v53 = vpop.f32.mrb[29].mxu1  ;;  %v5180_v54 = vmax.f32 %v5171_v52, 0.0  ;;  %v9521_v52 = vld [vmem:[#allocation17 + $0xe0] ss:$8 sps:$4 sm:$0xff]  }
 0x618   :  { %v5181_v26 = vmax.f32 %v5173_v53, 0.0  ;;  %6684 = vmatpush1.bf16.msra.mxu0 %v9449_v49  ;;  %v5175_v16 = vpop.f32.mrb[30].mxu1  ;;  %8198 = vmatpush3.bf16.msra.mxu1 %v9457_v50  ;;  %v9520_v49 = vld [vmem:[#allocation17 + $0xd4] ss:$8 sps:$4 sm:$0xff]   ;;  %v9518_v50 = vld [vmem:[#allocation17 + $0xd0] ss:$8 sps:$4 sm:$0xff]  }
 0x619   :  { %v5176_v62 = vpop.f32.mrb[31].mxu1  ;;  %6685 = vmatprep.subr.bf16.mxu0 %v9456_v51  ;;  %v5184_v57 = vpack.c.bf16 %v5180_v54, %v5180_v54  ;;  %7084 = vmatprep.subr.bf16.mxu1 %v9481_v20  ;;  %v9523_v51 = vld [vmem:[#allocation17 + $0xe4] ss:$8 sps:$4 sm:$0xff]   ;;  %v9526_v53 = vld [vmem:[#allocation17 + $0xf4] ss:$8 sps:$4 sm:$0xff]  }
 0x61a   :  { %v5185_v56 = vpack.c.bf16 %v5181_v26, %v5181_v26  ;;  %v9524_v54 = vld [vmem:[#allocation17 + $0xf0] ss:$8 sps:$4 sm:$0xff]   ;;  %v9529_v26 = vld [vmem:[#allocation17 + $0x104] ss:$8 sps:$4 sm:$0xff]   ;;  %v9538_v20 = vld [vmem:[#allocation17 + $0x134] ss:$8 sps:$4 sm:$0xff]  }
 0x61c   :  { %6686 = vmatpush1.bf16.msra.mxu0 %v9454_v55  ;;  %6701 = vmatprep.mubr.bf16.mxu0 %v5185_v56 }
 0x61d   :  { %6782 = vmatprep.mubr.bf16.mxu1 %v5185_v56  ;;  %6687 = vmatprep.subr.bf16.mxu0 %v9460_v42 }
 0x61e   :  { %6783 = vmatmul.mubr.bf16.vlgmr.msra.gmra.mrb[44].mxu1 %v5184_v57 }
 0x61f   :  { %7085 = vmatpush1.bf16.msra.mxu1 %v9479_v18  ;;  %v9533_v18 = vld [vmem:[#allocation17 + $0x120] ss:$8 sps:$4 sm:$0xff]  }
 0x620   :  { %6688 = vmatpush1.bf16.msra.mxu0 %v9458_v58  ;;  %7086 = vmatprep.subr.bf16.mxu1 %v9484_v24  ;;  %v9536_v24 = vld [vmem:[#allocation17 + $0x130] ss:$8 sps:$4 sm:$0xff]  }
 0x621   :  { %6689 = vmatprep.subr.bf16.mxu0 %v9463_v59 }
 0x623   :  { %7087 = vmatpush1.bf16.msra.mxu1 %v9482_v25  ;;  %v9541_v25 = vld [vmem:[#allocation17 + $0x144] ss:$8 sps:$4 sm:$0xff]  }
 0x624   :  { %6690 = vmatpush1.bf16.msra.mxu0 %v9461_v61  ;;  %7088 = vmatprep.subr.bf16.mxu1 %v9487_v29  ;;  %v9544_v29 = vld [vmem:[#allocation17 + $0x154] ss:$8 sps:$4 sm:$0xff]  }
 0x625   :  { %6691 = vmatprep.subr.bf16.mxu0 %v9466_v63 }
 0x627   :  { %7089 = vmatpush1.bf16.msra.mxu1 %v9485_v23 }
 0x628   :  { %6692 = vmatpush1.bf16.msra.mxu0 %v9464_v0  ;;  %7090 = vmatprep.subr.bf16.mxu1 %v9490_v34 }
 0x629   :  { %6693 = vmatprep.subr.bf16.mxu0 %v9469_v1 }
 0x62b   :  { %7091 = vmatpush1.bf16.msra.mxu1 %v9488_v35 }
 0x62c   :  { %6694 = vmatpush1.bf16.msra.mxu0 %v9467_v3  ;;  %7092 = vmatprep.subr.bf16.mxu1 %v9493_v36 }
 0x62d   :  { %6695 = vmatprep.subr.bf16.mxu0 %v9472_v4 }
 0x62f   :  { %7093 = vmatpush1.bf16.msra.mxu1 %v9491_v21 }
 0x630   :  { %6696 = vmatpush1.bf16.msra.mxu0 %v9470_v5  ;;  %7094 = vmatprep.subr.bf16.mxu1 %v9496_v37 }
 0x631   :  { %6697 = vmatprep.subr.bf16.mxu0 %v9475_v7 }
 0x633   :  { %7095 = vmatpush1.bf16.msra.mxu1 %v9494_v38 }
 0x634   :  { %6698 = vmatpush1.bf16.msra.mxu0 %v9473_v8  ;;  %7096 = vmatprep.subr.bf16.mxu1 %v9499_v22 }
 0x635   :  { %6699 = vmatprep.subr.bf16.mxu0 %v9478_v10 }
 0x636   :  { %v8133_v13 = vpop.f32.mrb[32].mxu1 }
 0x637   :  { %v8134_v19 = vpop.f32.mrb[33].mxu1  ;;  %7097 = vmatpush1.bf16.msra.mxu1 %v9497_v39 }
 0x638   :  { %v8135_v12 = vadd.f32 %v8134_v19, %v8133_v13  ;;  %6700 = vmatpush1.bf16.msra.mxu0 %v9476_v11  ;;  %v8136_v14 = vpop.f32.mrb[34].mxu1  ;;  %7098 = vmatprep.subr.bf16.mxu1 %v9502_v40  ;;  %v9527_v13 = vld [vmem:[#allocation17 + $0x100] ss:$8 sps:$4 sm:$0xff]  }
 0x639   :  { %v8137_v17 = vpop.f32.mrb[35].mxu1  ;;  %v9530_v14 = vld [vmem:[#allocation17 + $0x110] ss:$8 sps:$4 sm:$0xff]  }
 0x63a   :  { %v9535_v17 = vld [vmem:[#allocation17 + $0x124] ss:$8 sps:$4 sm:$0xff]  }
 0x63b   :  { %6702 = vmatmul.mubr.bf16.vlgmr.msra.gmra.mrb[24].mxu0 %v5184_v57  ;;  %7099 = vmatpush1.bf16.msra.mxu1 %v9500_v2 }
 0x63c   :  { %7100 = vmatprep.subr.bf16.mxu1 %v9505_v41 }
 0x63f   :  { %7101 = vmatpush1.bf16.msra.mxu1 %v9503_v6 }
 0x640   :  { %7102 = vmatprep.subr.bf16.mxu1 %v9508_v43 }
 0x643   :  { %7103 = vmatpush1.bf16.msra.mxu1 %v9506_v27 }
 0x644   :  { %7104 = vmatprep.subr.bf16.mxu1 %v9511_v30 }
 0x647   :  { %7105 = vmatpush1.bf16.msra.mxu1 %v9509_v44 }
 0x648   :  { %7106 = vmatprep.subr.bf16.mxu1 %v9514_v45 }
 0x64b   :  { %7107 = vmatpush1.bf16.msra.mxu1 %v9512_v46 }
 0x64c   :  { %7108 = vmatprep.subr.bf16.mxu1 %v9517_v47 }
 0x64f   :  { %7109 = vmatpush1.bf16.msra.mxu1 %v9515_v48 }
 0x650   :  { %7110 = vmatprep.subr.bf16.mxu1 %v9520_v49 }
 0x653   :  { %7111 = vmatpush1.bf16.msra.mxu1 %v9518_v50 }
 0x654   :  { %7112 = vmatprep.subr.bf16.mxu1 %v9523_v51 }
 0x656   :  { %v8155_v28 = vpop.f32.mrb[36].mxu1 }
 0x657   :  { %v8156_v60 = vpop.f32.mrb[37].mxu1  ;;  %7113 = vmatpush1.bf16.msra.mxu1 %v9521_v52 }
 0x658   :  { %v8157_v31 = vadd.f32 %v8156_v60, %v8155_v28  ;;  %v8158_v32 = vpop.f32.mrb[38].mxu1  ;;  %7114 = vmatprep.subr.bf16.mxu1 %v9526_v53  ;;  %v9539_v28 = vld [vmem:[#allocation17 + $0x140] ss:$8 sps:$4 sm:$0xff]   ;;  %v9542_v60 = vld [vmem:[#allocation17 + $0x150] ss:$8 sps:$4 sm:$0xff]  }
 0x659   :  { %v8159_v15 = vpop.f32.mrb[39].mxu1  ;;  %v9550_v32 = vld [vmem:[#allocation17 + $0x174] ss:$8 sps:$4 sm:$0xff]  }
 0x65a   :  { %v6111_v33 = vadd.f32 %v8157_v31, %v8135_v12  ;;  %v9532_v12 = vld [vmem:[#allocation17 + $0x114] ss:$8 sps:$4 sm:$0xff]   ;;  %v9547_v31 = vld [vmem:[#allocation17 + $0x164] ss:$8 sps:$4 sm:$0xff]   ;;  %v9548_v15 = vld [vmem:[#allocation17 + $0x170] ss:$8 sps:$4 sm:$0xff]  }
 0x65b   :  { %7115 = vmatpush1.bf16.msra.mxu1 %v9524_v54 }
 0x65c   :  { %7125 = vmatprep.subr.bf16.mxu1 %v9529_v26 }
 0x6ce   :  { %v8177_v16 = vpop.f32.mrb[40].mxu1 }
 0x6cf   :  { %v8178_v55 = vpop.f32.mrb[41].mxu1 }
 0x6d0   :  { %v8179_v62 = vadd.f32 %v8178_v55, %v8177_v16  ;;  %v8180_v42 = vpop.f32.mrb[42].mxu1 }
 0x6d1   :  { %v8181_v56 = vpop.f32.mrb[43].mxu1 }
 0x6d2   :  { %v6745_v57 = vadd.f32 %v8179_v62, %v6111_v33 }
 0x6f1   :  { %v8199_v58 = vpop.f32.mrb[44].mxu1 }
 0x6f2   :  { %v8200_v59 = vpop.f32.mrb[45].mxu1 }
 0x6f3   :  { %v8201_v61 = vadd.f32 %v8200_v59, %v8199_v58  ;;  %v8202_v63 = vpop.f32.mrb[46].mxu1 }
 0x6f4   :  { %v8203_v0 = vpop.f32.mrb[47].mxu1 }
 0x6f5   :  { %v6785_v1 = vadd.f32 %v8201_v61, %v6745_v57 }
 0x6f7   :  { %v6792_v23 = vmax.f32 %v6785_v1, 0.0 }
 0x6f9   :  { %v6795_v33 = vpack.c.bf16 %v6792_v23, %v6792_v23 }
 0x70e   :  { %v6703_v3 = vpop.f32.mrb[24].mxu0 }
 0x70f   :  { %v6790_v4 = vmax.f32 %v6703_v3, 0.0  ;;  %v6705_v5 = vpop.f32.mrb[25].mxu0 }
 0x710   :  { %v6791_v7 = vmax.f32 %v6705_v5, 0.0  ;;  %v6707_v8 = vpop.f32.mrb[26].mxu0 }
 0x711   :  { %v6708_v10 = vpop.f32.mrb[27].mxu0  ;;  %v6793_v19 = vpack.c.bf16 %v6790_v4, %v6790_v4 }
 0x712   :  { %v6794_v11 = vpack.c.bf16 %v6791_v7, %v6791_v7 }
 0x714   :  { %7116 = vmatprep.mubr.bf16.mxu1 %v6794_v11 }
 0x715   :  { %7117 = vmatmul.mubr.bf16.vlgmr.msra.gmra.mrb[48].mxu1 %v6793_v19 }
 0x716   :  { %7126 = vmatpush1.bf16.msra.mxu1 %v9527_v13  ;;  %7157 = vmatprep.mubr.bf16.mxu1 %v9823_v9  ;;  %v9545_v9 = vld [vmem:[#allocation17 + $0x160] ss:$8 sps:$4 sm:$0xff]  }
 0x717   :  { %7127 = vmatprep.subr.bf16.mxu1 %v9532_v12 }
 0x71a   :  { %7128 = vmatpush1.bf16.msra.mxu1 %v9530_v14 }
 0x71b   :  { %7129 = vmatprep.subr.bf16.mxu1 %v9535_v17 }
 0x71e   :  { %7130 = vmatpush1.bf16.msra.mxu1 %v9533_v18 }
 0x71f   :  { %7131 = vmatprep.subr.bf16.mxu1 %v9538_v20 }
 0x722   :  { %7132 = vmatpush1.bf16.msra.mxu1 %v9536_v24 }
 0x723   :  { %7133 = vmatprep.subr.bf16.mxu1 %v9541_v25 }
 0x726   :  { %7134 = vmatpush1.bf16.msra.mxu1 %v9539_v28 }
 0x727   :  { %7135 = vmatprep.subr.bf16.mxu1 %v9544_v29 }
 0x72a   :  { %7136 = vmatpush1.bf16.msra.mxu1 %v9542_v60 }
 0x72b   :  { %7137 = vmatprep.subr.bf16.mxu1 %v9547_v31 }
 0x72e   :  { %7138 = vmatpush1.bf16.msra.mxu1 %v9545_v9 }
 0x72f   :  { %7139 = vmatprep.subr.bf16.mxu1 %v9550_v32 }
 0x732   :  { %7140 = vmatpush1.bf16.msra.mxu1 %v9548_v15 }
 0x735   :  { %7158 = vmatmul.mubr.bf16.vlgmr.msra.gmra.mrb[48].mxu1 %v6795_v33 }
 0x808   :  { %v7159_v34 = vpop.f32.mrb[48].mxu1 }
 0x809   :  { %7166 = vst [vmem:[#allocation19] sm:$0xff] %v7159_v34  ;;  %v7161_v35 = vpop.f32.mrb[49].mxu1 }
 0x80a   :  { %7167 = vst [vmem:[#allocation19 + $0x8] sm:$0xff] %v7161_v35  ;;  %v7163_v36 = vpop.f32.mrb[50].mxu1 }
 0x80b   :  { %v7164_v21 = vpop.f32.mrb[51].mxu1 }
 0x80c   :  { %9782 = shalt.err (!%p9779_p0)
}
 0x80d   :  { %s9783_s23 = scalar_lea.hbm %s10187_s12, 256 }
 0x80e   :  { %p9784_p1 = scmp.ne.s32.totalorder %s10187_s12, %s9783_s23  ;;  %p9787_p2 = scmp.lt.u32.totalorder %s9783_s23, %s10187_s12 }
 0x810   :  { %p9789_p3 = pnand %p9787_p2, %p9784_p1 }
 0x812   :  { %9792 = shalt.err (!%p9789_p3)
}
 0x813   :  { %7177 = dma.vmem_to_hbm [thread:$0]  %s7175_s9, 256, %s10187_s12, [#allocation4]  }
 0x814   :  { %9805 = dma.done.wait [#allocation4], 256  }
 0x815   :  { %9806 = vsyncadd [#allocation4], 4294967040 }
 0x816   :  { %7181 = vsyncpa [#allocation3], 1 }
 0x817   :  { %7182 = vsyncpa [#allocation6], 1 }
 0x818   :  { %7183 = vsyncpa [#allocation9], 1 }
 0x819   :  { %7184 = vsyncpa [#allocation12], 1 }
 0x81a   :  { %7185 = vsyncpa [#allocation15], 1 }
 0x81b   :  { %7186 = vsyncpa [#allocation18], 1 }
 0x81c   :  { %7187 = vsyncpa [#allocation4], 1 }

</bundles_post_ra>
